<compile_context>
chip_gen: v6e
topology: v6e:2x2x1
jax: 0.10.0
libtpu: 0.0.40
codegen_flags: <defaults>
</compile_context>

<pallas_src>
import functools
import math

import jax
import jax.numpy as jnp
from jax.experimental import pallas as pl
from jax.experimental.pallas import tpu as pltpu


# rows of the packed bias / layernorm vector table
_ROW_SA_BQKV = 0
_ROW_SA_BO = 1
_ROW_CA_BQ = 2
_ROW_CA_BKV = 3
_ROW_CA_BO = 4
_ROW_FF_B1 = 5
_ROW_FF_B2 = 6
_ROW_LN1_G = 7
_ROW_LN1_B = 8
_ROW_LN2_G = 9
_ROW_LN2_B = 10
_ROW_LN3_G = 11
_ROW_LN3_B = 12
_NUM_VEC_ROWS = 16          # padded to a sublane multiple


# ----------------------------- kernel helpers ------------------------------

def _layernorm(x, gamma, beta, eps=1e-5):
    # PyTorch nn.LayerNorm: biased variance, eps inside sqrt. All f32.
    mean = jnp.mean(x, axis=-1, keepdims=True)
    var = jnp.mean((x - mean) ** 2, axis=-1, keepdims=True)
    return (x - mean) * jax.lax.rsqrt(var + eps) * gamma + beta


def _mxu(a_f32, w_bf16):
    """bf16-input MXU matmul with f32 accumulation."""
    return jnp.dot(a_f32.astype(jnp.bfloat16), w_bf16,
                   preferred_element_type=jnp.float32)


def _attention(q_bf, k_bf, v_bf, wo_h, bo, nb, tq, tk, num_heads, hd,
               mask_add=None):
    """q_bf: (nb, tq, D) bf16; k_bf, v_bf: (nb, tk, D) bf16;
    wo_h: (H, hd, D) bf16; bo: (1, D) f32.  Returns (nb*tq, D) f32.
    The 1/sqrt(hd) softmax scale is already folded into the q projection."""
    d = num_heads * hd
    acc = jnp.zeros((nb * tq, d), jnp.float32)
    mask_b = None
    if mask_add is not None:
        # broadcast ONCE -- JAX does not CSE broadcast_in_dim inside the loop
        mask_b = jnp.broadcast_to(mask_add.reshape(1, tq, tk), (nb, tq, tk))
    # TODO(synk): replace the static per-head loop with a single (nb*H)-batched
    # einsum (one big MXU call) once the (nb,T,H,hd)->(nb,H,T,hd) relayout is
    # known-cheap in Mosaic; per-head matmuls under-fill the 256x256 MXU on
    # v6e/v7x when hd < 256.
    for h in range(num_heads):
        sl = slice(h * hd, (h + 1) * hd)
        qh, kh, vh = q_bf[:, :, sl], k_bf[:, :, sl], v_bf[:, :, sl]
        s = jnp.einsum('bqd,bkd->bqk', qh, kh,
                       preferred_element_type=jnp.float32)       # (nb, tq, tk)
        if mask_b is not None:
            s = s + mask_b                                       # additive mask
        s = s - jnp.max(s, axis=-1, keepdims=True)
        p = jnp.exp(s)
        p = p * pl.reciprocal(jnp.sum(p, axis=-1, keepdims=True), approx=True)
        oh = jnp.einsum('bqk,bkd->bqd', p.astype(jnp.bfloat16), vh,
                        preferred_element_type=jnp.float32)      # (nb, tq, hd)
        # accumulate the output projection head-by-head (no lane concat)
        acc = acc + jnp.dot(oh.reshape(nb * tq, hd).astype(jnp.bfloat16),
                            wo_h[h], preferred_element_type=jnp.float32)
    return acc + bo


# --------------------------------- kernel ----------------------------------

def decoder_layer_kernel(num_heads, ff_chunk,
                         tgt_ref, mem_ref, mask_ref,
                         w_sa_qkv_ref, w_sa_o_ref,
                         w_ca_q_ref, w_ca_kv_ref, w_ca_o_ref,
                         w_ff1_ref, w_ff2_ref, vec_ref,
                         out_ref):
    nb, t, d = tgt_ref.shape
    s_len = mem_ref.shape[1]
    f = w_ff1_ref.shape[1]
    hd = d // num_heads
    bf16, f32 = jnp.bfloat16, jnp.float32

    vecs = vec_ref[...]                              # (16, W) f32

    def vrow(i, width):                              # (1, width) slice
        return vecs[i:i + 1, 0:width]

    x = tgt_ref[...].reshape(nb * t, d)              # (nb*T, D) f32
    mem = mem_ref[...].reshape(nb * s_len, d)        # (nb*S, D) f32
    mask_add = mask_ref[...]                         # (T, T) additive f32

    # --- self attention + residual + norm1 ---
    qkv = _mxu(x, w_sa_qkv_ref[...]) + vrow(_ROW_SA_BQKV, 3 * d)
    qkv = qkv.astype(bf16)                           # single cast of q|k|v
    att = _attention(qkv[:, 0:d].reshape(nb, t, d),
                     qkv[:, d:2 * d].reshape(nb, t, d),
                     qkv[:, 2 * d:3 * d].reshape(nb, t, d),
                     w_sa_o_ref[...], vrow(_ROW_SA_BO, d),
                     nb, t, t, num_heads, hd, mask_add=mask_add)
    x = _layernorm(x + att, vrow(_ROW_LN1_G, d), vrow(_ROW_LN1_B, d))

    # --- cross attention (memory) + residual + norm2 ---
    q = (_mxu(x, w_ca_q_ref[...]) + vrow(_ROW_CA_BQ, d)).astype(bf16)
    kv = (_mxu(mem, w_ca_kv_ref[...]) + vrow(_ROW_CA_BKV, 2 * d)).astype(bf16)
    att = _attention(q.reshape(nb, t, d),
                     kv[:, 0:d].reshape(nb, s_len, d),
                     kv[:, d:2 * d].reshape(nb, s_len, d),
                     w_ca_o_ref[...], vrow(_ROW_CA_BO, d),
                     nb, t, s_len, num_heads, hd, mask_add=None)
    x = _layernorm(x + att, vrow(_ROW_LN2_G, d), vrow(_ROW_LN2_B, d))

    # --- feedforward (linear -> ReLU -> linear), F-chunked, + residual + norm3
    b1 = vrow(_ROW_FF_B1, f)
    y = jnp.zeros((nb * t, d), f32)                  # f32 accumulator
    fc = min(ff_chunk, f)
    for f0 in range(0, f, fc):                       # bounds the (rows, F) live
        f1 = min(f0 + fc, f)                         # intermediate to fc cols
        h1 = jnp.maximum(_mxu(x, w_ff1_ref[:, f0:f1]) + b1[:, f0:f1], 0.0)
        y = y + jnp.dot(h1.astype(bf16), w_ff2_ref[f0:f1, :],
                        preferred_element_type=f32)  # bf16 h1 right after ReLU
    y = y + vrow(_ROW_FF_B2, d)
    x = _layernorm(x + y, vrow(_ROW_LN3_G, d), vrow(_ROW_LN3_B, d))

    out_ref[...] = x.reshape(nb, t, d).astype(out_ref.dtype)


# ------------------------- one-time parameter packing ------------------------

def pack_params(params, num_heads):
    """One-time repacking of the 26 small parameter tensors into MXU-ready bf16
    weights plus ONE packed f32 bias / LayerNorm table.  Hoisted out of the
    per-call path (under jit the repacking would otherwise add HBM copies to
    every forward call).  The 1/sqrt(hd) scale is folded into Wq / bq."""
    D = params["sa_wq"].shape[0]
    F = params["ff_w1"].shape[1]
    hd = D // num_heads
    scale = 1.0 / math.sqrt(hd)
    bf16, f32 = jnp.bfloat16, jnp.float32

    packed = {
        "D": D, "F": F, "num_heads": num_heads,
        "w_sa_qkv": jnp.concatenate(
            [params["sa_wq"] * scale, params["sa_wk"], params["sa_wv"]],
            axis=1).astype(bf16),                                  # (D, 3D)
        "w_sa_o": params["sa_wo"].reshape(num_heads, hd, D).astype(bf16),
        "w_ca_q": (params["ca_wq"] * scale).astype(bf16),          # (D, D)
        "w_ca_kv": jnp.concatenate(
            [params["ca_wk"], params["ca_wv"]], axis=1).astype(bf16),  # (D, 2D)
        "w_ca_o": params["ca_wo"].reshape(num_heads, hd, D).astype(bf16),
        "w_ff1": params["ff_w1"].astype(bf16),                     # (D, F)
        "w_ff2": params["ff_w2"].astype(bf16),                     # (F, D)
    }

    W = max(3 * D, 2 * D, F)

    def row(v):
        v = jnp.asarray(v, f32).reshape(1, -1)
        return jnp.pad(v, ((0, 0), (0, W - v.shape[1])))

    rows = [
        row(jnp.concatenate([params["sa_bq"] * scale, params["sa_bk"],
                             params["sa_bv"]], axis=1)),           # SA_BQKV
        row(params["sa_bo"]),                                      # SA_BO
        row(params["ca_bq"] * scale),                              # CA_BQ
        row(jnp.concatenate([params["ca_bk"], params["ca_bv"]], axis=1)),
        row(params["ca_bo"]),                                      # CA_BO
        row(params["ff_b1"]),                                      # FF_B1
        row(params["ff_b2"]),                                      # FF_B2
        row(params["ln1_g"]), row(params["ln1_b"]),
        row(params["ln2_g"]), row(params["ln2_b"]),
        row(params["ln3_g"]), row(params["ln3_b"]),
    ]
    rows += [jnp.zeros((1, W), f32)] * (_NUM_VEC_ROWS - len(rows))
    packed["vecs"] = jnp.concatenate(rows, axis=0)                 # (16, W)
    return packed


# -------------------------------- wrapper -----------------------------------

def _pick_batch_block(N, T):
    """Default nb: >= 2 grid steps when possible (DMA pipelining + both v7x
    TensorCores), preferring >= 256 rows (nb*T) per step to fill the
    v6e/v7x 256x256 MXU."""
    for steps in (4, 2):
        cand = N // steps
        if cand >= 1 and N % cand == 0 and (cand * T >= 256 or steps == 2):
            return cand
    return N


def transformer_decoder_layer(tgt, memory, tgt_mask, packed, *,
                              batch_block=None, out_dtype=jnp.float32,
                              ff_chunk=2048):
    N, T, D = tgt.shape
    _, S, _ = memory.shape
    num_heads = packed["num_heads"]
    assert D == packed["D"]

    nb = _pick_batch_block(N, T) if batch_block is None else batch_block
    assert N % nb == 0, "batch_block must divide N"
    grid = (N // nb,)

    f32 = jnp.float32
    # additive mask (large finite negative — avoids inf-inf NaN hazard)
    if tgt_mask is None:
        mask_add = jnp.zeros((T, T), f32)
    else:
        mask_add = jnp.where(tgt_mask == 0, -1e9, 0.0).astype(f32)

    weights = (packed["w_sa_qkv"], packed["w_sa_o"], packed["w_ca_q"],
               packed["w_ca_kv"], packed["w_ca_o"], packed["w_ff1"],
               packed["w_ff2"], packed["vecs"])

    kernel = functools.partial(decoder_layer_kernel, num_heads, ff_chunk)

    def build_and_call(single_buffer_consts):
        def const_spec(shape):
            nd = len(shape)
            idx = lambda n, _nd=nd: (0,) * _nd
            if single_buffer_consts:
                # block index never changes -> double buffering is pure VMEM
                # waste (matters most on v7x's 64 MiB VMEM)
                return pl.BlockSpec(shape, idx, pipeline_mode=pl.Buffered(1))
            return pl.BlockSpec(shape, idx)

        in_specs = [
            pl.BlockSpec((nb, T, D), lambda n: (n, 0, 0)),         # tgt
            pl.BlockSpec((nb, S, D), lambda n: (n, 0, 0)),         # memory
            const_spec((T, T)),                                    # mask
        ] + [const_spec(w.shape) for w in weights]

        return pl.pallas_call(
            kernel,
            out_shape=jax.ShapeDtypeStruct((N, T, D), out_dtype),
            grid_spec=pltpu.PrefetchScalarGridSpec(
                num_scalar_prefetch=0,
                grid=grid,
                in_specs=in_specs,
                out_specs=pl.BlockSpec((nb, T, D), lambda n: (n, 0, 0)),
            ),
            compiler_params=pltpu.CompilerParams(
                dimension_semantics=("parallel",),
                # above the scoped defaults (16 MiB v5e / 32 MiB v6e,v7x),
                # below v7x's 64 MiB physical VMEM so the pipeline keeps
                # headroom.
                vmem_limit_bytes=48 * 1024 * 1024,
            ),
        )(tgt, memory, mask_add, *weights)

    try:
        return build_and_call(True)
    except Exception:
        # jax versions without BlockSpec(pipeline_mode=pl.Buffered(1)) support;
        # the only difference vs. the path above is the buffering hint, so any
        # real error reproduces identically here.
        return build_and_call(False)


# --------------------------- parameter creation ------------------------------

def init_params(key, input_dim, dim_feedforward):
    """Deterministic synthetic parameters. All Linear weights are stored
    pre-transposed as (in_features, out_features)."""
    keys = iter(jax.random.split(key, 32))

    def w(shape, scl=0.05):
        return (scl * jax.random.normal(next(keys), shape)).astype(jnp.float32)

    def b(shape, scl=0.02):
        return (scl * jax.random.normal(next(keys), shape)).astype(jnp.float32)

    D, F = input_dim, dim_feedforward
    p = {}
    for pre in ("sa", "ca"):
        p[f"{pre}_wq"] = w((D, D)); p[f"{pre}_bq"] = b((1, D))
        p[f"{pre}_wk"] = w((D, D)); p[f"{pre}_bk"] = b((1, D))
        p[f"{pre}_wv"] = w((D, D)); p[f"{pre}_bv"] = b((1, D))
        p[f"{pre}_wo"] = w((D, D)); p[f"{pre}_bo"] = b((1, D))
    p["ff_w1"] = w((D, F)); p["ff_b1"] = b((1, F))
    p["ff_w2"] = w((F, D)); p["ff_b2"] = b((1, D))
    for i in (1, 2, 3):
        p[f"ln{i}_g"] = jnp.ones((1, D), jnp.float32)
        p[f"ln{i}_b"] = jnp.zeros((1, D), jnp.float32)
    return p


# ------------------------- pure-JAX f32 reference ----------------------------

def _reference(tgt, memory, tgt_mask, params, num_heads):
    def mha(q_in, kv_in, pre, mask=None):
        D = q_in.shape[-1]
        hd = D // num_heads
        q = q_in @ params[f"{pre}_wq"] + params[f"{pre}_bq"]
        k = kv_in @ params[f"{pre}_wk"] + params[f"{pre}_bk"]
        v = kv_in @ params[f"{pre}_wv"] + params[f"{pre}_bv"]

        def split(x):
            n, t, _ = x.shape
            return x.reshape(n, t, num_heads, hd).transpose(0, 2, 1, 3)

        qh, kh, vh = split(q), split(k), split(v)
        s = jnp.einsum('nhqd,nhkd->nhqk', qh, kh) / jnp.sqrt(jnp.float32(hd))
        if mask is not None:
            s = jnp.where(mask == 0, -jnp.inf, s)
        p = jax.nn.softmax(s, axis=-1)
        o = jnp.einsum('nhqk,nhkd->nhqd', p, vh)
        n, _, t, _ = o.shape
        o = o.transpose(0, 2, 1, 3).reshape(n, t, D)
        return o @ params[f"{pre}_wo"] + params[f"{pre}_bo"]

    def ln(x, g, b, eps=1e-5):
        m = x.mean(-1, keepdims=True)
        v = ((x - m) ** 2).mean(-1, keepdims=True)
        return (x - m) / jnp.sqrt(v + eps) * g + b

    x = tgt
    x = ln(x + mha(x, x, "sa", tgt_mask), params["ln1_g"], params["ln1_b"])
    x = ln(x + mha(x, memory, "ca"), params["ln2_g"], params["ln2_b"])
    h = jnp.maximum(x @ params["ff_w1"] + params["ff_b1"], 0.0)
    y = h @ params["ff_w2"] + params["ff_b2"]
    x = ln(x + y, params["ln3_g"], params["ln3_b"])
    return x


# ----------------------------------- main ------------------------------------

if __name__ == "__main__":
    N, T, S = 2, 8, 8
    D = 32               # input_dim (embed dim W)
    H = 4                # num_heads
    F = 64               # dim_feedforward

    key = jax.random.PRNGKey(0)
    k_tgt, k_mem, k_par = jax.random.split(key, 3)

    tgt = jax.random.normal(k_tgt, (N, T, D), dtype=jnp.float32)
    memory = jax.random.normal(k_mem, (N, S, D), dtype=jnp.float32)
    # causal mask: 1 = attend, 0 = masked (masked_fill(mask == 0, -inf))
    tgt_mask = jnp.tril(jnp.ones((T, T), jnp.float32))

    params = init_params(k_par, D, F)
    packed = pack_params(params, H)          # one-time repack, hoisted out of
                                             # the per-call path

    out = transformer_decoder_layer(tgt, memory, tgt_mask, packed)
    out = jax.block_until_ready(out)
    assert out.shape == (N, T, D)
    assert bool(jnp.all(jnp.isfinite(out)))

    # loose tolerance: kernel uses bf16 MXU inputs, f32 accumulation
    ref = _reference(tgt, memory, tgt_mask, params, H)
    err = float(jnp.max(jnp.abs(out - ref)))
    assert err < 5e-2, f"max abs error vs f32 reference too large: {err}"
    print("KERNEL_OK")
</pallas_src>

<mosaic_0001>
module attributes {stable_mosaic.version = 11 : i64} {
  func.func @decoder_layer_kernel(%arg0: i32, %arg1: memref<1x8x32xf32, #tpu.memory_space<vmem>>, %arg2: memref<1x8x32xf32, #tpu.memory_space<vmem>>, %arg3: memref<8x8xf32, #tpu.memory_space<vmem>>, %arg4: memref<32x96xbf16, #tpu.memory_space<vmem>>, %arg5: memref<4x8x32xbf16, #tpu.memory_space<vmem>>, %arg6: memref<32x32xbf16, #tpu.memory_space<vmem>>, %arg7: memref<32x64xbf16, #tpu.memory_space<vmem>>, %arg8: memref<4x8x32xbf16, #tpu.memory_space<vmem>>, %arg9: memref<32x64xbf16, #tpu.memory_space<vmem>>, %arg10: memref<64x32xbf16, #tpu.memory_space<vmem>>, %arg11: memref<16x96xf32, #tpu.memory_space<vmem>>, %arg12: memref<1x8x32xf32, #tpu.memory_space<vmem>>) attributes {dimension_semantics = [#tpu.dimension_semantics<parallel>], iteration_bounds = array<i64: 2>, scalar_prefetch = 0 : i64, scratch_operands = 0 : i64, tpu.core_type = #tpu.core_type<tc>, window_params = [{transform_indices = @transform_0, window_bounds = array<i64: 1, 8, 32>}, {transform_indices = @transform_1, window_bounds = array<i64: 1, 8, 32>}, {pipeline_mode = #tpu.pipeline_mode<synchronous>, transform_indices = @transform_2, window_bounds = array<i64: 8, 8>}, {pipeline_mode = #tpu.pipeline_mode<synchronous>, transform_indices = @transform_3, window_bounds = array<i64: 32, 96>}, {pipeline_mode = #tpu.pipeline_mode<synchronous>, transform_indices = @transform_4, window_bounds = array<i64: 4, 8, 32>}, {pipeline_mode = #tpu.pipeline_mode<synchronous>, transform_indices = @transform_5, window_bounds = array<i64: 32, 32>}, {pipeline_mode = #tpu.pipeline_mode<synchronous>, transform_indices = @transform_6, window_bounds = array<i64: 32, 64>}, {pipeline_mode = #tpu.pipeline_mode<synchronous>, transform_indices = @transform_7, window_bounds = array<i64: 4, 8, 32>}, {pipeline_mode = #tpu.pipeline_mode<synchronous>, transform_indices = @transform_8, window_bounds = array<i64: 32, 64>}, {pipeline_mode = #tpu.pipeline_mode<synchronous>, transform_indices = @transform_9, window_bounds = array<i64: 64, 32>}, {pipeline_mode = #tpu.pipeline_mode<synchronous>, transform_indices = @transform_10, window_bounds = array<i64: 16, 96>}, {transform_indices = @transform_11, window_bounds = array<i64: 1, 8, 32>}]} {
    %c0 = arith.constant 0 : index
    %c0_0 = arith.constant 0 : index
    %0 = vector.load %arg11[%c0, %c0_0] : memref<16x96xf32, #tpu.memory_space<vmem>>, vector<16x96xf32>
    %c0_1 = arith.constant 0 : index
    %c0_2 = arith.constant 0 : index
    %c0_3 = arith.constant 0 : index
    %1 = vector.load %arg1[%c0_1, %c0_2, %c0_3] : memref<1x8x32xf32, #tpu.memory_space<vmem>>, vector<1x8x32xf32>
    %2 = vector.shape_cast %1 : vector<1x8x32xf32> to vector<8x32xf32>
    %c0_4 = arith.constant 0 : index
    %c0_5 = arith.constant 0 : index
    %c0_6 = arith.constant 0 : index
    %3 = vector.load %arg2[%c0_4, %c0_5, %c0_6] : memref<1x8x32xf32, #tpu.memory_space<vmem>>, vector<1x8x32xf32>
    %4 = vector.shape_cast %3 : vector<1x8x32xf32> to vector<8x32xf32>
    %c0_7 = arith.constant 0 : index
    %c0_8 = arith.constant 0 : index
    %5 = vector.load %arg3[%c0_7, %c0_8] : memref<8x8xf32, #tpu.memory_space<vmem>>, vector<8x8xf32>
    %c0_9 = arith.constant 0 : index
    %c0_10 = arith.constant 0 : index
    %6 = vector.load %arg4[%c0_9, %c0_10] : memref<32x96xbf16, #tpu.memory_space<vmem>>, vector<32x96xbf16>
    %7 = arith.truncf %2 : vector<8x32xf32> to vector<8x32xbf16>
    %cst = arith.constant dense<0.000000e+00> : vector<8x96xf32>
    %8 = tpu.matmul %7, %6, %cst {dimension_numbers = #tpu.dot_dimension_numbers<[1], [0], [0], [1], [0, 0, 1, 1], [], []>} : vector<8x32xbf16>, vector<32x96xbf16>, vector<8x96xf32> -> vector<8x96xf32>
    %9 = vector.extract_strided_slice %0 {offsets = [0, 0], sizes = [1, 96], strides = [1, 1]} : vector<16x96xf32> to vector<1x96xf32>
    %10 = vector.broadcast %9 : vector<1x96xf32> to vector<8x96xf32>
    %11 = arith.addf %8, %10 : vector<8x96xf32>
    %12 = arith.truncf %11 : vector<8x96xf32> to vector<8x96xbf16>
    %13 = vector.extract_strided_slice %12 {offsets = [0, 0], sizes = [8, 32], strides = [1, 1]} : vector<8x96xbf16> to vector<8x32xbf16>
    %14 = vector.shape_cast %13 : vector<8x32xbf16> to vector<1x8x32xbf16>
    %15 = vector.extract_strided_slice %12 {offsets = [0, 32], sizes = [8, 32], strides = [1, 1]} : vector<8x96xbf16> to vector<8x32xbf16>
    %16 = vector.shape_cast %15 : vector<8x32xbf16> to vector<1x8x32xbf16>
    %17 = vector.extract_strided_slice %12 {offsets = [0, 64], sizes = [8, 32], strides = [1, 1]} : vector<8x96xbf16> to vector<8x32xbf16>
    %18 = vector.shape_cast %17 : vector<8x32xbf16> to vector<1x8x32xbf16>
    %c0_11 = arith.constant 0 : index
    %c0_12 = arith.constant 0 : index
    %c0_13 = arith.constant 0 : index
    %19 = vector.load %arg5[%c0_11, %c0_12, %c0_13] : memref<4x8x32xbf16, #tpu.memory_space<vmem>>, vector<4x8x32xbf16>
    %20 = vector.extract_strided_slice %0 {offsets = [1, 0], sizes = [1, 32], strides = [1, 1]} : vector<16x96xf32> to vector<1x32xf32>
    %cst_14 = arith.constant 0.000000e+00 : f32
    %21 = vector.broadcast %cst_14 : f32 to vector<8x32xf32>
    %22 = vector.shape_cast %5 : vector<8x8xf32> to vector<1x8x8xf32>
    %23 = vector.extract_strided_slice %14 {offsets = [0, 0, 0], sizes = [1, 8, 8], strides = [1, 1, 1]} : vector<1x8x32xbf16> to vector<1x8x8xbf16>
    %24 = vector.extract_strided_slice %16 {offsets = [0, 0, 0], sizes = [1, 8, 8], strides = [1, 1, 1]} : vector<1x8x32xbf16> to vector<1x8x8xbf16>
    %25 = vector.extract_strided_slice %18 {offsets = [0, 0, 0], sizes = [1, 8, 8], strides = [1, 1, 1]} : vector<1x8x32xbf16> to vector<1x8x8xbf16>
    "tpu.trace_start"() <{level = 10 : i32, message = "bqd,bkd->bqk"}> : () -> ()
    %cst_15 = arith.constant dense<0.000000e+00> : vector<1x8x8xf32>
    %26 = tpu.matmul %23, %24, %cst_15 {dimension_numbers = #tpu.dot_dimension_numbers<[2], [2], [1], [1], [0, 0, 0, 1, 1, 1], [0], [0]>} : vector<1x8x8xbf16>, vector<1x8x8xbf16>, vector<1x8x8xf32> -> vector<1x8x8xf32>
    "tpu.trace_stop"() : () -> ()
    %27 = arith.addf %26, %22 : vector<1x8x8xf32>
    %cst_16 = arith.constant dense<0xFF800000> : vector<1x8xf32>
    %28 = vector.multi_reduction <maximumf>, %27, %cst_16 [2] : vector<1x8x8xf32> to vector<1x8xf32>
    %29 = vector.shape_cast %28 : vector<1x8xf32> to vector<1x8x1xf32>
    %30 = vector.broadcast %29 : vector<1x8x1xf32> to vector<1x8x8xf32>
    %31 = arith.subf %27, %30 : vector<1x8x8xf32>
    %32 = math.exp %31 : vector<1x8x8xf32>
    %cst_17 = arith.constant dense<0.000000e+00> : vector<1x8xf32>
    %33 = vector.multi_reduction <add>, %32, %cst_17 [2] : vector<1x8x8xf32> to vector<1x8xf32>
    %34 = vector.shape_cast %33 : vector<1x8xf32> to vector<1x8x1xf32>
    %35 = tpu.reciprocal %34 {approx = true} : vector<1x8x1xf32> -> vector<1x8x1xf32>
    %36 = vector.broadcast %35 : vector<1x8x1xf32> to vector<1x8x8xf32>
    %37 = arith.mulf %32, %36 : vector<1x8x8xf32>
    %38 = arith.truncf %37 : vector<1x8x8xf32> to vector<1x8x8xbf16>
    "tpu.trace_start"() <{level = 10 : i32, message = "bqk,bkd->bqd"}> : () -> ()
    %cst_18 = arith.constant dense<0.000000e+00> : vector<1x8x8xf32>
    %39 = tpu.matmul %38, %25, %cst_18 {dimension_numbers = #tpu.dot_dimension_numbers<[2], [1], [1], [2], [0, 0, 0, 1, 1, 2], [0], [0]>} : vector<1x8x8xbf16>, vector<1x8x8xbf16>, vector<1x8x8xf32> -> vector<1x8x8xf32>
    "tpu.trace_stop"() : () -> ()
    %40 = vector.shape_cast %39 : vector<1x8x8xf32> to vector<8x8xf32>
    %41 = arith.truncf %40 : vector<8x8xf32> to vector<8x8xbf16>
    %42 = vector.extract_strided_slice %19 {offsets = [0, 0, 0], sizes = [1, 8, 32], strides = [1, 1, 1]} : vector<4x8x32xbf16> to vector<1x8x32xbf16>
    %43 = vector.shape_cast %42 : vector<1x8x32xbf16> to vector<8x32xbf16>
    %cst_19 = arith.constant dense<0.000000e+00> : vector<8x32xf32>
    %44 = tpu.matmul %41, %43, %cst_19 {dimension_numbers = #tpu.dot_dimension_numbers<[1], [0], [0], [1], [0, 0, 1, 1], [], []>} : vector<8x8xbf16>, vector<8x32xbf16>, vector<8x32xf32> -> vector<8x32xf32>
    %45 = arith.addf %21, %44 : vector<8x32xf32>
    %46 = vector.extract_strided_slice %14 {offsets = [0, 0, 8], sizes = [1, 8, 8], strides = [1, 1, 1]} : vector<1x8x32xbf16> to vector<1x8x8xbf16>
    %47 = vector.extract_strided_slice %16 {offsets = [0, 0, 8], sizes = [1, 8, 8], strides = [1, 1, 1]} : vector<1x8x32xbf16> to vector<1x8x8xbf16>
    %48 = vector.extract_strided_slice %18 {offsets = [0, 0, 8], sizes = [1, 8, 8], strides = [1, 1, 1]} : vector<1x8x32xbf16> to vector<1x8x8xbf16>
    "tpu.trace_start"() <{level = 10 : i32, message = "bqd,bkd->bqk"}> : () -> ()
    %cst_20 = arith.constant dense<0.000000e+00> : vector<1x8x8xf32>
    %49 = tpu.matmul %46, %47, %cst_20 {dimension_numbers = #tpu.dot_dimension_numbers<[2], [2], [1], [1], [0, 0, 0, 1, 1, 1], [0], [0]>} : vector<1x8x8xbf16>, vector<1x8x8xbf16>, vector<1x8x8xf32> -> vector<1x8x8xf32>
    "tpu.trace_stop"() : () -> ()
    %50 = arith.addf %49, %22 : vector<1x8x8xf32>
    %cst_21 = arith.constant dense<0xFF800000> : vector<1x8xf32>
    %51 = vector.multi_reduction <maximumf>, %50, %cst_21 [2] : vector<1x8x8xf32> to vector<1x8xf32>
    %52 = vector.shape_cast %51 : vector<1x8xf32> to vector<1x8x1xf32>
    %53 = vector.broadcast %52 : vector<1x8x1xf32> to vector<1x8x8xf32>
    %54 = arith.subf %50, %53 : vector<1x8x8xf32>
    %55 = math.exp %54 : vector<1x8x8xf32>
    %cst_22 = arith.constant dense<0.000000e+00> : vector<1x8xf32>
    %56 = vector.multi_reduction <add>, %55, %cst_22 [2] : vector<1x8x8xf32> to vector<1x8xf32>
    %57 = vector.shape_cast %56 : vector<1x8xf32> to vector<1x8x1xf32>
    %58 = tpu.reciprocal %57 {approx = true} : vector<1x8x1xf32> -> vector<1x8x1xf32>
    %59 = vector.broadcast %58 : vector<1x8x1xf32> to vector<1x8x8xf32>
    %60 = arith.mulf %55, %59 : vector<1x8x8xf32>
    %61 = arith.truncf %60 : vector<1x8x8xf32> to vector<1x8x8xbf16>
    "tpu.trace_start"() <{level = 10 : i32, message = "bqk,bkd->bqd"}> : () -> ()
    %cst_23 = arith.constant dense<0.000000e+00> : vector<1x8x8xf32>
    %62 = tpu.matmul %61, %48, %cst_23 {dimension_numbers = #tpu.dot_dimension_numbers<[2], [1], [1], [2], [0, 0, 0, 1, 1, 2], [0], [0]>} : vector<1x8x8xbf16>, vector<1x8x8xbf16>, vector<1x8x8xf32> -> vector<1x8x8xf32>
    "tpu.trace_stop"() : () -> ()
    %63 = vector.shape_cast %62 : vector<1x8x8xf32> to vector<8x8xf32>
    %64 = arith.truncf %63 : vector<8x8xf32> to vector<8x8xbf16>
    %65 = vector.extract_strided_slice %19 {offsets = [1, 0, 0], sizes = [1, 8, 32], strides = [1, 1, 1]} : vector<4x8x32xbf16> to vector<1x8x32xbf16>
    %66 = vector.shape_cast %65 : vector<1x8x32xbf16> to vector<8x32xbf16>
    %cst_24 = arith.constant dense<0.000000e+00> : vector<8x32xf32>
    %67 = tpu.matmul %64, %66, %cst_24 {dimension_numbers = #tpu.dot_dimension_numbers<[1], [0], [0], [1], [0, 0, 1, 1], [], []>} : vector<8x8xbf16>, vector<8x32xbf16>, vector<8x32xf32> -> vector<8x32xf32>
    %68 = arith.addf %45, %67 : vector<8x32xf32>
    %69 = vector.extract_strided_slice %14 {offsets = [0, 0, 16], sizes = [1, 8, 8], strides = [1, 1, 1]} : vector<1x8x32xbf16> to vector<1x8x8xbf16>
    %70 = vector.extract_strided_slice %16 {offsets = [0, 0, 16], sizes = [1, 8, 8], strides = [1, 1, 1]} : vector<1x8x32xbf16> to vector<1x8x8xbf16>
    %71 = vector.extract_strided_slice %18 {offsets = [0, 0, 16], sizes = [1, 8, 8], strides = [1, 1, 1]} : vector<1x8x32xbf16> to vector<1x8x8xbf16>
    "tpu.trace_start"() <{level = 10 : i32, message = "bqd,bkd->bqk"}> : () -> ()
    %cst_25 = arith.constant dense<0.000000e+00> : vector<1x8x8xf32>
    %72 = tpu.matmul %69, %70, %cst_25 {dimension_numbers = #tpu.dot_dimension_numbers<[2], [2], [1], [1], [0, 0, 0, 1, 1, 1], [0], [0]>} : vector<1x8x8xbf16>, vector<1x8x8xbf16>, vector<1x8x8xf32> -> vector<1x8x8xf32>
    "tpu.trace_stop"() : () -> ()
    %73 = arith.addf %72, %22 : vector<1x8x8xf32>
    %cst_26 = arith.constant dense<0xFF800000> : vector<1x8xf32>
    %74 = vector.multi_reduction <maximumf>, %73, %cst_26 [2] : vector<1x8x8xf32> to vector<1x8xf32>
    %75 = vector.shape_cast %74 : vector<1x8xf32> to vector<1x8x1xf32>
    %76 = vector.broadcast %75 : vector<1x8x1xf32> to vector<1x8x8xf32>
    %77 = arith.subf %73, %76 : vector<1x8x8xf32>
    %78 = math.exp %77 : vector<1x8x8xf32>
    %cst_27 = arith.constant dense<0.000000e+00> : vector<1x8xf32>
    %79 = vector.multi_reduction <add>, %78, %cst_27 [2] : vector<1x8x8xf32> to vector<1x8xf32>
    %80 = vector.shape_cast %79 : vector<1x8xf32> to vector<1x8x1xf32>
    %81 = tpu.reciprocal %80 {approx = true} : vector<1x8x1xf32> -> vector<1x8x1xf32>
    %82 = vector.broadcast %81 : vector<1x8x1xf32> to vector<1x8x8xf32>
    %83 = arith.mulf %78, %82 : vector<1x8x8xf32>
    %84 = arith.truncf %83 : vector<1x8x8xf32> to vector<1x8x8xbf16>
    "tpu.trace_start"() <{level = 10 : i32, message = "bqk,bkd->bqd"}> : () -> ()
    %cst_28 = arith.constant dense<0.000000e+00> : vector<1x8x8xf32>
    %85 = tpu.matmul %84, %71, %cst_28 {dimension_numbers = #tpu.dot_dimension_numbers<[2], [1], [1], [2], [0, 0, 0, 1, 1, 2], [0], [0]>} : vector<1x8x8xbf16>, vector<1x8x8xbf16>, vector<1x8x8xf32> -> vector<1x8x8xf32>
    "tpu.trace_stop"() : () -> ()
    %86 = vector.shape_cast %85 : vector<1x8x8xf32> to vector<8x8xf32>
    %87 = arith.truncf %86 : vector<8x8xf32> to vector<8x8xbf16>
    %88 = vector.extract_strided_slice %19 {offsets = [2, 0, 0], sizes = [1, 8, 32], strides = [1, 1, 1]} : vector<4x8x32xbf16> to vector<1x8x32xbf16>
    %89 = vector.shape_cast %88 : vector<1x8x32xbf16> to vector<8x32xbf16>
    %cst_29 = arith.constant dense<0.000000e+00> : vector<8x32xf32>
    %90 = tpu.matmul %87, %89, %cst_29 {dimension_numbers = #tpu.dot_dimension_numbers<[1], [0], [0], [1], [0, 0, 1, 1], [], []>} : vector<8x8xbf16>, vector<8x32xbf16>, vector<8x32xf32> -> vector<8x32xf32>
    %91 = arith.addf %68, %90 : vector<8x32xf32>
    %92 = vector.extract_strided_slice %14 {offsets = [0, 0, 24], sizes = [1, 8, 8], strides = [1, 1, 1]} : vector<1x8x32xbf16> to vector<1x8x8xbf16>
    %93 = vector.extract_strided_slice %16 {offsets = [0, 0, 24], sizes = [1, 8, 8], strides = [1, 1, 1]} : vector<1x8x32xbf16> to vector<1x8x8xbf16>
    %94 = vector.extract_strided_slice %18 {offsets = [0, 0, 24], sizes = [1, 8, 8], strides = [1, 1, 1]} : vector<1x8x32xbf16> to vector<1x8x8xbf16>
    "tpu.trace_start"() <{level = 10 : i32, message = "bqd,bkd->bqk"}> : () -> ()
    %cst_30 = arith.constant dense<0.000000e+00> : vector<1x8x8xf32>
    %95 = tpu.matmul %92, %93, %cst_30 {dimension_numbers = #tpu.dot_dimension_numbers<[2], [2], [1], [1], [0, 0, 0, 1, 1, 1], [0], [0]>} : vector<1x8x8xbf16>, vector<1x8x8xbf16>, vector<1x8x8xf32> -> vector<1x8x8xf32>
    "tpu.trace_stop"() : () -> ()
    %96 = arith.addf %95, %22 : vector<1x8x8xf32>
    %cst_31 = arith.constant dense<0xFF800000> : vector<1x8xf32>
    %97 = vector.multi_reduction <maximumf>, %96, %cst_31 [2] : vector<1x8x8xf32> to vector<1x8xf32>
    %98 = vector.shape_cast %97 : vector<1x8xf32> to vector<1x8x1xf32>
    %99 = vector.broadcast %98 : vector<1x8x1xf32> to vector<1x8x8xf32>
    %100 = arith.subf %96, %99 : vector<1x8x8xf32>
    %101 = math.exp %100 : vector<1x8x8xf32>
    %cst_32 = arith.constant dense<0.000000e+00> : vector<1x8xf32>
    %102 = vector.multi_reduction <add>, %101, %cst_32 [2] : vector<1x8x8xf32> to vector<1x8xf32>
    %103 = vector.shape_cast %102 : vector<1x8xf32> to vector<1x8x1xf32>
    %104 = tpu.reciprocal %103 {approx = true} : vector<1x8x1xf32> -> vector<1x8x1xf32>
    %105 = vector.broadcast %104 : vector<1x8x1xf32> to vector<1x8x8xf32>
    %106 = arith.mulf %101, %105 : vector<1x8x8xf32>
    %107 = arith.truncf %106 : vector<1x8x8xf32> to vector<1x8x8xbf16>
    "tpu.trace_start"() <{level = 10 : i32, message = "bqk,bkd->bqd"}> : () -> ()
    %cst_33 = arith.constant dense<0.000000e+00> : vector<1x8x8xf32>
    %108 = tpu.matmul %107, %94, %cst_33 {dimension_numbers = #tpu.dot_dimension_numbers<[2], [1], [1], [2], [0, 0, 0, 1, 1, 2], [0], [0]>} : vector<1x8x8xbf16>, vector<1x8x8xbf16>, vector<1x8x8xf32> -> vector<1x8x8xf32>
    "tpu.trace_stop"() : () -> ()
    %109 = vector.shape_cast %108 : vector<1x8x8xf32> to vector<8x8xf32>
    %110 = arith.truncf %109 : vector<8x8xf32> to vector<8x8xbf16>
    %111 = vector.extract_strided_slice %19 {offsets = [3, 0, 0], sizes = [1, 8, 32], strides = [1, 1, 1]} : vector<4x8x32xbf16> to vector<1x8x32xbf16>
    %112 = vector.shape_cast %111 : vector<1x8x32xbf16> to vector<8x32xbf16>
    %cst_34 = arith.constant dense<0.000000e+00> : vector<8x32xf32>
    %113 = tpu.matmul %110, %112, %cst_34 {dimension_numbers = #tpu.dot_dimension_numbers<[1], [0], [0], [1], [0, 0, 1, 1], [], []>} : vector<8x8xbf16>, vector<8x32xbf16>, vector<8x32xf32> -> vector<8x32xf32>
    %114 = arith.addf %91, %113 : vector<8x32xf32>
    %115 = vector.broadcast %20 : vector<1x32xf32> to vector<8x32xf32>
    %116 = arith.addf %114, %115 : vector<8x32xf32>
    %117 = arith.addf %2, %116 : vector<8x32xf32>
    %118 = vector.extract_strided_slice %0 {offsets = [7, 0], sizes = [1, 32], strides = [1, 1]} : vector<16x96xf32> to vector<1x32xf32>
    %119 = vector.extract_strided_slice %0 {offsets = [8, 0], sizes = [1, 32], strides = [1, 1]} : vector<16x96xf32> to vector<1x32xf32>
    %cst_35 = arith.constant dense<0.000000e+00> : vector<8xf32>
    %120 = vector.multi_reduction <add>, %117, %cst_35 [1] : vector<8x32xf32> to vector<8xf32>
    %121 = vector.shape_cast %120 : vector<8xf32> to vector<8x1xf32>
    %cst_36 = arith.constant 3.200000e+01 : f32
    %122 = vector.broadcast %cst_36 : f32 to vector<8x1xf32>
    %123 = arith.divf %121, %122 : vector<8x1xf32>
    %124 = vector.broadcast %123 : vector<8x1xf32> to vector<8x32xf32>
    %125 = arith.subf %117, %124 : vector<8x32xf32>
    %126 = arith.mulf %125, %125 : vector<8x32xf32>
    %cst_37 = arith.constant dense<0.000000e+00> : vector<8xf32>
    %127 = vector.multi_reduction <add>, %126, %cst_37 [1] : vector<8x32xf32> to vector<8xf32>
    %128 = vector.shape_cast %127 : vector<8xf32> to vector<8x1xf32>
    %cst_38 = arith.constant 3.200000e+01 : f32
    %129 = vector.broadcast %cst_38 : f32 to vector<8x1xf32>
    %130 = arith.divf %128, %129 : vector<8x1xf32>
    %131 = vector.broadcast %123 : vector<8x1xf32> to vector<8x32xf32>
    %132 = arith.subf %117, %131 : vector<8x32xf32>
    %cst_39 = arith.constant 9.99999974E-6 : f32
    %133 = vector.broadcast %cst_39 : f32 to vector<8x1xf32>
    %134 = arith.addf %130, %133 : vector<8x1xf32>
    %135 = math.rsqrt %134 : vector<8x1xf32>
    %136 = vector.broadcast %135 : vector<8x1xf32> to vector<8x32xf32>
    %137 = arith.mulf %132, %136 : vector<8x32xf32>
    %138 = vector.broadcast %118 : vector<1x32xf32> to vector<8x32xf32>
    %139 = arith.mulf %137, %138 : vector<8x32xf32>
    %140 = vector.broadcast %119 : vector<1x32xf32> to vector<8x32xf32>
    %141 = arith.addf %139, %140 : vector<8x32xf32>
    %c0_40 = arith.constant 0 : index
    %c0_41 = arith.constant 0 : index
    %142 = vector.load %arg6[%c0_40, %c0_41] : memref<32x32xbf16, #tpu.memory_space<vmem>>, vector<32x32xbf16>
    %143 = arith.truncf %141 : vector<8x32xf32> to vector<8x32xbf16>
    %cst_42 = arith.constant dense<0.000000e+00> : vector<8x32xf32>
    %144 = tpu.matmul %143, %142, %cst_42 {dimension_numbers = #tpu.dot_dimension_numbers<[1], [0], [0], [1], [0, 0, 1, 1], [], []>} : vector<8x32xbf16>, vector<32x32xbf16>, vector<8x32xf32> -> vector<8x32xf32>
    %145 = vector.extract_strided_slice %0 {offsets = [2, 0], sizes = [1, 32], strides = [1, 1]} : vector<16x96xf32> to vector<1x32xf32>
    %146 = vector.broadcast %145 : vector<1x32xf32> to vector<8x32xf32>
    %147 = arith.addf %144, %146 : vector<8x32xf32>
    %148 = arith.truncf %147 : vector<8x32xf32> to vector<8x32xbf16>
    %c0_43 = arith.constant 0 : index
    %c0_44 = arith.constant 0 : index
    %149 = vector.load %arg7[%c0_43, %c0_44] : memref<32x64xbf16, #tpu.memory_space<vmem>>, vector<32x64xbf16>
    %150 = arith.truncf %4 : vector<8x32xf32> to vector<8x32xbf16>
    %cst_45 = arith.constant dense<0.000000e+00> : vector<8x64xf32>
    %151 = tpu.matmul %150, %149, %cst_45 {dimension_numbers = #tpu.dot_dimension_numbers<[1], [0], [0], [1], [0, 0, 1, 1], [], []>} : vector<8x32xbf16>, vector<32x64xbf16>, vector<8x64xf32> -> vector<8x64xf32>
    %152 = vector.extract_strided_slice %0 {offsets = [3, 0], sizes = [1, 64], strides = [1, 1]} : vector<16x96xf32> to vector<1x64xf32>
    %153 = vector.broadcast %152 : vector<1x64xf32> to vector<8x64xf32>
    %154 = arith.addf %151, %153 : vector<8x64xf32>
    %155 = arith.truncf %154 : vector<8x64xf32> to vector<8x64xbf16>
    %156 = vector.shape_cast %148 : vector<8x32xbf16> to vector<1x8x32xbf16>
    %157 = vector.extract_strided_slice %155 {offsets = [0, 0], sizes = [8, 32], strides = [1, 1]} : vector<8x64xbf16> to vector<8x32xbf16>
    %158 = vector.shape_cast %157 : vector<8x32xbf16> to vector<1x8x32xbf16>
    %159 = vector.extract_strided_slice %155 {offsets = [0, 32], sizes = [8, 32], strides = [1, 1]} : vector<8x64xbf16> to vector<8x32xbf16>
    %160 = vector.shape_cast %159 : vector<8x32xbf16> to vector<1x8x32xbf16>
    %c0_46 = arith.constant 0 : index
    %c0_47 = arith.constant 0 : index
    %c0_48 = arith.constant 0 : index
    %161 = vector.load %arg8[%c0_46, %c0_47, %c0_48] : memref<4x8x32xbf16, #tpu.memory_space<vmem>>, vector<4x8x32xbf16>
    %162 = vector.extract_strided_slice %0 {offsets = [4, 0], sizes = [1, 32], strides = [1, 1]} : vector<16x96xf32> to vector<1x32xf32>
    %cst_49 = arith.constant 0.000000e+00 : f32
    %163 = vector.broadcast %cst_49 : f32 to vector<8x32xf32>
    %164 = vector.extract_strided_slice %156 {offsets = [0, 0, 0], sizes = [1, 8, 8], strides = [1, 1, 1]} : vector<1x8x32xbf16> to vector<1x8x8xbf16>
    %165 = vector.extract_strided_slice %158 {offsets = [0, 0, 0], sizes = [1, 8, 8], strides = [1, 1, 1]} : vector<1x8x32xbf16> to vector<1x8x8xbf16>
    %166 = vector.extract_strided_slice %160 {offsets = [0, 0, 0], sizes = [1, 8, 8], strides = [1, 1, 1]} : vector<1x8x32xbf16> to vector<1x8x8xbf16>
    "tpu.trace_start"() <{level = 10 : i32, message = "bqd,bkd->bqk"}> : () -> ()
    %cst_50 = arith.constant dense<0.000000e+00> : vector<1x8x8xf32>
    %167 = tpu.matmul %164, %165, %cst_50 {dimension_numbers = #tpu.dot_dimension_numbers<[2], [2], [1], [1], [0, 0, 0, 1, 1, 1], [0], [0]>} : vector<1x8x8xbf16>, vector<1x8x8xbf16>, vector<1x8x8xf32> -> vector<1x8x8xf32>
    "tpu.trace_stop"() : () -> ()
    %cst_51 = arith.constant dense<0xFF800000> : vector<1x8xf32>
    %168 = vector.multi_reduction <maximumf>, %167, %cst_51 [2] : vector<1x8x8xf32> to vector<1x8xf32>
    %169 = vector.shape_cast %168 : vector<1x8xf32> to vector<1x8x1xf32>
    %170 = vector.broadcast %169 : vector<1x8x1xf32> to vector<1x8x8xf32>
    %171 = arith.subf %167, %170 : vector<1x8x8xf32>
    %172 = math.exp %171 : vector<1x8x8xf32>
    %cst_52 = arith.constant dense<0.000000e+00> : vector<1x8xf32>
    %173 = vector.multi_reduction <add>, %172, %cst_52 [2] : vector<1x8x8xf32> to vector<1x8xf32>
    %174 = vector.shape_cast %173 : vector<1x8xf32> to vector<1x8x1xf32>
    %175 = tpu.reciprocal %174 {approx = true} : vector<1x8x1xf32> -> vector<1x8x1xf32>
    %176 = vector.broadcast %175 : vector<1x8x1xf32> to vector<1x8x8xf32>
    %177 = arith.mulf %172, %176 : vector<1x8x8xf32>
    %178 = arith.truncf %177 : vector<1x8x8xf32> to vector<1x8x8xbf16>
    "tpu.trace_start"() <{level = 10 : i32, message = "bqk,bkd->bqd"}> : () -> ()
    %cst_53 = arith.constant dense<0.000000e+00> : vector<1x8x8xf32>
    %179 = tpu.matmul %178, %166, %cst_53 {dimension_numbers = #tpu.dot_dimension_numbers<[2], [1], [1], [2], [0, 0, 0, 1, 1, 2], [0], [0]>} : vector<1x8x8xbf16>, vector<1x8x8xbf16>, vector<1x8x8xf32> -> vector<1x8x8xf32>
    "tpu.trace_stop"() : () -> ()
    %180 = vector.shape_cast %179 : vector<1x8x8xf32> to vector<8x8xf32>
    %181 = arith.truncf %180 : vector<8x8xf32> to vector<8x8xbf16>
    %182 = vector.extract_strided_slice %161 {offsets = [0, 0, 0], sizes = [1, 8, 32], strides = [1, 1, 1]} : vector<4x8x32xbf16> to vector<1x8x32xbf16>
    %183 = vector.shape_cast %182 : vector<1x8x32xbf16> to vector<8x32xbf16>
    %cst_54 = arith.constant dense<0.000000e+00> : vector<8x32xf32>
    %184 = tpu.matmul %181, %183, %cst_54 {dimension_numbers = #tpu.dot_dimension_numbers<[1], [0], [0], [1], [0, 0, 1, 1], [], []>} : vector<8x8xbf16>, vector<8x32xbf16>, vector<8x32xf32> -> vector<8x32xf32>
    %185 = arith.addf %163, %184 : vector<8x32xf32>
    %186 = vector.extract_strided_slice %156 {offsets = [0, 0, 8], sizes = [1, 8, 8], strides = [1, 1, 1]} : vector<1x8x32xbf16> to vector<1x8x8xbf16>
    %187 = vector.extract_strided_slice %158 {offsets = [0, 0, 8], sizes = [1, 8, 8], strides = [1, 1, 1]} : vector<1x8x32xbf16> to vector<1x8x8xbf16>
    %188 = vector.extract_strided_slice %160 {offsets = [0, 0, 8], sizes = [1, 8, 8], strides = [1, 1, 1]} : vector<1x8x32xbf16> to vector<1x8x8xbf16>
    "tpu.trace_start"() <{level = 10 : i32, message = "bqd,bkd->bqk"}> : () -> ()
    %cst_55 = arith.constant dense<0.000000e+00> : vector<1x8x8xf32>
    %189 = tpu.matmul %186, %187, %cst_55 {dimension_numbers = #tpu.dot_dimension_numbers<[2], [2], [1], [1], [0, 0, 0, 1, 1, 1], [0], [0]>} : vector<1x8x8xbf16>, vector<1x8x8xbf16>, vector<1x8x8xf32> -> vector<1x8x8xf32>
    "tpu.trace_stop"() : () -> ()
    %cst_56 = arith.constant dense<0xFF800000> : vector<1x8xf32>
    %190 = vector.multi_reduction <maximumf>, %189, %cst_56 [2] : vector<1x8x8xf32> to vector<1x8xf32>
    %191 = vector.shape_cast %190 : vector<1x8xf32> to vector<1x8x1xf32>
    %192 = vector.broadcast %191 : vector<1x8x1xf32> to vector<1x8x8xf32>
    %193 = arith.subf %189, %192 : vector<1x8x8xf32>
    %194 = math.exp %193 : vector<1x8x8xf32>
    %cst_57 = arith.constant dense<0.000000e+00> : vector<1x8xf32>
    %195 = vector.multi_reduction <add>, %194, %cst_57 [2] : vector<1x8x8xf32> to vector<1x8xf32>
    %196 = vector.shape_cast %195 : vector<1x8xf32> to vector<1x8x1xf32>
    %197 = tpu.reciprocal %196 {approx = true} : vector<1x8x1xf32> -> vector<1x8x1xf32>
    %198 = vector.broadcast %197 : vector<1x8x1xf32> to vector<1x8x8xf32>
    %199 = arith.mulf %194, %198 : vector<1x8x8xf32>
    %200 = arith.truncf %199 : vector<1x8x8xf32> to vector<1x8x8xbf16>
    "tpu.trace_start"() <{level = 10 : i32, message = "bqk,bkd->bqd"}> : () -> ()
    %cst_58 = arith.constant dense<0.000000e+00> : vector<1x8x8xf32>
    %201 = tpu.matmul %200, %188, %cst_58 {dimension_numbers = #tpu.dot_dimension_numbers<[2], [1], [1], [2], [0, 0, 0, 1, 1, 2], [0], [0]>} : vector<1x8x8xbf16>, vector<1x8x8xbf16>, vector<1x8x8xf32> -> vector<1x8x8xf32>
    "tpu.trace_stop"() : () -> ()
    %202 = vector.shape_cast %201 : vector<1x8x8xf32> to vector<8x8xf32>
    %203 = arith.truncf %202 : vector<8x8xf32> to vector<8x8xbf16>
    %204 = vector.extract_strided_slice %161 {offsets = [1, 0, 0], sizes = [1, 8, 32], strides = [1, 1, 1]} : vector<4x8x32xbf16> to vector<1x8x32xbf16>
    %205 = vector.shape_cast %204 : vector<1x8x32xbf16> to vector<8x32xbf16>
    %cst_59 = arith.constant dense<0.000000e+00> : vector<8x32xf32>
    %206 = tpu.matmul %203, %205, %cst_59 {dimension_numbers = #tpu.dot_dimension_numbers<[1], [0], [0], [1], [0, 0, 1, 1], [], []>} : vector<8x8xbf16>, vector<8x32xbf16>, vector<8x32xf32> -> vector<8x32xf32>
    %207 = arith.addf %185, %206 : vector<8x32xf32>
    %208 = vector.extract_strided_slice %156 {offsets = [0, 0, 16], sizes = [1, 8, 8], strides = [1, 1, 1]} : vector<1x8x32xbf16> to vector<1x8x8xbf16>
    %209 = vector.extract_strided_slice %158 {offsets = [0, 0, 16], sizes = [1, 8, 8], strides = [1, 1, 1]} : vector<1x8x32xbf16> to vector<1x8x8xbf16>
    %210 = vector.extract_strided_slice %160 {offsets = [0, 0, 16], sizes = [1, 8, 8], strides = [1, 1, 1]} : vector<1x8x32xbf16> to vector<1x8x8xbf16>
    "tpu.trace_start"() <{level = 10 : i32, message = "bqd,bkd->bqk"}> : () -> ()
    %cst_60 = arith.constant dense<0.000000e+00> : vector<1x8x8xf32>
    %211 = tpu.matmul %208, %209, %cst_60 {dimension_numbers = #tpu.dot_dimension_numbers<[2], [2], [1], [1], [0, 0, 0, 1, 1, 1], [0], [0]>} : vector<1x8x8xbf16>, vector<1x8x8xbf16>, vector<1x8x8xf32> -> vector<1x8x8xf32>
    "tpu.trace_stop"() : () -> ()
    %cst_61 = arith.constant dense<0xFF800000> : vector<1x8xf32>
    %212 = vector.multi_reduction <maximumf>, %211, %cst_61 [2] : vector<1x8x8xf32> to vector<1x8xf32>
    %213 = vector.shape_cast %212 : vector<1x8xf32> to vector<1x8x1xf32>
    %214 = vector.broadcast %213 : vector<1x8x1xf32> to vector<1x8x8xf32>
    %215 = arith.subf %211, %214 : vector<1x8x8xf32>
    %216 = math.exp %215 : vector<1x8x8xf32>
    %cst_62 = arith.constant dense<0.000000e+00> : vector<1x8xf32>
    %217 = vector.multi_reduction <add>, %216, %cst_62 [2] : vector<1x8x8xf32> to vector<1x8xf32>
    %218 = vector.shape_cast %217 : vector<1x8xf32> to vector<1x8x1xf32>
    %219 = tpu.reciprocal %218 {approx = true} : vector<1x8x1xf32> -> vector<1x8x1xf32>
    %220 = vector.broadcast %219 : vector<1x8x1xf32> to vector<1x8x8xf32>
    %221 = arith.mulf %216, %220 : vector<1x8x8xf32>
    %222 = arith.truncf %221 : vector<1x8x8xf32> to vector<1x8x8xbf16>
    "tpu.trace_start"() <{level = 10 : i32, message = "bqk,bkd->bqd"}> : () -> ()
    %cst_63 = arith.constant dense<0.000000e+00> : vector<1x8x8xf32>
    %223 = tpu.matmul %222, %210, %cst_63 {dimension_numbers = #tpu.dot_dimension_numbers<[2], [1], [1], [2], [0, 0, 0, 1, 1, 2], [0], [0]>} : vector<1x8x8xbf16>, vector<1x8x8xbf16>, vector<1x8x8xf32> -> vector<1x8x8xf32>
    "tpu.trace_stop"() : () -> ()
    %224 = vector.shape_cast %223 : vector<1x8x8xf32> to vector<8x8xf32>
    %225 = arith.truncf %224 : vector<8x8xf32> to vector<8x8xbf16>
    %226 = vector.extract_strided_slice %161 {offsets = [2, 0, 0], sizes = [1, 8, 32], strides = [1, 1, 1]} : vector<4x8x32xbf16> to vector<1x8x32xbf16>
    %227 = vector.shape_cast %226 : vector<1x8x32xbf16> to vector<8x32xbf16>
    %cst_64 = arith.constant dense<0.000000e+00> : vector<8x32xf32>
    %228 = tpu.matmul %225, %227, %cst_64 {dimension_numbers = #tpu.dot_dimension_numbers<[1], [0], [0], [1], [0, 0, 1, 1], [], []>} : vector<8x8xbf16>, vector<8x32xbf16>, vector<8x32xf32> -> vector<8x32xf32>
    %229 = arith.addf %207, %228 : vector<8x32xf32>
    %230 = vector.extract_strided_slice %156 {offsets = [0, 0, 24], sizes = [1, 8, 8], strides = [1, 1, 1]} : vector<1x8x32xbf16> to vector<1x8x8xbf16>
    %231 = vector.extract_strided_slice %158 {offsets = [0, 0, 24], sizes = [1, 8, 8], strides = [1, 1, 1]} : vector<1x8x32xbf16> to vector<1x8x8xbf16>
    %232 = vector.extract_strided_slice %160 {offsets = [0, 0, 24], sizes = [1, 8, 8], strides = [1, 1, 1]} : vector<1x8x32xbf16> to vector<1x8x8xbf16>
    "tpu.trace_start"() <{level = 10 : i32, message = "bqd,bkd->bqk"}> : () -> ()
    %cst_65 = arith.constant dense<0.000000e+00> : vector<1x8x8xf32>
    %233 = tpu.matmul %230, %231, %cst_65 {dimension_numbers = #tpu.dot_dimension_numbers<[2], [2], [1], [1], [0, 0, 0, 1, 1, 1], [0], [0]>} : vector<1x8x8xbf16>, vector<1x8x8xbf16>, vector<1x8x8xf32> -> vector<1x8x8xf32>
    "tpu.trace_stop"() : () -> ()
    %cst_66 = arith.constant dense<0xFF800000> : vector<1x8xf32>
    %234 = vector.multi_reduction <maximumf>, %233, %cst_66 [2] : vector<1x8x8xf32> to vector<1x8xf32>
    %235 = vector.shape_cast %234 : vector<1x8xf32> to vector<1x8x1xf32>
    %236 = vector.broadcast %235 : vector<1x8x1xf32> to vector<1x8x8xf32>
    %237 = arith.subf %233, %236 : vector<1x8x8xf32>
    %238 = math.exp %237 : vector<1x8x8xf32>
    %cst_67 = arith.constant dense<0.000000e+00> : vector<1x8xf32>
    %239 = vector.multi_reduction <add>, %238, %cst_67 [2] : vector<1x8x8xf32> to vector<1x8xf32>
    %240 = vector.shape_cast %239 : vector<1x8xf32> to vector<1x8x1xf32>
    %241 = tpu.reciprocal %240 {approx = true} : vector<1x8x1xf32> -> vector<1x8x1xf32>
    %242 = vector.broadcast %241 : vector<1x8x1xf32> to vector<1x8x8xf32>
    %243 = arith.mulf %238, %242 : vector<1x8x8xf32>
    %244 = arith.truncf %243 : vector<1x8x8xf32> to vector<1x8x8xbf16>
    "tpu.trace_start"() <{level = 10 : i32, message = "bqk,bkd->bqd"}> : () -> ()
    %cst_68 = arith.constant dense<0.000000e+00> : vector<1x8x8xf32>
    %245 = tpu.matmul %244, %232, %cst_68 {dimension_numbers = #tpu.dot_dimension_numbers<[2], [1], [1], [2], [0, 0, 0, 1, 1, 2], [0], [0]>} : vector<1x8x8xbf16>, vector<1x8x8xbf16>, vector<1x8x8xf32> -> vector<1x8x8xf32>
    "tpu.trace_stop"() : () -> ()
    %246 = vector.shape_cast %245 : vector<1x8x8xf32> to vector<8x8xf32>
    %247 = arith.truncf %246 : vector<8x8xf32> to vector<8x8xbf16>
    %248 = vector.extract_strided_slice %161 {offsets = [3, 0, 0], sizes = [1, 8, 32], strides = [1, 1, 1]} : vector<4x8x32xbf16> to vector<1x8x32xbf16>
    %249 = vector.shape_cast %248 : vector<1x8x32xbf16> to vector<8x32xbf16>
    %cst_69 = arith.constant dense<0.000000e+00> : vector<8x32xf32>
    %250 = tpu.matmul %247, %249, %cst_69 {dimension_numbers = #tpu.dot_dimension_numbers<[1], [0], [0], [1], [0, 0, 1, 1], [], []>} : vector<8x8xbf16>, vector<8x32xbf16>, vector<8x32xf32> -> vector<8x32xf32>
    %251 = arith.addf %229, %250 : vector<8x32xf32>
    %252 = vector.broadcast %162 : vector<1x32xf32> to vector<8x32xf32>
    %253 = arith.addf %251, %252 : vector<8x32xf32>
    %254 = arith.addf %141, %253 : vector<8x32xf32>
    %255 = vector.extract_strided_slice %0 {offsets = [9, 0], sizes = [1, 32], strides = [1, 1]} : vector<16x96xf32> to vector<1x32xf32>
    %256 = vector.extract_strided_slice %0 {offsets = [10, 0], sizes = [1, 32], strides = [1, 1]} : vector<16x96xf32> to vector<1x32xf32>
    %cst_70 = arith.constant dense<0.000000e+00> : vector<8xf32>
    %257 = vector.multi_reduction <add>, %254, %cst_70 [1] : vector<8x32xf32> to vector<8xf32>
    %258 = vector.shape_cast %257 : vector<8xf32> to vector<8x1xf32>
    %cst_71 = arith.constant 3.200000e+01 : f32
    %259 = vector.broadcast %cst_71 : f32 to vector<8x1xf32>
    %260 = arith.divf %258, %259 : vector<8x1xf32>
    %261 = vector.broadcast %260 : vector<8x1xf32> to vector<8x32xf32>
    %262 = arith.subf %254, %261 : vector<8x32xf32>
    %263 = arith.mulf %262, %262 : vector<8x32xf32>
    %cst_72 = arith.constant dense<0.000000e+00> : vector<8xf32>
    %264 = vector.multi_reduction <add>, %263, %cst_72 [1] : vector<8x32xf32> to vector<8xf32>
    %265 = vector.shape_cast %264 : vector<8xf32> to vector<8x1xf32>
    %cst_73 = arith.constant 3.200000e+01 : f32
    %266 = vector.broadcast %cst_73 : f32 to vector<8x1xf32>
    %267 = arith.divf %265, %266 : vector<8x1xf32>
    %268 = vector.broadcast %260 : vector<8x1xf32> to vector<8x32xf32>
    %269 = arith.subf %254, %268 : vector<8x32xf32>
    %cst_74 = arith.constant 9.99999974E-6 : f32
    %270 = vector.broadcast %cst_74 : f32 to vector<8x1xf32>
    %271 = arith.addf %267, %270 : vector<8x1xf32>
    %272 = math.rsqrt %271 : vector<8x1xf32>
    %273 = vector.broadcast %272 : vector<8x1xf32> to vector<8x32xf32>
    %274 = arith.mulf %269, %273 : vector<8x32xf32>
    %275 = vector.broadcast %255 : vector<1x32xf32> to vector<8x32xf32>
    %276 = arith.mulf %274, %275 : vector<8x32xf32>
    %277 = vector.broadcast %256 : vector<1x32xf32> to vector<8x32xf32>
    %278 = arith.addf %276, %277 : vector<8x32xf32>
    %279 = vector.extract_strided_slice %0 {offsets = [5, 0], sizes = [1, 64], strides = [1, 1]} : vector<16x96xf32> to vector<1x64xf32>
    %cst_75 = arith.constant 0.000000e+00 : f32
    %280 = vector.broadcast %cst_75 : f32 to vector<8x32xf32>
    %c0_76 = arith.constant 0 : index
    %c0_77 = arith.constant 0 : index
    %281 = vector.load %arg9[%c0_76, %c0_77] : memref<32x64xbf16, #tpu.memory_space<vmem>>, vector<32x64xbf16>
    %282 = arith.truncf %278 : vector<8x32xf32> to vector<8x32xbf16>
    %cst_78 = arith.constant dense<0.000000e+00> : vector<8x64xf32>
    %283 = tpu.matmul %282, %281, %cst_78 {dimension_numbers = #tpu.dot_dimension_numbers<[1], [0], [0], [1], [0, 0, 1, 1], [], []>} : vector<8x32xbf16>, vector<32x64xbf16>, vector<8x64xf32> -> vector<8x64xf32>
    %284 = vector.broadcast %279 : vector<1x64xf32> to vector<8x64xf32>
    %285 = arith.addf %283, %284 : vector<8x64xf32>
    %cst_79 = arith.constant 0.000000e+00 : f32
    %286 = vector.broadcast %cst_79 : f32 to vector<8x64xf32>
    %287 = arith.maximumf %285, %286 : vector<8x64xf32>
    %288 = arith.truncf %287 : vector<8x64xf32> to vector<8x64xbf16>
    %c0_80 = arith.constant 0 : index
    %c0_81 = arith.constant 0 : index
    %289 = vector.load %arg10[%c0_80, %c0_81] : memref<64x32xbf16, #tpu.memory_space<vmem>>, vector<64x32xbf16>
    %cst_82 = arith.constant dense<0.000000e+00> : vector<8x32xf32>
    %290 = tpu.matmul %288, %289, %cst_82 {dimension_numbers = #tpu.dot_dimension_numbers<[1], [0], [0], [1], [0, 0, 1, 1], [], []>} : vector<8x64xbf16>, vector<64x32xbf16>, vector<8x32xf32> -> vector<8x32xf32>
    %291 = arith.addf %280, %290 : vector<8x32xf32>
    %292 = vector.extract_strided_slice %0 {offsets = [6, 0], sizes = [1, 32], strides = [1, 1]} : vector<16x96xf32> to vector<1x32xf32>
    %293 = vector.broadcast %292 : vector<1x32xf32> to vector<8x32xf32>
    %294 = arith.addf %291, %293 : vector<8x32xf32>
    %295 = arith.addf %278, %294 : vector<8x32xf32>
    %296 = vector.extract_strided_slice %0 {offsets = [11, 0], sizes = [1, 32], strides = [1, 1]} : vector<16x96xf32> to vector<1x32xf32>
    %297 = vector.extract_strided_slice %0 {offsets = [12, 0], sizes = [1, 32], strides = [1, 1]} : vector<16x96xf32> to vector<1x32xf32>
    %cst_83 = arith.constant dense<0.000000e+00> : vector<8xf32>
    %298 = vector.multi_reduction <add>, %295, %cst_83 [1] : vector<8x32xf32> to vector<8xf32>
    %299 = vector.shape_cast %298 : vector<8xf32> to vector<8x1xf32>
    %cst_84 = arith.constant 3.200000e+01 : f32
    %300 = vector.broadcast %cst_84 : f32 to vector<8x1xf32>
    %301 = arith.divf %299, %300 : vector<8x1xf32>
    %302 = vector.broadcast %301 : vector<8x1xf32> to vector<8x32xf32>
    %303 = arith.subf %295, %302 : vector<8x32xf32>
    %304 = arith.mulf %303, %303 : vector<8x32xf32>
    %cst_85 = arith.constant dense<0.000000e+00> : vector<8xf32>
    %305 = vector.multi_reduction <add>, %304, %cst_85 [1] : vector<8x32xf32> to vector<8xf32>
    %306 = vector.shape_cast %305 : vector<8xf32> to vector<8x1xf32>
    %cst_86 = arith.constant 3.200000e+01 : f32
    %307 = vector.broadcast %cst_86 : f32 to vector<8x1xf32>
    %308 = arith.divf %306, %307 : vector<8x1xf32>
    %309 = vector.broadcast %301 : vector<8x1xf32> to vector<8x32xf32>
    %310 = arith.subf %295, %309 : vector<8x32xf32>
    %cst_87 = arith.constant 9.99999974E-6 : f32
    %311 = vector.broadcast %cst_87 : f32 to vector<8x1xf32>
    %312 = arith.addf %308, %311 : vector<8x1xf32>
    %313 = math.rsqrt %312 : vector<8x1xf32>
    %314 = vector.broadcast %313 : vector<8x1xf32> to vector<8x32xf32>
    %315 = arith.mulf %310, %314 : vector<8x32xf32>
    %316 = vector.broadcast %296 : vector<1x32xf32> to vector<8x32xf32>
    %317 = arith.mulf %315, %316 : vector<8x32xf32>
    %318 = vector.broadcast %297 : vector<1x32xf32> to vector<8x32xf32>
    %319 = arith.addf %317, %318 : vector<8x32xf32>
    %320 = vector.shape_cast %319 : vector<8x32xf32> to vector<1x8x32xf32>
    %c0_88 = arith.constant 0 : index
    %c0_89 = arith.constant 0 : index
    %c0_90 = arith.constant 0 : index
    %321 = vector.load %arg12[%c0_88, %c0_89, %c0_90] : memref<1x8x32xf32, #tpu.memory_space<vmem>>, vector<1x8x32xf32>
    tpu.vector_store %arg12[%c0_88, %c0_89, %c0_90], %320 {strides = array<i32>} : memref<1x8x32xf32, #tpu.memory_space<vmem>>, vector<1x8x32xf32>,
    return
  }
  func.func @transform_0(%arg0: i32) -> (i32, i32, i32) {
    %c0_i32 = arith.constant 0 : i32
    %c0_i32_0 = arith.constant 0 : i32
    %c0_i32_1 = arith.constant 0 : i32
    return %arg0, %c0_i32, %c0_i32_0 : i32, i32, i32
  }
  func.func @transform_1(%arg0: i32) -> (i32, i32, i32) {
    %c0_i32 = arith.constant 0 : i32
    %c0_i32_0 = arith.constant 0 : i32
    %c0_i32_1 = arith.constant 0 : i32
    return %arg0, %c0_i32, %c0_i32_0 : i32, i32, i32
  }
  func.func @transform_2(%arg0: i32) -> (i32, i32) {
    %c0_i32 = arith.constant 0 : i32
    %c0_i32_0 = arith.constant 0 : i32
    %c0_i32_1 = arith.constant 0 : i32
    return %c0_i32, %c0_i32_0 : i32, i32
  }
  func.func @transform_3(%arg0: i32) -> (i32, i32) {
    %c0_i32 = arith.constant 0 : i32
    %c0_i32_0 = arith.constant 0 : i32
    %c0_i32_1 = arith.constant 0 : i32
    return %c0_i32, %c0_i32_0 : i32, i32
  }
  func.func @transform_4(%arg0: i32) -> (i32, i32, i32) {
    %c0_i32 = arith.constant 0 : i32
    %c0_i32_0 = arith.constant 0 : i32
    %c0_i32_1 = arith.constant 0 : i32
    %c0_i32_2 = arith.constant 0 : i32
    return %c0_i32, %c0_i32_0, %c0_i32_1 : i32, i32, i32
  }
  func.func @transform_5(%arg0: i32) -> (i32, i32) {
    %c0_i32 = arith.constant 0 : i32
    %c0_i32_0 = arith.constant 0 : i32
    %c0_i32_1 = arith.constant 0 : i32
    return %c0_i32, %c0_i32_0 : i32, i32
  }
  func.func @transform_6(%arg0: i32) -> (i32, i32) {
    %c0_i32 = arith.constant 0 : i32
    %c0_i32_0 = arith.constant 0 : i32
    %c0_i32_1 = arith.constant 0 : i32
    return %c0_i32, %c0_i32_0 : i32, i32
  }
  func.func @transform_7(%arg0: i32) -> (i32, i32, i32) {
    %c0_i32 = arith.constant 0 : i32
    %c0_i32_0 = arith.constant 0 : i32
    %c0_i32_1 = arith.constant 0 : i32
    %c0_i32_2 = arith.constant 0 : i32
    return %c0_i32, %c0_i32_0, %c0_i32_1 : i32, i32, i32
  }
  func.func @transform_8(%arg0: i32) -> (i32, i32) {
    %c0_i32 = arith.constant 0 : i32
    %c0_i32_0 = arith.constant 0 : i32
    %c0_i32_1 = arith.constant 0 : i32
    return %c0_i32, %c0_i32_0 : i32, i32
  }
  func.func @transform_9(%arg0: i32) -> (i32, i32) {
    %c0_i32 = arith.constant 0 : i32
    %c0_i32_0 = arith.constant 0 : i32
    %c0_i32_1 = arith.constant 0 : i32
    return %c0_i32, %c0_i32_0 : i32, i32
  }
  func.func @transform_10(%arg0: i32) -> (i32, i32) {
    %c0_i32 = arith.constant 0 : i32
    %c0_i32_0 = arith.constant 0 : i32
    %c0_i32_1 = arith.constant 0 : i32
    return %c0_i32, %c0_i32_0 : i32, i32
  }
  func.func @transform_11(%arg0: i32) -> (i32, i32, i32) {
    %c0_i32 = arith.constant 0 : i32
    %c0_i32_0 = arith.constant 0 : i32
    %c0_i32_1 = arith.constant 0 : i32
    return %arg0, %c0_i32, %c0_i32_0 : i32, i32, i32
  }
}

module attributes {stable_mosaic.version = 11 : i64} {
  func.func @decoder_layer_kernel(%arg0: i32, %arg1: memref<1x8x32xf32, #tpu.memory_space<vmem>>, %arg2: memref<1x8x32xf32, #tpu.memory_space<vmem>>, %arg3: memref<8x8xf32, #tpu.memory_space<vmem>>, %arg4: memref<32x96xbf16, #tpu.memory_space<vmem>>, %arg5: memref<4x8x32xbf16, #tpu.memory_space<vmem>>, %arg6: memref<32x32xbf16, #tpu.memory_space<vmem>>, %arg7: memref<32x64xbf16, #tpu.memory_space<vmem>>, %arg8: memref<4x8x32xbf16, #tpu.memory_space<vmem>>, %arg9: memref<32x64xbf16, #tpu.memory_space<vmem>>, %arg10: memref<64x32xbf16, #tpu.memory_space<vmem>>, %arg11: memref<16x96xf32, #tpu.memory_space<vmem>>, %arg12: memref<1x8x32xf32, #tpu.memory_space<vmem>>) attributes {dimension_semantics = [#tpu.dimension_semantics<parallel>], iteration_bounds = array<i64: 2>, scalar_prefetch = 0 : i64, scratch_operands = 0 : i64, tpu.core_type = #tpu.core_type<tc>, window_params = [{transform_indices = @transform_0, window_bounds = array<i64: 1, 8, 32>}, {transform_indices = @transform_1, window_bounds = array<i64: 1, 8, 32>}, {pipeline_mode = #tpu.pipeline_mode<synchronous>, transform_indices = @transform_2, window_bounds = array<i64: 8, 8>}, {pipeline_mode = #tpu.pipeline_mode<synchronous>, transform_indices = @transform_3, window_bounds = array<i64: 32, 96>}, {pipeline_mode = #tpu.pipeline_mode<synchronous>, transform_indices = @transform_4, window_bounds = array<i64: 4, 8, 32>}, {pipeline_mode = #tpu.pipeline_mode<synchronous>, transform_indices = @transform_5, window_bounds = array<i64: 32, 32>}, {pipeline_mode = #tpu.pipeline_mode<synchronous>, transform_indices = @transform_6, window_bounds = array<i64: 32, 64>}, {pipeline_mode = #tpu.pipeline_mode<synchronous>, transform_indices = @transform_7, window_bounds = array<i64: 4, 8, 32>}, {pipeline_mode = #tpu.pipeline_mode<synchronous>, transform_indices = @transform_8, window_bounds = array<i64: 32, 64>}, {pipeline_mode = #tpu.pipeline_mode<synchronous>, transform_indices = @transform_9, window_bounds = array<i64: 64, 32>}, {pipeline_mode = #tpu.pipeline_mode<synchronous>, transform_indices = @transform_10, window_bounds = array<i64: 16, 96>}, {transform_indices = @transform_11, window_bounds = array<i64: 1, 8, 32>}]} {
    %c0 = arith.constant 0 : index
    %c0_0 = arith.constant 0 : index
    %0 = vector.load %arg11[%c0, %c0_0] : memref<16x96xf32, #tpu.memory_space<vmem>>, vector<16x96xf32>
    %c0_1 = arith.constant 0 : index
    %c0_2 = arith.constant 0 : index
    %c0_3 = arith.constant 0 : index
    %1 = vector.load %arg1[%c0_1, %c0_2, %c0_3] : memref<1x8x32xf32, #tpu.memory_space<vmem>>, vector<1x8x32xf32>
    %2 = vector.shape_cast %1 : vector<1x8x32xf32> to vector<8x32xf32>
    %c0_4 = arith.constant 0 : index
    %c0_5 = arith.constant 0 : index
    %c0_6 = arith.constant 0 : index
    %3 = vector.load %arg2[%c0_4, %c0_5, %c0_6] : memref<1x8x32xf32, #tpu.memory_space<vmem>>, vector<1x8x32xf32>
    %4 = vector.shape_cast %3 : vector<1x8x32xf32> to vector<8x32xf32>
    %c0_7 = arith.constant 0 : index
    %c0_8 = arith.constant 0 : index
    %5 = vector.load %arg3[%c0_7, %c0_8] : memref<8x8xf32, #tpu.memory_space<vmem>>, vector<8x8xf32>
    %c0_9 = arith.constant 0 : index
    %c0_10 = arith.constant 0 : index
    %6 = vector.load %arg4[%c0_9, %c0_10] : memref<32x96xbf16, #tpu.memory_space<vmem>>, vector<32x96xbf16>
    %7 = arith.truncf %2 : vector<8x32xf32> to vector<8x32xbf16>
    %cst = arith.constant dense<0.000000e+00> : vector<8x96xf32>
    %8 = tpu.matmul %7, %6, %cst {dimension_numbers = #tpu.dot_dimension_numbers<[1], [0], [0], [1], [0, 0, 1, 1], [], []>} : vector<8x32xbf16>, vector<32x96xbf16>, vector<8x96xf32> -> vector<8x96xf32>
    %9 = vector.extract_strided_slice %0 {offsets = [0, 0], sizes = [1, 96], strides = [1, 1]} : vector<16x96xf32> to vector<1x96xf32>
    %10 = vector.broadcast %9 : vector<1x96xf32> to vector<8x96xf32>
    %11 = arith.addf %8, %10 : vector<8x96xf32>
    %12 = arith.truncf %11 : vector<8x96xf32> to vector<8x96xbf16>
    %13 = vector.extract_strided_slice %12 {offsets = [0, 0], sizes = [8, 32], strides = [1, 1]} : vector<8x96xbf16> to vector<8x32xbf16>
    %14 = vector.shape_cast %13 : vector<8x32xbf16> to vector<1x8x32xbf16>
    %15 = vector.extract_strided_slice %12 {offsets = [0, 32], sizes = [8, 32], strides = [1, 1]} : vector<8x96xbf16> to vector<8x32xbf16>
    %16 = vector.shape_cast %15 : vector<8x32xbf16> to vector<1x8x32xbf16>
    %17 = vector.extract_strided_slice %12 {offsets = [0, 64], sizes = [8, 32], strides = [1, 1]} : vector<8x96xbf16> to vector<8x32xbf16>
    %18 = vector.shape_cast %17 : vector<8x32xbf16> to vector<1x8x32xbf16>
    %c0_11 = arith.constant 0 : index
    %c0_12 = arith.constant 0 : index
    %c0_13 = arith.constant 0 : index
    %19 = vector.load %arg5[%c0_11, %c0_12, %c0_13] : memref<4x8x32xbf16, #tpu.memory_space<vmem>>, vector<4x8x32xbf16>
    %20 = vector.extract_strided_slice %0 {offsets = [1, 0], sizes = [1, 32], strides = [1, 1]} : vector<16x96xf32> to vector<1x32xf32>
    %cst_14 = arith.constant 0.000000e+00 : f32
    %21 = vector.broadcast %cst_14 : f32 to vector<8x32xf32>
    %22 = vector.shape_cast %5 : vector<8x8xf32> to vector<1x8x8xf32>
    %23 = vector.extract_strided_slice %14 {offsets = [0, 0, 0], sizes = [1, 8, 8], strides = [1, 1, 1]} : vector<1x8x32xbf16> to vector<1x8x8xbf16>
    %24 = vector.extract_strided_slice %16 {offsets = [0, 0, 0], sizes = [1, 8, 8], strides = [1, 1, 1]} : vector<1x8x32xbf16> to vector<1x8x8xbf16>
    %25 = vector.extract_strided_slice %18 {offsets = [0, 0, 0], sizes = [1, 8, 8], strides = [1, 1, 1]} : vector<1x8x32xbf16> to vector<1x8x8xbf16>
    "tpu.trace_start"() <{level = 10 : i32, message = "bqd,bkd->bqk"}> : () -> ()
    %cst_15 = arith.constant dense<0.000000e+00> : vector<1x8x8xf32>
    %26 = tpu.matmul %23, %24, %cst_15 {dimension_numbers = #tpu.dot_dimension_numbers<[2], [2], [1], [1], [0, 0, 0, 1, 1, 1], [0], [0]>} : vector<1x8x8xbf16>, vector<1x8x8xbf16>, vector<1x8x8xf32> -> vector<1x8x8xf32>
    "tpu.trace_stop"() : () -> ()
    %27 = arith.addf %26, %22 : vector<1x8x8xf32>
    %cst_16 = arith.constant dense<0xFF800000> : vector<1x8xf32>
    %28 = vector.multi_reduction <maximumf>, %27, %cst_16 [2] : vector<1x8x8xf32> to vector<1x8xf32>
    %29 = vector.shape_cast %28 : vector<1x8xf32> to vector<1x8x1xf32>
    %30 = vector.broadcast %29 : vector<1x8x1xf32> to vector<1x8x8xf32>
    %31 = arith.subf %27, %30 : vector<1x8x8xf32>
    %32 = math.exp %31 : vector<1x8x8xf32>
    %cst_17 = arith.constant dense<0.000000e+00> : vector<1x8xf32>
    %33 = vector.multi_reduction <add>, %32, %cst_17 [2] : vector<1x8x8xf32> to vector<1x8xf32>
    %34 = vector.shape_cast %33 : vector<1x8xf32> to vector<1x8x1xf32>
    %35 = tpu.reciprocal %34 {approx = true} : vector<1x8x1xf32> -> vector<1x8x1xf32>
    %36 = vector.broadcast %35 : vector<1x8x1xf32> to vector<1x8x8xf32>
    %37 = arith.mulf %32, %36 : vector<1x8x8xf32>
    %38 = arith.truncf %37 : vector<1x8x8xf32> to vector<1x8x8xbf16>
    "tpu.trace_start"() <{level = 10 : i32, message = "bqk,bkd->bqd"}> : () -> ()
    %cst_18 = arith.constant dense<0.000000e+00> : vector<1x8x8xf32>
    %39 = tpu.matmul %38, %25, %cst_18 {dimension_numbers = #tpu.dot_dimension_numbers<[2], [1], [1], [2], [0, 0, 0, 1, 1, 2], [0], [0]>} : vector<1x8x8xbf16>, vector<1x8x8xbf16>, vector<1x8x8xf32> -> vector<1x8x8xf32>
    "tpu.trace_stop"() : () -> ()
    %40 = vector.shape_cast %39 : vector<1x8x8xf32> to vector<8x8xf32>
    %41 = arith.truncf %40 : vector<8x8xf32> to vector<8x8xbf16>
    %42 = vector.extract_strided_slice %19 {offsets = [0, 0, 0], sizes = [1, 8, 32], strides = [1, 1, 1]} : vector<4x8x32xbf16> to vector<1x8x32xbf16>
    %43 = vector.shape_cast %42 : vector<1x8x32xbf16> to vector<8x32xbf16>
    %cst_19 = arith.constant dense<0.000000e+00> : vector<8x32xf32>
    %44 = tpu.matmul %41, %43, %cst_19 {dimension_numbers = #tpu.dot_dimension_numbers<[1], [0], [0], [1], [0, 0, 1, 1], [], []>} : vector<8x8xbf16>, vector<8x32xbf16>, vector<8x32xf32> -> vector<8x32xf32>
    %45 = arith.addf %21, %44 : vector<8x32xf32>
    %46 = vector.extract_strided_slice %14 {offsets = [0, 0, 8], sizes = [1, 8, 8], strides = [1, 1, 1]} : vector<1x8x32xbf16> to vector<1x8x8xbf16>
    %47 = vector.extract_strided_slice %16 {offsets = [0, 0, 8], sizes = [1, 8, 8], strides = [1, 1, 1]} : vector<1x8x32xbf16> to vector<1x8x8xbf16>
    %48 = vector.extract_strided_slice %18 {offsets = [0, 0, 8], sizes = [1, 8, 8], strides = [1, 1, 1]} : vector<1x8x32xbf16> to vector<1x8x8xbf16>
    "tpu.trace_start"() <{level = 10 : i32, message = "bqd,bkd->bqk"}> : () -> ()
    %cst_20 = arith.constant dense<0.000000e+00> : vector<1x8x8xf32>
    %49 = tpu.matmul %46, %47, %cst_20 {dimension_numbers = #tpu.dot_dimension_numbers<[2], [2], [1], [1], [0, 0, 0, 1, 1, 1], [0], [0]>} : vector<1x8x8xbf16>, vector<1x8x8xbf16>, vector<1x8x8xf32> -> vector<1x8x8xf32>
    "tpu.trace_stop"() : () -> ()
    %50 = arith.addf %49, %22 : vector<1x8x8xf32>
    %cst_21 = arith.constant dense<0xFF800000> : vector<1x8xf32>
    %51 = vector.multi_reduction <maximumf>, %50, %cst_21 [2] : vector<1x8x8xf32> to vector<1x8xf32>
    %52 = vector.shape_cast %51 : vector<1x8xf32> to vector<1x8x1xf32>
    %53 = vector.broadcast %52 : vector<1x8x1xf32> to vector<1x8x8xf32>
    %54 = arith.subf %50, %53 : vector<1x8x8xf32>
    %55 = math.exp %54 : vector<1x8x8xf32>
    %cst_22 = arith.constant dense<0.000000e+00> : vector<1x8xf32>
    %56 = vector.multi_reduction <add>, %55, %cst_22 [2] : vector<1x8x8xf32> to vector<1x8xf32>
    %57 = vector.shape_cast %56 : vector<1x8xf32> to vector<1x8x1xf32>
    %58 = tpu.reciprocal %57 {approx = true} : vector<1x8x1xf32> -> vector<1x8x1xf32>
    %59 = vector.broadcast %58 : vector<1x8x1xf32> to vector<1x8x8xf32>
    %60 = arith.mulf %55, %59 : vector<1x8x8xf32>
    %61 = arith.truncf %60 : vector<1x8x8xf32> to vector<1x8x8xbf16>
    "tpu.trace_start"() <{level = 10 : i32, message = "bqk,bkd->bqd"}> : () -> ()
    %cst_23 = arith.constant dense<0.000000e+00> : vector<1x8x8xf32>
    %62 = tpu.matmul %61, %48, %cst_23 {dimension_numbers = #tpu.dot_dimension_numbers<[2], [1], [1], [2], [0, 0, 0, 1, 1, 2], [0], [0]>} : vector<1x8x8xbf16>, vector<1x8x8xbf16>, vector<1x8x8xf32> -> vector<1x8x8xf32>
    "tpu.trace_stop"() : () -> ()
    %63 = vector.shape_cast %62 : vector<1x8x8xf32> to vector<8x8xf32>
    %64 = arith.truncf %63 : vector<8x8xf32> to vector<8x8xbf16>
    %65 = vector.extract_strided_slice %19 {offsets = [1, 0, 0], sizes = [1, 8, 32], strides = [1, 1, 1]} : vector<4x8x32xbf16> to vector<1x8x32xbf16>
    %66 = vector.shape_cast %65 : vector<1x8x32xbf16> to vector<8x32xbf16>
    %cst_24 = arith.constant dense<0.000000e+00> : vector<8x32xf32>
    %67 = tpu.matmul %64, %66, %cst_24 {dimension_numbers = #tpu.dot_dimension_numbers<[1], [0], [0], [1], [0, 0, 1, 1], [], []>} : vector<8x8xbf16>, vector<8x32xbf16>, vector<8x32xf32> -> vector<8x32xf32>
    %68 = arith.addf %45, %67 : vector<8x32xf32>
    %69 = vector.extract_strided_slice %14 {offsets = [0, 0, 16], sizes = [1, 8, 8], strides = [1, 1, 1]} : vector<1x8x32xbf16> to vector<1x8x8xbf16>
    %70 = vector.extract_strided_slice %16 {offsets = [0, 0, 16], sizes = [1, 8, 8], strides = [1, 1, 1]} : vector<1x8x32xbf16> to vector<1x8x8xbf16>
    %71 = vector.extract_strided_slice %18 {offsets = [0, 0, 16], sizes = [1, 8, 8], strides = [1, 1, 1]} : vector<1x8x32xbf16> to vector<1x8x8xbf16>
    "tpu.trace_start"() <{level = 10 : i32, message = "bqd,bkd->bqk"}> : () -> ()
    %cst_25 = arith.constant dense<0.000000e+00> : vector<1x8x8xf32>
    %72 = tpu.matmul %69, %70, %cst_25 {dimension_numbers = #tpu.dot_dimension_numbers<[2], [2], [1], [1], [0, 0, 0, 1, 1, 1], [0], [0]>} : vector<1x8x8xbf16>, vector<1x8x8xbf16>, vector<1x8x8xf32> -> vector<1x8x8xf32>
    "tpu.trace_stop"() : () -> ()
    %73 = arith.addf %72, %22 : vector<1x8x8xf32>
    %cst_26 = arith.constant dense<0xFF800000> : vector<1x8xf32>
    %74 = vector.multi_reduction <maximumf>, %73, %cst_26 [2] : vector<1x8x8xf32> to vector<1x8xf32>
    %75 = vector.shape_cast %74 : vector<1x8xf32> to vector<1x8x1xf32>
    %76 = vector.broadcast %75 : vector<1x8x1xf32> to vector<1x8x8xf32>
    %77 = arith.subf %73, %76 : vector<1x8x8xf32>
    %78 = math.exp %77 : vector<1x8x8xf32>
    %cst_27 = arith.constant dense<0.000000e+00> : vector<1x8xf32>
    %79 = vector.multi_reduction <add>, %78, %cst_27 [2] : vector<1x8x8xf32> to vector<1x8xf32>
    %80 = vector.shape_cast %79 : vector<1x8xf32> to vector<1x8x1xf32>
    %81 = tpu.reciprocal %80 {approx = true} : vector<1x8x1xf32> -> vector<1x8x1xf32>
    %82 = vector.broadcast %81 : vector<1x8x1xf32> to vector<1x8x8xf32>
    %83 = arith.mulf %78, %82 : vector<1x8x8xf32>
    %84 = arith.truncf %83 : vector<1x8x8xf32> to vector<1x8x8xbf16>
    "tpu.trace_start"() <{level = 10 : i32, message = "bqk,bkd->bqd"}> : () -> ()
    %cst_28 = arith.constant dense<0.000000e+00> : vector<1x8x8xf32>
    %85 = tpu.matmul %84, %71, %cst_28 {dimension_numbers = #tpu.dot_dimension_numbers<[2], [1], [1], [2], [0, 0, 0, 1, 1, 2], [0], [0]>} : vector<1x8x8xbf16>, vector<1x8x8xbf16>, vector<1x8x8xf32> -> vector<1x8x8xf32>
    "tpu.trace_stop"() : () -> ()
    %86 = vector.shape_cast %85 : vector<1x8x8xf32> to vector<8x8xf32>
    %87 = arith.truncf %86 : vector<8x8xf32> to vector<8x8xbf16>
    %88 = vector.extract_strided_slice %19 {offsets = [2, 0, 0], sizes = [1, 8, 32], strides = [1, 1, 1]} : vector<4x8x32xbf16> to vector<1x8x32xbf16>
    %89 = vector.shape_cast %88 : vector<1x8x32xbf16> to vector<8x32xbf16>
    %cst_29 = arith.constant dense<0.000000e+00> : vector<8x32xf32>
    %90 = tpu.matmul %87, %89, %cst_29 {dimension_numbers = #tpu.dot_dimension_numbers<[1], [0], [0], [1], [0, 0, 1, 1], [], []>} : vector<8x8xbf16>, vector<8x32xbf16>, vector<8x32xf32> -> vector<8x32xf32>
    %91 = arith.addf %68, %90 : vector<8x32xf32>
    %92 = vector.extract_strided_slice %14 {offsets = [0, 0, 24], sizes = [1, 8, 8], strides = [1, 1, 1]} : vector<1x8x32xbf16> to vector<1x8x8xbf16>
    %93 = vector.extract_strided_slice %16 {offsets = [0, 0, 24], sizes = [1, 8, 8], strides = [1, 1, 1]} : vector<1x8x32xbf16> to vector<1x8x8xbf16>
    %94 = vector.extract_strided_slice %18 {offsets = [0, 0, 24], sizes = [1, 8, 8], strides = [1, 1, 1]} : vector<1x8x32xbf16> to vector<1x8x8xbf16>
    "tpu.trace_start"() <{level = 10 : i32, message = "bqd,bkd->bqk"}> : () -> ()
    %cst_30 = arith.constant dense<0.000000e+00> : vector<1x8x8xf32>
    %95 = tpu.matmul %92, %93, %cst_30 {dimension_numbers = #tpu.dot_dimension_numbers<[2], [2], [1], [1], [0, 0, 0, 1, 1, 1], [0], [0]>} : vector<1x8x8xbf16>, vector<1x8x8xbf16>, vector<1x8x8xf32> -> vector<1x8x8xf32>
    "tpu.trace_stop"() : () -> ()
    %96 = arith.addf %95, %22 : vector<1x8x8xf32>
    %cst_31 = arith.constant dense<0xFF800000> : vector<1x8xf32>
    %97 = vector.multi_reduction <maximumf>, %96, %cst_31 [2] : vector<1x8x8xf32> to vector<1x8xf32>
    %98 = vector.shape_cast %97 : vector<1x8xf32> to vector<1x8x1xf32>
    %99 = vector.broadcast %98 : vector<1x8x1xf32> to vector<1x8x8xf32>
    %100 = arith.subf %96, %99 : vector<1x8x8xf32>
    %101 = math.exp %100 : vector<1x8x8xf32>
    %cst_32 = arith.constant dense<0.000000e+00> : vector<1x8xf32>
    %102 = vector.multi_reduction <add>, %101, %cst_32 [2] : vector<1x8x8xf32> to vector<1x8xf32>
    %103 = vector.shape_cast %102 : vector<1x8xf32> to vector<1x8x1xf32>
    %104 = tpu.reciprocal %103 {approx = true} : vector<1x8x1xf32> -> vector<1x8x1xf32>
    %105 = vector.broadcast %104 : vector<1x8x1xf32> to vector<1x8x8xf32>
    %106 = arith.mulf %101, %105 : vector<1x8x8xf32>
    %107 = arith.truncf %106 : vector<1x8x8xf32> to vector<1x8x8xbf16>
    "tpu.trace_start"() <{level = 10 : i32, message = "bqk,bkd->bqd"}> : () -> ()
    %cst_33 = arith.constant dense<0.000000e+00> : vector<1x8x8xf32>
    %108 = tpu.matmul %107, %94, %cst_33 {dimension_numbers = #tpu.dot_dimension_numbers<[2], [1], [1], [2], [0, 0, 0, 1, 1, 2], [0], [0]>} : vector<1x8x8xbf16>, vector<1x8x8xbf16>, vector<1x8x8xf32> -> vector<1x8x8xf32>
    "tpu.trace_stop"() : () -> ()
    %109 = vector.shape_cast %108 : vector<1x8x8xf32> to vector<8x8xf32>
    %110 = arith.truncf %109 : vector<8x8xf32> to vector<8x8xbf16>
    %111 = vector.extract_strided_slice %19 {offsets = [3, 0, 0], sizes = [1, 8, 32], strides = [1, 1, 1]} : vector<4x8x32xbf16> to vector<1x8x32xbf16>
    %112 = vector.shape_cast %111 : vector<1x8x32xbf16> to vector<8x32xbf16>
    %cst_34 = arith.constant dense<0.000000e+00> : vector<8x32xf32>
    %113 = tpu.matmul %110, %112, %cst_34 {dimension_numbers = #tpu.dot_dimension_numbers<[1], [0], [0], [1], [0, 0, 1, 1], [], []>} : vector<8x8xbf16>, vector<8x32xbf16>, vector<8x32xf32> -> vector<8x32xf32>
    %114 = arith.addf %91, %113 : vector<8x32xf32>
    %115 = vector.broadcast %20 : vector<1x32xf32> to vector<8x32xf32>
    %116 = arith.addf %114, %115 : vector<8x32xf32>
    %117 = arith.addf %2, %116 : vector<8x32xf32>
    %118 = vector.extract_strided_slice %0 {offsets = [7, 0], sizes = [1, 32], strides = [1, 1]} : vector<16x96xf32> to vector<1x32xf32>
    %119 = vector.extract_strided_slice %0 {offsets = [8, 0], sizes = [1, 32], strides = [1, 1]} : vector<16x96xf32> to vector<1x32xf32>
    %cst_35 = arith.constant dense<0.000000e+00> : vector<8xf32>
    %120 = vector.multi_reduction <add>, %117, %cst_35 [1] : vector<8x32xf32> to vector<8xf32>
    %121 = vector.shape_cast %120 : vector<8xf32> to vector<8x1xf32>
    %cst_36 = arith.constant 3.200000e+01 : f32
    %122 = vector.broadcast %cst_36 : f32 to vector<8x1xf32>
    %123 = arith.divf %121, %122 : vector<8x1xf32>
    %124 = vector.broadcast %123 : vector<8x1xf32> to vector<8x32xf32>
    %125 = arith.subf %117, %124 : vector<8x32xf32>
    %126 = arith.mulf %125, %125 : vector<8x32xf32>
    %cst_37 = arith.constant dense<0.000000e+00> : vector<8xf32>
    %127 = vector.multi_reduction <add>, %126, %cst_37 [1] : vector<8x32xf32> to vector<8xf32>
    %128 = vector.shape_cast %127 : vector<8xf32> to vector<8x1xf32>
    %cst_38 = arith.constant 3.200000e+01 : f32
    %129 = vector.broadcast %cst_38 : f32 to vector<8x1xf32>
    %130 = arith.divf %128, %129 : vector<8x1xf32>
    %131 = vector.broadcast %123 : vector<8x1xf32> to vector<8x32xf32>
    %132 = arith.subf %117, %131 : vector<8x32xf32>
    %cst_39 = arith.constant 9.99999974E-6 : f32
    %133 = vector.broadcast %cst_39 : f32 to vector<8x1xf32>
    %134 = arith.addf %130, %133 : vector<8x1xf32>
    %135 = math.rsqrt %134 : vector<8x1xf32>
    %136 = vector.broadcast %135 : vector<8x1xf32> to vector<8x32xf32>
    %137 = arith.mulf %132, %136 : vector<8x32xf32>
    %138 = vector.broadcast %118 : vector<1x32xf32> to vector<8x32xf32>
    %139 = arith.mulf %137, %138 : vector<8x32xf32>
    %140 = vector.broadcast %119 : vector<1x32xf32> to vector<8x32xf32>
    %141 = arith.addf %139, %140 : vector<8x32xf32>
    %c0_40 = arith.constant 0 : index
    %c0_41 = arith.constant 0 : index
    %142 = vector.load %arg6[%c0_40, %c0_41] : memref<32x32xbf16, #tpu.memory_space<vmem>>, vector<32x32xbf16>
    %143 = arith.truncf %141 : vector<8x32xf32> to vector<8x32xbf16>
    %cst_42 = arith.constant dense<0.000000e+00> : vector<8x32xf32>
    %144 = tpu.matmul %143, %142, %cst_42 {dimension_numbers = #tpu.dot_dimension_numbers<[1], [0], [0], [1], [0, 0, 1, 1], [], []>} : vector<8x32xbf16>, vector<32x32xbf16>, vector<8x32xf32> -> vector<8x32xf32>
    %145 = vector.extract_strided_slice %0 {offsets = [2, 0], sizes = [1, 32], strides = [1, 1]} : vector<16x96xf32> to vector<1x32xf32>
    %146 = vector.broadcast %145 : vector<1x32xf32> to vector<8x32xf32>
    %147 = arith.addf %144, %146 : vector<8x32xf32>
    %148 = arith.truncf %147 : vector<8x32xf32> to vector<8x32xbf16>
    %c0_43 = arith.constant 0 : index
    %c0_44 = arith.constant 0 : index
    %149 = vector.load %arg7[%c0_43, %c0_44] : memref<32x64xbf16, #tpu.memory_space<vmem>>, vector<32x64xbf16>
    %150 = arith.truncf %4 : vector<8x32xf32> to vector<8x32xbf16>
    %cst_45 = arith.constant dense<0.000000e+00> : vector<8x64xf32>
    %151 = tpu.matmul %150, %149, %cst_45 {dimension_numbers = #tpu.dot_dimension_numbers<[1], [0], [0], [1], [0, 0, 1, 1], [], []>} : vector<8x32xbf16>, vector<32x64xbf16>, vector<8x64xf32> -> vector<8x64xf32>
    %152 = vector.extract_strided_slice %0 {offsets = [3, 0], sizes = [1, 64], strides = [1, 1]} : vector<16x96xf32> to vector<1x64xf32>
    %153 = vector.broadcast %152 : vector<1x64xf32> to vector<8x64xf32>
    %154 = arith.addf %151, %153 : vector<8x64xf32>
    %155 = arith.truncf %154 : vector<8x64xf32> to vector<8x64xbf16>
    %156 = vector.shape_cast %148 : vector<8x32xbf16> to vector<1x8x32xbf16>
    %157 = vector.extract_strided_slice %155 {offsets = [0, 0], sizes = [8, 32], strides = [1, 1]} : vector<8x64xbf16> to vector<8x32xbf16>
    %158 = vector.shape_cast %157 : vector<8x32xbf16> to vector<1x8x32xbf16>
    %159 = vector.extract_strided_slice %155 {offsets = [0, 32], sizes = [8, 32], strides = [1, 1]} : vector<8x64xbf16> to vector<8x32xbf16>
    %160 = vector.shape_cast %159 : vector<8x32xbf16> to vector<1x8x32xbf16>
    %c0_46 = arith.constant 0 : index
    %c0_47 = arith.constant 0 : index
    %c0_48 = arith.constant 0 : index
    %161 = vector.load %arg8[%c0_46, %c0_47, %c0_48] : memref<4x8x32xbf16, #tpu.memory_space<vmem>>, vector<4x8x32xbf16>
    %162 = vector.extract_strided_slice %0 {offsets = [4, 0], sizes = [1, 32], strides = [1, 1]} : vector<16x96xf32> to vector<1x32xf32>
    %cst_49 = arith.constant 0.000000e+00 : f32
    %163 = vector.broadcast %cst_49 : f32 to vector<8x32xf32>
    %164 = vector.extract_strided_slice %156 {offsets = [0, 0, 0], sizes = [1, 8, 8], strides = [1, 1, 1]} : vector<1x8x32xbf16> to vector<1x8x8xbf16>
    %165 = vector.extract_strided_slice %158 {offsets = [0, 0, 0], sizes = [1, 8, 8], strides = [1, 1, 1]} : vector<1x8x32xbf16> to vector<1x8x8xbf16>
    %166 = vector.extract_strided_slice %160 {offsets = [0, 0, 0], sizes = [1, 8, 8], strides = [1, 1, 1]} : vector<1x8x32xbf16> to vector<1x8x8xbf16>
    "tpu.trace_start"() <{level = 10 : i32, message = "bqd,bkd->bqk"}> : () -> ()
    %cst_50 = arith.constant dense<0.000000e+00> : vector<1x8x8xf32>
    %167 = tpu.matmul %164, %165, %cst_50 {dimension_numbers = #tpu.dot_dimension_numbers<[2], [2], [1], [1], [0, 0, 0, 1, 1, 1], [0], [0]>} : vector<1x8x8xbf16>, vector<1x8x8xbf16>, vector<1x8x8xf32> -> vector<1x8x8xf32>
    "tpu.trace_stop"() : () -> ()
    %cst_51 = arith.constant dense<0xFF800000> : vector<1x8xf32>
    %168 = vector.multi_reduction <maximumf>, %167, %cst_51 [2] : vector<1x8x8xf32> to vector<1x8xf32>
    %169 = vector.shape_cast %168 : vector<1x8xf32> to vector<1x8x1xf32>
    %170 = vector.broadcast %169 : vector<1x8x1xf32> to vector<1x8x8xf32>
    %171 = arith.subf %167, %170 : vector<1x8x8xf32>
    %172 = math.exp %171 : vector<1x8x8xf32>
    %cst_52 = arith.constant dense<0.000000e+00> : vector<1x8xf32>
    %173 = vector.multi_reduction <add>, %172, %cst_52 [2] : vector<1x8x8xf32> to vector<1x8xf32>
    %174 = vector.shape_cast %173 : vector<1x8xf32> to vector<1x8x1xf32>
    %175 = tpu.reciprocal %174 {approx = true} : vector<1x8x1xf32> -> vector<1x8x1xf32>
    %176 = vector.broadcast %175 : vector<1x8x1xf32> to vector<1x8x8xf32>
    %177 = arith.mulf %172, %176 : vector<1x8x8xf32>
    %178 = arith.truncf %177 : vector<1x8x8xf32> to vector<1x8x8xbf16>
    "tpu.trace_start"() <{level = 10 : i32, message = "bqk,bkd->bqd"}> : () -> ()
    %cst_53 = arith.constant dense<0.000000e+00> : vector<1x8x8xf32>
    %179 = tpu.matmul %178, %166, %cst_53 {dimension_numbers = #tpu.dot_dimension_numbers<[2], [1], [1], [2], [0, 0, 0, 1, 1, 2], [0], [0]>} : vector<1x8x8xbf16>, vector<1x8x8xbf16>, vector<1x8x8xf32> -> vector<1x8x8xf32>
    "tpu.trace_stop"() : () -> ()
    %180 = vector.shape_cast %179 : vector<1x8x8xf32> to vector<8x8xf32>
    %181 = arith.truncf %180 : vector<8x8xf32> to vector<8x8xbf16>
    %182 = vector.extract_strided_slice %161 {offsets = [0, 0, 0], sizes = [1, 8, 32], strides = [1, 1, 1]} : vector<4x8x32xbf16> to vector<1x8x32xbf16>
    %183 = vector.shape_cast %182 : vector<1x8x32xbf16> to vector<8x32xbf16>
    %cst_54 = arith.constant dense<0.000000e+00> : vector<8x32xf32>
    %184 = tpu.matmul %181, %183, %cst_54 {dimension_numbers = #tpu.dot_dimension_numbers<[1], [0], [0], [1], [0, 0, 1, 1], [], []>} : vector<8x8xbf16>, vector<8x32xbf16>, vector<8x32xf32> -> vector<8x32xf32>
    %185 = arith.addf %163, %184 : vector<8x32xf32>
    %186 = vector.extract_strided_slice %156 {offsets = [0, 0, 8], sizes = [1, 8, 8], strides = [1, 1, 1]} : vector<1x8x32xbf16> to vector<1x8x8xbf16>
    %187 = vector.extract_strided_slice %158 {offsets = [0, 0, 8], sizes = [1, 8, 8], strides = [1, 1, 1]} : vector<1x8x32xbf16> to vector<1x8x8xbf16>
    %188 = vector.extract_strided_slice %160 {offsets = [0, 0, 8], sizes = [1, 8, 8], strides = [1, 1, 1]} : vector<1x8x32xbf16> to vector<1x8x8xbf16>
    "tpu.trace_start"() <{level = 10 : i32, message = "bqd,bkd->bqk"}> : () -> ()
    %cst_55 = arith.constant dense<0.000000e+00> : vector<1x8x8xf32>
    %189 = tpu.matmul %186, %187, %cst_55 {dimension_numbers = #tpu.dot_dimension_numbers<[2], [2], [1], [1], [0, 0, 0, 1, 1, 1], [0], [0]>} : vector<1x8x8xbf16>, vector<1x8x8xbf16>, vector<1x8x8xf32> -> vector<1x8x8xf32>
    "tpu.trace_stop"() : () -> ()
    %cst_56 = arith.constant dense<0xFF800000> : vector<1x8xf32>
    %190 = vector.multi_reduction <maximumf>, %189, %cst_56 [2] : vector<1x8x8xf32> to vector<1x8xf32>
    %191 = vector.shape_cast %190 : vector<1x8xf32> to vector<1x8x1xf32>
    %192 = vector.broadcast %191 : vector<1x8x1xf32> to vector<1x8x8xf32>
    %193 = arith.subf %189, %192 : vector<1x8x8xf32>
    %194 = math.exp %193 : vector<1x8x8xf32>
    %cst_57 = arith.constant dense<0.000000e+00> : vector<1x8xf32>
    %195 = vector.multi_reduction <add>, %194, %cst_57 [2] : vector<1x8x8xf32> to vector<1x8xf32>
    %196 = vector.shape_cast %195 : vector<1x8xf32> to vector<1x8x1xf32>
    %197 = tpu.reciprocal %196 {approx = true} : vector<1x8x1xf32> -> vector<1x8x1xf32>
    %198 = vector.broadcast %197 : vector<1x8x1xf32> to vector<1x8x8xf32>
    %199 = arith.mulf %194, %198 : vector<1x8x8xf32>
    %200 = arith.truncf %199 : vector<1x8x8xf32> to vector<1x8x8xbf16>
    "tpu.trace_start"() <{level = 10 : i32, message = "bqk,bkd->bqd"}> : () -> ()
    %cst_58 = arith.constant dense<0.000000e+00> : vector<1x8x8xf32>
    %201 = tpu.matmul %200, %188, %cst_58 {dimension_numbers = #tpu.dot_dimension_numbers<[2], [1], [1], [2], [0, 0, 0, 1, 1, 2], [0], [0]>} : vector<1x8x8xbf16>, vector<1x8x8xbf16>, vector<1x8x8xf32> -> vector<1x8x8xf32>
    "tpu.trace_stop"() : () -> ()
    %202 = vector.shape_cast %201 : vector<1x8x8xf32> to vector<8x8xf32>
    %203 = arith.truncf %202 : vector<8x8xf32> to vector<8x8xbf16>
    %204 = vector.extract_strided_slice %161 {offsets = [1, 0, 0], sizes = [1, 8, 32], strides = [1, 1, 1]} : vector<4x8x32xbf16> to vector<1x8x32xbf16>
    %205 = vector.shape_cast %204 : vector<1x8x32xbf16> to vector<8x32xbf16>
    %cst_59 = arith.constant dense<0.000000e+00> : vector<8x32xf32>
    %206 = tpu.matmul %203, %205, %cst_59 {dimension_numbers = #tpu.dot_dimension_numbers<[1], [0], [0], [1], [0, 0, 1, 1], [], []>} : vector<8x8xbf16>, vector<8x32xbf16>, vector<8x32xf32> -> vector<8x32xf32>
    %207 = arith.addf %185, %206 : vector<8x32xf32>
    %208 = vector.extract_strided_slice %156 {offsets = [0, 0, 16], sizes = [1, 8, 8], strides = [1, 1, 1]} : vector<1x8x32xbf16> to vector<1x8x8xbf16>
    %209 = vector.extract_strided_slice %158 {offsets = [0, 0, 16], sizes = [1, 8, 8], strides = [1, 1, 1]} : vector<1x8x32xbf16> to vector<1x8x8xbf16>
    %210 = vector.extract_strided_slice %160 {offsets = [0, 0, 16], sizes = [1, 8, 8], strides = [1, 1, 1]} : vector<1x8x32xbf16> to vector<1x8x8xbf16>
    "tpu.trace_start"() <{level = 10 : i32, message = "bqd,bkd->bqk"}> : () -> ()
    %cst_60 = arith.constant dense<0.000000e+00> : vector<1x8x8xf32>
    %211 = tpu.matmul %208, %209, %cst_60 {dimension_numbers = #tpu.dot_dimension_numbers<[2], [2], [1], [1], [0, 0, 0, 1, 1, 1], [0], [0]>} : vector<1x8x8xbf16>, vector<1x8x8xbf16>, vector<1x8x8xf32> -> vector<1x8x8xf32>
    "tpu.trace_stop"() : () -> ()
    %cst_61 = arith.constant dense<0xFF800000> : vector<1x8xf32>
    %212 = vector.multi_reduction <maximumf>, %211, %cst_61 [2] : vector<1x8x8xf32> to vector<1x8xf32>
    %213 = vector.shape_cast %212 : vector<1x8xf32> to vector<1x8x1xf32>
    %214 = vector.broadcast %213 : vector<1x8x1xf32> to vector<1x8x8xf32>
    %215 = arith.subf %211, %214 : vector<1x8x8xf32>
    %216 = math.exp %215 : vector<1x8x8xf32>
    %cst_62 = arith.constant dense<0.000000e+00> : vector<1x8xf32>
    %217 = vector.multi_reduction <add>, %216, %cst_62 [2] : vector<1x8x8xf32> to vector<1x8xf32>
    %218 = vector.shape_cast %217 : vector<1x8xf32> to vector<1x8x1xf32>
    %219 = tpu.reciprocal %218 {approx = true} : vector<1x8x1xf32> -> vector<1x8x1xf32>
    %220 = vector.broadcast %219 : vector<1x8x1xf32> to vector<1x8x8xf32>
    %221 = arith.mulf %216, %220 : vector<1x8x8xf32>
    %222 = arith.truncf %221 : vector<1x8x8xf32> to vector<1x8x8xbf16>
    "tpu.trace_start"() <{level = 10 : i32, message = "bqk,bkd->bqd"}> : () -> ()
    %cst_63 = arith.constant dense<0.000000e+00> : vector<1x8x8xf32>
    %223 = tpu.matmul %222, %210, %cst_63 {dimension_numbers = #tpu.dot_dimension_numbers<[2], [1], [1], [2], [0, 0, 0, 1, 1, 2], [0], [0]>} : vector<1x8x8xbf16>, vector<1x8x8xbf16>, vector<1x8x8xf32> -> vector<1x8x8xf32>
    "tpu.trace_stop"() : () -> ()
    %224 = vector.shape_cast %223 : vector<1x8x8xf32> to vector<8x8xf32>
    %225 = arith.truncf %224 : vector<8x8xf32> to vector<8x8xbf16>
    %226 = vector.extract_strided_slice %161 {offsets = [2, 0, 0], sizes = [1, 8, 32], strides = [1, 1, 1]} : vector<4x8x32xbf16> to vector<1x8x32xbf16>
    %227 = vector.shape_cast %226 : vector<1x8x32xbf16> to vector<8x32xbf16>
    %cst_64 = arith.constant dense<0.000000e+00> : vector<8x32xf32>
    %228 = tpu.matmul %225, %227, %cst_64 {dimension_numbers = #tpu.dot_dimension_numbers<[1], [0], [0], [1], [0, 0, 1, 1], [], []>} : vector<8x8xbf16>, vector<8x32xbf16>, vector<8x32xf32> -> vector<8x32xf32>
    %229 = arith.addf %207, %228 : vector<8x32xf32>
    %230 = vector.extract_strided_slice %156 {offsets = [0, 0, 24], sizes = [1, 8, 8], strides = [1, 1, 1]} : vector<1x8x32xbf16> to vector<1x8x8xbf16>
    %231 = vector.extract_strided_slice %158 {offsets = [0, 0, 24], sizes = [1, 8, 8], strides = [1, 1, 1]} : vector<1x8x32xbf16> to vector<1x8x8xbf16>
    %232 = vector.extract_strided_slice %160 {offsets = [0, 0, 24], sizes = [1, 8, 8], strides = [1, 1, 1]} : vector<1x8x32xbf16> to vector<1x8x8xbf16>
    "tpu.trace_start"() <{level = 10 : i32, message = "bqd,bkd->bqk"}> : () -> ()
    %cst_65 = arith.constant dense<0.000000e+00> : vector<1x8x8xf32>
    %233 = tpu.matmul %230, %231, %cst_65 {dimension_numbers = #tpu.dot_dimension_numbers<[2], [2], [1], [1], [0, 0, 0, 1, 1, 1], [0], [0]>} : vector<1x8x8xbf16>, vector<1x8x8xbf16>, vector<1x8x8xf32> -> vector<1x8x8xf32>
    "tpu.trace_stop"() : () -> ()
    %cst_66 = arith.constant dense<0xFF800000> : vector<1x8xf32>
    %234 = vector.multi_reduction <maximumf>, %233, %cst_66 [2] : vector<1x8x8xf32> to vector<1x8xf32>
    %235 = vector.shape_cast %234 : vector<1x8xf32> to vector<1x8x1xf32>
    %236 = vector.broadcast %235 : vector<1x8x1xf32> to vector<1x8x8xf32>
    %237 = arith.subf %233, %236 : vector<1x8x8xf32>
    %238 = math.exp %237 : vector<1x8x8xf32>
    %cst_67 = arith.constant dense<0.000000e+00> : vector<1x8xf32>
    %239 = vector.multi_reduction <add>, %238, %cst_67 [2] : vector<1x8x8xf32> to vector<1x8xf32>
    %240 = vector.shape_cast %239 : vector<1x8xf32> to vector<1x8x1xf32>
    %241 = tpu.reciprocal %240 {approx = true} : vector<1x8x1xf32> -> vector<1x8x1xf32>
    %242 = vector.broadcast %241 : vector<1x8x1xf32> to vector<1x8x8xf32>
    %243 = arith.mulf %238, %242 : vector<1x8x8xf32>
    %244 = arith.truncf %243 : vector<1x8x8xf32> to vector<1x8x8xbf16>
    "tpu.trace_start"() <{level = 10 : i32, message = "bqk,bkd->bqd"}> : () -> ()
    %cst_68 = arith.constant dense<0.000000e+00> : vector<1x8x8xf32>
    %245 = tpu.matmul %244, %232, %cst_68 {dimension_numbers = #tpu.dot_dimension_numbers<[2], [1], [1], [2], [0, 0, 0, 1, 1, 2], [0], [0]>} : vector<1x8x8xbf16>, vector<1x8x8xbf16>, vector<1x8x8xf32> -> vector<1x8x8xf32>
    "tpu.trace_stop"() : () -> ()
    %246 = vector.shape_cast %245 : vector<1x8x8xf32> to vector<8x8xf32>
    %247 = arith.truncf %246 : vector<8x8xf32> to vector<8x8xbf16>
    %248 = vector.extract_strided_slice %161 {offsets = [3, 0, 0], sizes = [1, 8, 32], strides = [1, 1, 1]} : vector<4x8x32xbf16> to vector<1x8x32xbf16>
    %249 = vector.shape_cast %248 : vector<1x8x32xbf16> to vector<8x32xbf16>
    %cst_69 = arith.constant dense<0.000000e+00> : vector<8x32xf32>
    %250 = tpu.matmul %247, %249, %cst_69 {dimension_numbers = #tpu.dot_dimension_numbers<[1], [0], [0], [1], [0, 0, 1, 1], [], []>} : vector<8x8xbf16>, vector<8x32xbf16>, vector<8x32xf32> -> vector<8x32xf32>
    %251 = arith.addf %229, %250 : vector<8x32xf32>
    %252 = vector.broadcast %162 : vector<1x32xf32> to vector<8x32xf32>
    %253 = arith.addf %251, %252 : vector<8x32xf32>
    %254 = arith.addf %141, %253 : vector<8x32xf32>
    %255 = vector.extract_strided_slice %0 {offsets = [9, 0], sizes = [1, 32], strides = [1, 1]} : vector<16x96xf32> to vector<1x32xf32>
    %256 = vector.extract_strided_slice %0 {offsets = [10, 0], sizes = [1, 32], strides = [1, 1]} : vector<16x96xf32> to vector<1x32xf32>
    %cst_70 = arith.constant dense<0.000000e+00> : vector<8xf32>
    %257 = vector.multi_reduction <add>, %254, %cst_70 [1] : vector<8x32xf32> to vector<8xf32>
    %258 = vector.shape_cast %257 : vector<8xf32> to vector<8x1xf32>
    %cst_71 = arith.constant 3.200000e+01 : f32
    %259 = vector.broadcast %cst_71 : f32 to vector<8x1xf32>
    %260 = arith.divf %258, %259 : vector<8x1xf32>
    %261 = vector.broadcast %260 : vector<8x1xf32> to vector<8x32xf32>
    %262 = arith.subf %254, %261 : vector<8x32xf32>
    %263 = arith.mulf %262, %262 : vector<8x32xf32>
    %cst_72 = arith.constant dense<0.000000e+00> : vector<8xf32>
    %264 = vector.multi_reduction <add>, %263, %cst_72 [1] : vector<8x32xf32> to vector<8xf32>
    %265 = vector.shape_cast %264 : vector<8xf32> to vector<8x1xf32>
    %cst_73 = arith.constant 3.200000e+01 : f32
    %266 = vector.broadcast %cst_73 : f32 to vector<8x1xf32>
    %267 = arith.divf %265, %266 : vector<8x1xf32>
    %268 = vector.broadcast %260 : vector<8x1xf32> to vector<8x32xf32>
    %269 = arith.subf %254, %268 : vector<8x32xf32>
    %cst_74 = arith.constant 9.99999974E-6 : f32
    %270 = vector.broadcast %cst_74 : f32 to vector<8x1xf32>
    %271 = arith.addf %267, %270 : vector<8x1xf32>
    %272 = math.rsqrt %271 : vector<8x1xf32>
    %273 = vector.broadcast %272 : vector<8x1xf32> to vector<8x32xf32>
    %274 = arith.mulf %269, %273 : vector<8x32xf32>
    %275 = vector.broadcast %255 : vector<1x32xf32> to vector<8x32xf32>
    %276 = arith.mulf %274, %275 : vector<8x32xf32>
    %277 = vector.broadcast %256 : vector<1x32xf32> to vector<8x32xf32>
    %278 = arith.addf %276, %277 : vector<8x32xf32>
    %279 = vector.extract_strided_slice %0 {offsets = [5, 0], sizes = [1, 64], strides = [1, 1]} : vector<16x96xf32> to vector<1x64xf32>
    %cst_75 = arith.constant 0.000000e+00 : f32
    %280 = vector.broadcast %cst_75 : f32 to vector<8x32xf32>
    %c0_76 = arith.constant 0 : index
    %c0_77 = arith.constant 0 : index
    %281 = vector.load %arg9[%c0_76, %c0_77] : memref<32x64xbf16, #tpu.memory_space<vmem>>, vector<32x64xbf16>
    %282 = arith.truncf %278 : vector<8x32xf32> to vector<8x32xbf16>
    %cst_78 = arith.constant dense<0.000000e+00> : vector<8x64xf32>
    %283 = tpu.matmul %282, %281, %cst_78 {dimension_numbers = #tpu.dot_dimension_numbers<[1], [0], [0], [1], [0, 0, 1, 1], [], []>} : vector<8x32xbf16>, vector<32x64xbf16>, vector<8x64xf32> -> vector<8x64xf32>
    %284 = vector.broadcast %279 : vector<1x64xf32> to vector<8x64xf32>
    %285 = arith.addf %283, %284 : vector<8x64xf32>
    %cst_79 = arith.constant 0.000000e+00 : f32
    %286 = vector.broadcast %cst_79 : f32 to vector<8x64xf32>
    %287 = arith.maximumf %285, %286 : vector<8x64xf32>
    %288 = arith.truncf %287 : vector<8x64xf32> to vector<8x64xbf16>
    %c0_80 = arith.constant 0 : index
    %c0_81 = arith.constant 0 : index
    %289 = vector.load %arg10[%c0_80, %c0_81] : memref<64x32xbf16, #tpu.memory_space<vmem>>, vector<64x32xbf16>
    %cst_82 = arith.constant dense<0.000000e+00> : vector<8x32xf32>
    %290 = tpu.matmul %288, %289, %cst_82 {dimension_numbers = #tpu.dot_dimension_numbers<[1], [0], [0], [1], [0, 0, 1, 1], [], []>} : vector<8x64xbf16>, vector<64x32xbf16>, vector<8x32xf32> -> vector<8x32xf32>
    %291 = arith.addf %280, %290 : vector<8x32xf32>
    %292 = vector.extract_strided_slice %0 {offsets = [6, 0], sizes = [1, 32], strides = [1, 1]} : vector<16x96xf32> to vector<1x32xf32>
    %293 = vector.broadcast %292 : vector<1x32xf32> to vector<8x32xf32>
    %294 = arith.addf %291, %293 : vector<8x32xf32>
    %295 = arith.addf %278, %294 : vector<8x32xf32>
    %296 = vector.extract_strided_slice %0 {offsets = [11, 0], sizes = [1, 32], strides = [1, 1]} : vector<16x96xf32> to vector<1x32xf32>
    %297 = vector.extract_strided_slice %0 {offsets = [12, 0], sizes = [1, 32], strides = [1, 1]} : vector<16x96xf32> to vector<1x32xf32>
    %cst_83 = arith.constant dense<0.000000e+00> : vector<8xf32>
    %298 = vector.multi_reduction <add>, %295, %cst_83 [1] : vector<8x32xf32> to vector<8xf32>
    %299 = vector.shape_cast %298 : vector<8xf32> to vector<8x1xf32>
    %cst_84 = arith.constant 3.200000e+01 : f32
    %300 = vector.broadcast %cst_84 : f32 to vector<8x1xf32>
    %301 = arith.divf %299, %300 : vector<8x1xf32>
    %302 = vector.broadcast %301 : vector<8x1xf32> to vector<8x32xf32>
    %303 = arith.subf %295, %302 : vector<8x32xf32>
    %304 = arith.mulf %303, %303 : vector<8x32xf32>
    %cst_85 = arith.constant dense<0.000000e+00> : vector<8xf32>
    %305 = vector.multi_reduction <add>, %304, %cst_85 [1] : vector<8x32xf32> to vector<8xf32>
    %306 = vector.shape_cast %305 : vector<8xf32> to vector<8x1xf32>
    %cst_86 = arith.constant 3.200000e+01 : f32
    %307 = vector.broadcast %cst_86 : f32 to vector<8x1xf32>
    %308 = arith.divf %306, %307 : vector<8x1xf32>
    %309 = vector.broadcast %301 : vector<8x1xf32> to vector<8x32xf32>
    %310 = arith.subf %295, %309 : vector<8x32xf32>
    %cst_87 = arith.constant 9.99999974E-6 : f32
    %311 = vector.broadcast %cst_87 : f32 to vector<8x1xf32>
    %312 = arith.addf %308, %311 : vector<8x1xf32>
    %313 = math.rsqrt %312 : vector<8x1xf32>
    %314 = vector.broadcast %313 : vector<8x1xf32> to vector<8x32xf32>
    %315 = arith.mulf %310, %314 : vector<8x32xf32>
    %316 = vector.broadcast %296 : vector<1x32xf32> to vector<8x32xf32>
    %317 = arith.mulf %315, %316 : vector<8x32xf32>
    %318 = vector.broadcast %297 : vector<1x32xf32> to vector<8x32xf32>
    %319 = arith.addf %317, %318 : vector<8x32xf32>
    %320 = vector.shape_cast %319 : vector<8x32xf32> to vector<1x8x32xf32>
    %c0_88 = arith.constant 0 : index
    %c0_89 = arith.constant 0 : index
    %c0_90 = arith.constant 0 : index
    %321 = vector.load %arg12[%c0_88, %c0_89, %c0_90] : memref<1x8x32xf32, #tpu.memory_space<vmem>>, vector<1x8x32xf32>
    tpu.vector_store %arg12[%c0_88, %c0_89, %c0_90], %320 {strides = array<i32>} : memref<1x8x32xf32, #tpu.memory_space<vmem>>, vector<1x8x32xf32>,
    return
  }
  func.func @transform_0(%arg0: i32) -> (i32, i32, i32) {
    %c0_i32 = arith.constant 0 : i32
    %c0_i32_0 = arith.constant 0 : i32
    %c0_i32_1 = arith.constant 0 : i32
    return %arg0, %c0_i32, %c0_i32_0 : i32, i32, i32
  }
  func.func @transform_1(%arg0: i32) -> (i32, i32, i32) {
    %c0_i32 = arith.constant 0 : i32
    %c0_i32_0 = arith.constant 0 : i32
    %c0_i32_1 = arith.constant 0 : i32
    return %arg0, %c0_i32, %c0_i32_0 : i32, i32, i32
  }
  func.func @transform_2(%arg0: i32) -> (i32, i32) {
    %c0_i32 = arith.constant 0 : i32
    %c0_i32_0 = arith.constant 0 : i32
    %c0_i32_1 = arith.constant 0 : i32
    return %c0_i32, %c0_i32_0 : i32, i32
  }
  func.func @transform_3(%arg0: i32) -> (i32, i32) {
    %c0_i32 = arith.constant 0 : i32
    %c0_i32_0 = arith.constant 0 : i32
    %c0_i32_1 = arith.constant 0 : i32
    return %c0_i32, %c0_i32_0 : i32, i32
  }
  func.func @transform_4(%arg0: i32) -> (i32, i32, i32) {
    %c0_i32 = arith.constant 0 : i32
    %c0_i32_0 = arith.constant 0 : i32
    %c0_i32_1 = arith.constant 0 : i32
    %c0_i32_2 = arith.constant 0 : i32
    return %c0_i32, %c0_i32_0, %c0_i32_1 : i32, i32, i32
  }
  func.func @transform_5(%arg0: i32) -> (i32, i32) {
    %c0_i32 = arith.constant 0 : i32
    %c0_i32_0 = arith.constant 0 : i32
    %c0_i32_1 = arith.constant 0 : i32
    return %c0_i32, %c0_i32_0 : i32, i32
  }
  func.func @transform_6(%arg0: i32) -> (i32, i32) {
    %c0_i32 = arith.constant 0 : i32
    %c0_i32_0 = arith.constant 0 : i32
    %c0_i32_1 = arith.constant 0 : i32
    return %c0_i32, %c0_i32_0 : i32, i32
  }
  func.func @transform_7(%arg0: i32) -> (i32, i32, i32) {
    %c0_i32 = arith.constant 0 : i32
    %c0_i32_0 = arith.constant 0 : i32
    %c0_i32_1 = arith.constant 0 : i32
    %c0_i32_2 = arith.constant 0 : i32
    return %c0_i32, %c0_i32_0, %c0_i32_1 : i32, i32, i32
  }
  func.func @transform_8(%arg0: i32) -> (i32, i32) {
    %c0_i32 = arith.constant 0 : i32
    %c0_i32_0 = arith.constant 0 : i32
    %c0_i32_1 = arith.constant 0 : i32
    return %c0_i32, %c0_i32_0 : i32, i32
  }
  func.func @transform_9(%arg0: i32) -> (i32, i32) {
    %c0_i32 = arith.constant 0 : i32
    %c0_i32_0 = arith.constant 0 : i32
    %c0_i32_1 = arith.constant 0 : i32
    return %c0_i32, %c0_i32_0 : i32, i32
  }
  func.func @transform_10(%arg0: i32) -> (i32, i32) {
    %c0_i32 = arith.constant 0 : i32
    %c0_i32_0 = arith.constant 0 : i32
    %c0_i32_1 = arith.constant 0 : i32
    return %c0_i32, %c0_i32_0 : i32, i32
  }
  func.func @transform_11(%arg0: i32) -> (i32, i32, i32) {
    %c0_i32 = arith.constant 0 : i32
    %c0_i32_0 = arith.constant 0 : i32
    %c0_i32_1 = arith.constant 0 : i32
    return %arg0, %c0_i32, %c0_i32_0 : i32, i32, i32
  }
}

</mosaic_0001>

<bundles_post_ra>
// kernel: tpu_custom_call.1
= control target key start
LH: loop header
LB: loop body
LE: loop exit
PB: predicated region body
PF: predicated region fallthrough
CT: control target
= control target key end

     0   :  { %16 = vsyncpa [#allocation3], 0  ;;  %s3629_s0 = inlined_call_operand.vmem [shape: f32[2,8,32], index: 0, kind: input, shape index: {}]   ;;  %s3630_s1 = inlined_call_operand.vmem [shape: f32[2,8,32], index: 1, kind: input, shape index: {}]   ;;  %s3631_s2 = inlined_call_operand.hbm [shape: f32[8,8], index: 2, kind: input, shape index: {}]   ;;  %s3632_s3 = inlined_call_operand.vmem [shape: bf16[32,96], index: 3, kind: input, shape index: {}]   ;;  %s3633_s4 = inlined_call_operand.hbm [shape: bf16[4,8,32], index: 4, kind: input, shape index: {}]   ;;  %s3634_s5 = inlined_call_operand.hbm [shape: bf16[32,32], index: 5, kind: input, shape index: {}]   ;;  %s3635_s6 = inlined_call_operand.hbm [shape: bf16[32,64], index: 6, kind: input, shape index: {}]   ;;  %s3636_s7 = inlined_call_operand.hbm [shape: bf16[4,8,32], index: 7, kind: input, shape index: {}]   ;;  %s3637_s8 = inlined_call_operand.hbm [shape: bf16[32,64], index: 8, kind: input, shape index: {}]   ;;  %s3638_s9 = inlined_call_operand.vmem [shape: bf16[64,32], index: 9, kind: input, shape index: {}]   ;;  %s3639_s10 = inlined_call_operand.vmem [shape: f32[16,96], index: 10, kind: input, shape index: {}]   ;;  %s3640_s11 = inlined_call_operand.hbm [shape: f32[2,8,32], index: 11, kind: output, shape index: {}]  }
   0x1   :  { %17 = vsyncpa [#allocation6], 0 }
   0x2   :  { %18 = vsyncpa [#allocation9], 0 }
   0x3   :  { %19 = vsyncpa [#allocation12], 0 }
   0x4   :  { %20 = vsyncpa [#allocation4], 0 }
   0x5   :  { %22 = vsyncpa [#allocation4 + $0x1], 0  ;;  %s3128_s17 = smov 0   ;;  %s3130_s18 = smov 0  }
   0x6   :  { %s3132_s19 = smov 0   ;;  %s3134_s20 = smov 0  }
   0x7 LB: > { %3647 = sst [smem:[#allocation19_spill]] %s3040_s19  ;;  %s3149_s21 = sadd.s32 4294967295, %s3044_s20   ;;  %s3044_s20 = sphi %s3134_s20, %s3664_s20   ;;  %s3040_s19 = sphi %s3132_s19, %s3666_s19   ;;  %s3036_s18 = sphi %s3130_s18, %s3668_s18   ;;  %s3032_s17 = sphi %s3128_s17, %s3667_s17  }
   0x8   : > { %s2329_s22 = sadd.s32 4294967294, %s3044_s20   ;;  %s3153_s23 = sadd.s32 1, %s3044_s20  }
   0x9   : > { %3648 = sst [smem:[#allocation20_spill]] %s3153_s23  ;;  %s276_s24 = sadd.s32 1, %s3040_s19 }
   0xa   : > { %s273_s25 = ssub.s32 %s3044_s20, %s3153_s23  ;;  %p286_p0 = scmp.ne.s32.totalorder %s3040_s19, %s3036_s18 }
   0xb   : > { %p274_p1 = scmp.eq.s32.totalorder %s273_s25, 0  ;;  %p287_p2 = scmp.eq.s32.totalorder %s3149_s21, 1 }
   0xc   : > { %p292_p3 = scmp.ne.s32.totalorder %s3036_s18, %s3032_s17  ;;  %p293_p4 = scmp.eq.s32.totalorder %s2329_s22, 1 }
   0xd   : > { %s3164_s26 = scalar_select %p274_p1, %s3040_s19, %s276_s24  }
   0xe   : > { %p3166_p5 = por %p287_p2, %p286_p0  ;;  %p3170_p6 = por %p293_p4, %p292_p3 }
   0xf   : > { %3649 = sst [smem:[#allocation21_spill]] %s3164_s26  ;;  %p2330_p7 = scmp.ge.s32.totalorder %s3044_s20, 1 }
  0x10   : > { %p300_p8 = scmp.lt.s32.totalorder %s3044_s20, 3  ;;  %p3644_p9 = scmp.eq.s32.totalorder %s3149_s21, 0 }
  0x11   : > { %s3046_s30 = smov [#allocation5]   ;;  %s3047_s14 = smov [#allocation8]  }
  0x12   : > { %p3177_p10 = pnand %p2330_p7, %p300_p8  ;;  %s326_s12 = sshll.u32 %s3046_s30, 4  ;;  %s327_s12 = int_to_ptr.vmem [resolvable:$true] %s326_s12 }
  0x13   : > { %s352_s15 = sshll.u32 %s3047_s14, 4  ;;  %s3048_s16 = smov [#allocation2]   ;;  %s353_s15 = int_to_ptr.vmem [resolvable:$true] %s352_s15 }
  0x14   : > { %p2672_p11 = pneg %p3177_p10  ;;  %s313_s22 = sshll.u32 %s3048_s16, 4  ;;  %s314_s22 = int_to_ptr.vmem [resolvable:$true] %s313_s22 }
  0x15   : > { %s2823_s25 = scalar_lea.vmem %s327_s12, 256  ;;  %p2831_p3 = scmp.lt.s32.totalorder %s327_s12, %s327_s12 }
  0x16   : > { %p3185_p12 = pnand %p3644_p9, %p2672_p11  ;;  %p2824_p0 = scmp.ne.s32.totalorder %s327_s12, %s2823_s25 }
  0x17   : > { %p2832_p4 = scmp.lt.s32.totalorder %s2823_s25, %s2823_s25 }
  0x18   : > { %p3191_p13 = pneg %p3185_p12 }
  0x19   : > { %p2833_p7 = por %p2832_p4, %p2831_p3 }
  0x1a   : > { %p2826_p1 = pnand %p2824_p0, %p3191_p13 }
  0x1c   : > { %p2827_p2 = pneg %p2826_p1 }
  0x1e   : > { %p2834_p8 = pnand %p2833_p7, %p2827_p2 }
  0x20   : > { %2837 = shalt.err (!%p2834_p8)
}
  0x21   : > { %s3645_s30 = smov 64   ;;  %s3050_s14 = smov 4  }
  0x22   : > { %2678 = dma.hbm_to_vmem [thread:$0]  (!%p3185_p12), %s3633_s4, 256, %s327_s12, [#allocation6], %s3645_s30, %s3645_s30, %s3050_s14  }
  0x23   : > { %s2849_s19 = scalar_lea.vmem %s353_s15, 256  ;;  %p2857_p3 = scmp.lt.s32.totalorder %s353_s15, %s353_s15 }
  0x24   : > { %p2850_p11 = scmp.ne.s32.totalorder %s353_s15, %s2849_s19  ;;  %p2858_p2 = scmp.lt.s32.totalorder %s2849_s19, %s2849_s19 }
  0x26   : > { %p2852_p0 = pnand %p2850_p11, %p3191_p13  ;;  %p2859_p4 = por %p2858_p2, %p2857_p3 }
  0x28   : > { %p2853_p1 = pneg %p2852_p0 }
  0x2a   : > { %p2860_p7 = pnand %p2859_p4, %p2853_p1 }
  0x2c   : > { %2863 = shalt.err (!%p2860_p7)
}
  0x2d   : > { %2684 = dma.hbm_to_vmem [thread:$0]  (!%p3185_p12), %s3635_s6, 256, %s353_s15, [#allocation9], %s3645_s30, %s3645_s30, %s3050_s14  }
  0x2e   : > { %s2875_s26 = scalar_lea.vmem %s314_s22, 128  ;;  %p2883_p9 = scmp.lt.s32.totalorder %s314_s22, %s314_s22 }
  0x2f   : > { %p2876_p8 = scmp.ne.s32.totalorder %s314_s22, %s2875_s26  ;;  %p2884_p3 = scmp.lt.s32.totalorder %s2875_s26, %s2875_s26 }
  0x31   : > { %p2878_p11 = pnand %p2876_p8, %p3191_p13  ;;  %p2885_p1 = por %p2884_p3, %p2883_p9 }
  0x33   : > { %p2879_p0 = pneg %p2878_p11 }
  0x35   : > { %p2886_p2 = pnand %p2885_p1, %p2879_p0 }
  0x37   : > { %2889 = shalt.err (!%p2886_p2)
}
  0x38   : > { %2675 = dma.hbm_to_vmem [thread:$0]  (!%p3185_p12), %s3631_s2, 128, %s314_s22, [#allocation3]  }
  0x39   : > { %s3051_s23 = smov [#allocation7]   ;;  %s3052_s16 = smov [#allocation10]  }
  0x3a   : > { %s339_s15 = sshll.u32 %s3051_s23, 4  ;;  %s365_s25 = sshll.u32 %s3052_s16, 4  ;;  %s340_s15 = int_to_ptr.vmem [resolvable:$true] %s339_s15  ;;  %s366_s25 = int_to_ptr.vmem [resolvable:$true] %s365_s25 }
  0x3b   : > { %s2901_s30 = scalar_lea.vmem %s340_s15, 256  ;;  %p2909_p9 = scmp.lt.s32.totalorder %s340_s15, %s340_s15 }
  0x3c   : > { %p2902_p4 = scmp.ne.s32.totalorder %s340_s15, %s2901_s30  ;;  %p2910_p11 = scmp.lt.s32.totalorder %s2901_s30, %s2901_s30 }
  0x3e   : > { %p2904_p7 = pnand %p2902_p4, %p3191_p13  ;;  %p2911_p0 = por %p2910_p11, %p2909_p9 }
  0x40   : > { %p2905_p8 = pneg %p2904_p7 }
  0x42   : > { %p2912_p3 = pnand %p2911_p0, %p2905_p8 }
  0x44   : > { %2915 = shalt.err (!%p2912_p3)
}
  0x45   : > { %s3655_s26 = smov 64   ;;  %s2927_s12 = scalar_lea.vmem %s366_s25, 256 }
  0x46   : > { %2681 = dma.hbm_to_vmem [thread:$0]  (!%p3185_p12), %s3634_s5, 256, %s340_s15, [#allocation6], %s3655_s26, %s3655_s26, %s3050_s14  }
  0x47   : > { %p2928_p1 = scmp.ne.s32.totalorder %s366_s25, %s2927_s12  ;;  %p2935_p7 = scmp.lt.s32.totalorder %s366_s25, %s366_s25 }
  0x48   : > { %p2936_p9 = scmp.lt.s32.totalorder %s2927_s12, %s2927_s12 }
  0x49   : > { %p2930_p2 = pnand %p2928_p1, %p3191_p13 }
  0x4a   : > { %p2937_p8 = por %p2936_p9, %p2935_p7 }
  0x4b   : > { %p2931_p4 = pneg %p2930_p2 }
  0x4d   : > { %p2938_p11 = pnand %p2937_p8, %p2931_p4 }
  0x4f   : > { %2941 = shalt.err (!%p2938_p11)
}
  0x50   : > { %2687 = dma.hbm_to_vmem [thread:$0]  (!%p3185_p12), %s3636_s7, 256, %s366_s25, [#allocation9], %s3655_s26, %s3655_s26, %s3050_s14  }
  0x51   : > { %s3053_s15 = smov [#allocation11]  }
  0x52   : > { %s378_s16 = sshll.u32 %s3053_s15, 4  ;;  %s379_s16 = int_to_ptr.vmem [resolvable:$true] %s378_s16 }
  0x53   : > { %s2953_s22 = scalar_lea.vmem %s379_s16, 256  ;;  %p2961_p2 = scmp.lt.s32.totalorder %s379_s16, %s379_s16 }
  0x54   : > { %p2954_p0 = scmp.ne.s32.totalorder %s379_s16, %s2953_s22  ;;  %p2962_p4 = scmp.lt.s32.totalorder %s2953_s22, %s2953_s22 }
  0x56   : > { %p2956_p3 = pnand %p2954_p0, %p3191_p13  ;;  %p2963_p7 = por %p2962_p4, %p2961_p2 }
  0x58   : > { %p2957_p1 = pneg %p2956_p3 }
  0x5a   : > { %p2964_p9 = pnand %p2963_p7, %p2957_p1 }
  0x5c   : > { %2967 = shalt.err (!%p2964_p9)
}
  0x5d   : > { %2690 = dma.hbm_to_vmem [thread:$0]  (!%p3185_p12), %s3637_s8, 256, %s379_s16, [#allocation12], %s3655_s26, %s3655_s26, %s3050_s14  }
  0x5e   : > { %414 = sbr.rel (%p3177_p10) target bundleno = 6355 (0x18d3), region = 64  ;;  %p3656_p13 = scmp.eq.s32.totalorder (!%p3177_p10), %s3149_s21, 0 }
  0x63   : > { %3011 = dma.done.wait (%p3656_p13), [#allocation3], 128   ;;  %p3657_p8 = pmov %p3656_p13 }
  0x65   : > { %3013 = vsyncadd (%p3657_p8), [#allocation3], 4294967168  ;;  %p3658_p11 = pmov %p3657_p8 }
  0x66   : > { %p3659_p0 = pmov %p3657_p8 }
  0x67   : > { %3015 = dma.done.wait (%p3658_p11), [#allocation6], 512  }
  0x68   : > { %3017 = vsyncadd (%p3659_p0), [#allocation6], 4294966784  ;;  %p3660_p3 = pmov %p3659_p0 }
  0x69   : > { %p3661_p12 = pmov %p3659_p0 }
  0x6a   : > { %3019 = dma.done.wait (%p3660_p3), [#allocation9], 512  }
  0x6b   : > { %3021 = vsyncadd (%p3661_p12), [#allocation9], 4294966784  ;;  %p3662_p10 = pmov %p3659_p0 }
  0x6c   : > { %p3663_p1 = pmov %p3659_p0 }
  0x6d   : > { %3023 = dma.done.wait (%p3662_p10), [#allocation12], 256  }
  0x6e   : > { %3025 = vsyncadd (%p3663_p1), [#allocation12], 4294967040  ;;  %p477_p2 = scmp.lt.s32.totalorder %s3149_s21, 1  ;;  %v3054_v0 = vmov 0.0   ;;  %vm3055_vm0 = vmmov 0   ;;  %v2761_v1 = vld [vmem:[%s3632_s3 + $0x8] sm:$0xff]   ;;  %v496_v5 = vlaneseq }
  0x6f   : > { %2458 = vmatprep.subr.bf16.mxu1 %v3054_v0  ;;  %2462 = vmatprep.mubr.msk.bf16.mxu1 %vm3055_vm0, %v3054_v0  ;;  %v2762_v2 = vld [vmem:[%s3632_s3] sm:$0xff]   ;;  %vm512_vm1 = vcmask 261120   ;;  %s3056_s19 = smov 120   ;;  %s3057_s25 = smov 96   ;;  %vm564_vm2 = vcmask 64512   ;;  %vm628_vm3 = vcmask 1043456  }
  0x70   : > { %s3275_s29 = scalar_select %p477_p2, %s3149_s21, 1  ;;  %2472 = vmatprep.subr.bf16.mxu0 %v3054_v0  ;;  %2474 = vmatprep.mubr.msk.bf16.mxu0 %vm3055_vm0, %v3054_v0  ;;  %v3301_v6 = vshrl.u32 %v496_v5, 7  ;;  %v3307_v8 = vld [vmem:[%s3639_s10] sm:$0xff]  ;;  %v557_v56 = vld [vmem:[#allocation5] sm:$0xf]  ;;  %vm2115_vm4 = vcmask 523264  }
  0x71   : > { %2459 = vmatpush3.bf16.msra.mxu1 %v2761_v1  ;;  %s3058_s24 = smov 88   ;;  %v3331_v21 = vld [vmem:[#allocation2] sm:$0xff]  ;;  %s3059_s14 = smov 64   ;;  %v834_v57 = vsel %vm628_vm3, %v557_v56, 0  ;;  %v558_v58 = vld [vmem:[#allocation5 + $0x4] sm:$0xf] }
  0x72   : > { %s2346_s13 = sshll.u32 %s3275_s29, 3  ;;  %2460 = vmatprep.subr.bf16.mxu1 %v3054_v0  ;;  %v498_v7 = vsub.s32 0, %v3301_v6  ;;  %s3061_s12 = smov 112   ;;  %v788_v59 = vsel %vm628_vm3, %v558_v58, 0 }
  0x73   : > { %s480_s26 = scalar_lea.vmem %s3629_s0, %s2346_s13  ;;  %s3062_s30 = smov 80  }
  0x74   : > { %v3292_v3 = vld [vmem:[%s480_s26] sm:$0xff]  ;;  %v499_v9 = vrot.slane %v3307_v8, %v498_v7  ;;  %s3060_s26 = smov 56   ;;  %s3063_s23 = smov 72  }
  0x75   : > { %v495_v4 = vpack.c.bf16 %v3292_v3, %v3292_v3  ;;  %2461 = vmatpush3.bf16.msra.mxu1 %v2762_v2  ;;  %s3064_s15 = smov 104   ;;  %s3065_s16 = smov 48  }
  0x76   : > { %2466 = vmatprep.subr.bf16.mxu1 %v3054_v0  ;;  %s3066_s22 = smov 40  }
  0x78   : > { %2463 = vmatmul.mubr.msk.bf16.vlgmr.msra.gmra.mxu1 %vm512_vm1, %v495_v4 }
  0x79   : > { %2468 = vmatprep.mubr.msk.bf16.mxu1 %vm3055_vm0, %v3054_v0 }
 0x138   : > { %v550_v10 = vpop.f32.mrf.mxu1 }
 0x139   : > { %v551_v11 = vadd.f32 %v550_v10, %v499_v9 }
 0x13a   : > { %v2464_v12 = vpop.f32.mrf.mxu1 }
 0x13b   : > { %v3312_v13 = vpack.c.bf16 %v551_v11, %v551_v11 }
 0x13c   : > { %v553_v14 = vpop.f32.mrf.mxu1 }
 0x13d   : > { %673 = vrot.lane.b32.xlu1 %v3312_v13, %s3056_s19  ;;  %562 = vrot.lane.b32.xlu0 %v3312_v13, %s3057_s25 }
 0x13e   : > { %v2465_v15 = vpop.f32.mrf.mxu1 }
 0x141   : > { %675 = vrot.lane.b32.xlu0 %v3312_v13, %s3058_s24 }
 0x1af   : > { %v563_v16 = vpop.permute.xlu0 %562  ;;  %v674_v20 = vpop.permute.xlu1 %673 }
 0x1b0   : > { %v569_v17 = vsel %vm564_vm2, %v563_v16, 0 }
 0x1b1   : > { %2467 = vmatpush3.bf16.xpose.msra.mxu1 %v569_v17 }
 0x1b2   : > { %2478 = vmatprep.subr.bf16.mxu1 %v3054_v0 }
 0x1b3   : > { %v676_v18 = vpop.permute.xlu0 %675 }
 0x1b4   : > { %v681_v19 = vsel %vm564_vm2, %v676_v18, 0 }
 0x1b8   : > { %2469 = vmatmul.mubr.msk.bf16.vlgmr.msra.gmra.mxu1 %vm564_vm2, %v3312_v13 }
 0x1b9   : > { %2479 = vmatpush3.bf16.xpose.msra.mxu1 %v681_v19  ;;  %2480 = vmatprep.mubr.msk.bf16.mxu1 %vm3055_vm0, %v3054_v0 }
 0x1ba   : > { %2490 = vmatprep.subr.bf16.mxu1 %v3054_v0 }
 0x1c0   : > { %2481 = vmatmul.mubr.msk.bf16.vlgmr.msra.gmra.mxu1 %vm564_vm2, %v674_v20 }
 0x1c1   : > { %2492 = vmatprep.mubr.msk.bf16.mxu1 %vm3055_vm0, %v3054_v0  ;;  %2491 = vmatpush3.bf16.msra.mxu1 %v788_v59 }
 0x1c2   : > { %2502 = vmatprep.subr.bf16.mxu1 %v3054_v0 }
 0x278   : > { %v605_v22 = vpop.f32.mrf.mxu1 }
 0x279   : > { %v606_v23 = vadd.f32 %v605_v22, %v3331_v21 }
 0x27a   : > { %v2470_v24 = vpop.f32.mrf.mxu1 }
 0x27b   : > { %v611_v25 = vsel %vm564_vm2, %v606_v23, -inf }
 0x27c   : > { %612 = vmax.xlane.f32.xlu1 %v611_v25  ;;  %v608_v26 = vpop.f32.mrf.mxu1 }
 0x27e   : > { %v2471_v27 = vpop.f32.mrf.mxu1 }
 0x280   : > { %v717_v28 = vpop.f32.mrf.mxu1 }
 0x281   : > { %v718_v29 = vadd.f32 %v717_v28, %v3331_v21 }
 0x282   : > { %v2482_v30 = vpop.f32.mrf.mxu1 }
 0x283   : > { %v723_v31 = vsel %vm564_vm2, %v718_v29, -inf }
 0x284   : > { %724 = vmax.xlane.f32.xlu0 %v723_v31  ;;  %v720_v32 = vpop.f32.mrf.mxu1 }
 0x286   : > { %v2483_v33 = vpop.f32.mrf.mxu1 }
 0x305   : > { %v613_v34 = vpop.xlane.xlu1 %612 }
 0x306   : > { %v614_v35 = vsub.f32 %v606_v23, %v613_v34 }
 0x308   : > { %v615_v36 = vmul.f32 1.442695, %v614_v35 }
 0x30a   : > { %2773 = vpow2.f32 %v615_v36 }
 0x30d   : > { %v725_v37 = vpop.xlane.xlu0 %724 }
 0x30e   : > { %v726_v38 = vsub.f32 %v718_v29, %v725_v37 }
 0x310   : > { %v727_v39 = vmul.f32 1.442695, %v726_v38 }
 0x312   : > { %2775 = vpow2.f32 %v727_v39 }
 0x317   : > { %v2774_v40 = vpop.eup %2773 }
 0x318   : > { %v617_v41 = vsel %vm564_vm2, %v2774_v40, 0.0 }
 0x319   : > { %618 = vadd.xlane.f32.xlu0 %v617_v41 }
 0x31f   : > { %v2776_v42 = vpop.eup %2775 }
 0x320   : > { %v729_v43 = vsel %vm564_vm2, %v2776_v42, 0.0 }
 0x321   : > { %730 = vadd.xlane.f32.xlu1 %v729_v43 }
 0x32f   : > { %623 = vrot.lane.b32.xlu0 %v3312_v13, %s3059_s14 }
 0x332   : > { %735 = vrot.lane.b32.xlu1 %v3312_v13, %s3060_s26 }
 0x333   : > { %876 = vrot.lane.b32.xlu0 %v3312_v13, %s3061_s12 }
 0x336   : > { %878 = vrot.lane.b32.xlu1 %v3312_v13, %s3062_s30 }
 0x3a2   : > { %v619_v44 = vpop.xlane.xlu0 %618 }
 0x3a3   : > { %2777 = vrcp.f32 %v619_v44 }
 0x3a6   : > { %v624_v45 = vpop.permute.xlu0 %623 }
 0x3a7   : > { %v630_v46 = vsel %vm628_vm3, %v624_v45, 0  ;;  %v559_v45 = vld [vmem:[#allocation5 + $0x8] sm:$0xf] }
 0x3a8   : > { %2473 = vmatpush3.bf16.msra.mxu0 %v630_v46  ;;  %v991_v46 = vsel %vm628_vm3, %v559_v45, 0  ;;  %v1214_v45 = vsub.s32 7, %v3301_v6 }
 0x3a9   : > { %2484 = vmatprep.subr.bf16.mxu0 %v3054_v0 }
 0x3aa   : > { %v731_v47 = vpop.xlane.xlu1 %730  ;;  %v877_v14 = vpop.permute.xlu0 %876 }
 0x3ab   : > { %2779 = vrcp.f32 %v731_v47 }
 0x3ae   : > { %v736_v50 = vpop.permute.xlu1 %735 }
 0x3af   : > { %v741_v52 = vsel %vm628_vm3, %v736_v50, 0 }
 0x3b0   : > { %v2778_v48 = vpop.eup %2777 }
 0x3b1   : > { %v621_v49 = vmul.f32 %v2778_v48, %v2774_v40 }
 0x3b2   : > { %v879_v2 = vpop.permute.xlu1 %878 }
 0x3b3   : > { %v622_v51 = vpack.c.bf16 %v621_v49, %v621_v49  ;;  %v884_v10 = vsel %vm564_vm2, %v879_v2, 0 }
 0x3b5   : > { %2475 = vmatmul.mubr.msk.bf16.vlgmr.msra.gmra.mxu0 %vm564_vm2, %v622_v51 }
 0x3b6   : > { %2485 = vmatpush3.bf16.msra.mxu0 %v741_v52  ;;  %2486 = vmatprep.mubr.msk.bf16.mxu0 %vm3055_vm0, %v3054_v0 }
 0x3b7   : > { %2496 = vmatprep.subr.bf16.mxu0 %v3054_v0 }
 0x3b8   : > { %v2780_v53 = vpop.eup %2779 }
 0x3b9   : > { %v733_v54 = vmul.f32 %v2780_v53, %v2776_v42 }
 0x3bb   : > { %v734_v55 = vpack.c.bf16 %v733_v54, %v733_v54 }
 0x3bd   : > { %2487 = vmatmul.mubr.msk.bf16.vlgmr.msra.gmra.mxu0 %vm564_vm2, %v734_v55 }
 0x3be   : > { %2498 = vmatprep.mubr.msk.bf16.mxu0 %vm3055_vm0, %v3054_v0  ;;  %2497 = vmatpush3.bf16.msra.mxu0 %v834_v57 }
 0x3bf   : > { %2508 = vmatprep.subr.bf16.mxu0 %v3054_v0 }
 0x475   : > { %v666_v60 = vpop.f32.mrf.mxu0 }
 0x476   : > { %v672_v61 = vpack.c.bf16 %v666_v60, %v666_v60 }
 0x477   : > { %v2476_v62 = vpop.f32.mrf.mxu0 }
 0x478   : > { %2499 = vmatmul.mubr.msk.bf16.vlgmr.msra.gmra.mxu0 %vm564_vm2, %v672_v61 }
 0x479   : > { %v669_v63 = vpop.f32.mrf.mxu0  ;;  %2510 = vmatprep.mubr.msk.bf16.mxu0 %vm3055_vm0, %v3054_v0 }
 0x47b   : > { %v2477_v1 = vpop.f32.mrf.mxu0 }
 0x47d   : > { %v777_v4 = vpop.f32.mrf.mxu0 }
 0x47e   : > { %v783_v5 = vpack.c.bf16 %v777_v4, %v777_v4 }
 0x47f   : > { %v2488_v9 = vpop.f32.mrf.mxu0 }
 0x480   : > { %2493 = vmatmul.mubr.msk.bf16.vlgmr.msra.gmra.mxu1 %vm564_vm2, %v783_v5  ;;  %v560_v5 = vld [vmem:[#allocation5 + $0xc] sm:$0xf] }
 0x481   : > { %2503 = vmatpush3.bf16.xpose.msra.mxu1 %v884_v10  ;;  %v780_v11 = vpop.f32.mrf.mxu0  ;;  %2504 = vmatprep.mubr.msk.bf16.mxu1 %vm3055_vm0, %v3054_v0 }
 0x482   : > { %2514 = vmatprep.subr.bf16.mxu1 %v3054_v0 }
 0x483   : > { %v2489_v12 = vpop.f32.mrf.mxu0 }
 0x488   : > { %2505 = vmatmul.mubr.msk.bf16.vlgmr.msra.gmra.mxu1 %vm564_vm2, %v877_v14 }
 0x489   : > { %2516 = vmatprep.mubr.msk.bf16.mxu1 %vm3055_vm0, %v3054_v0  ;;  %2515 = vmatpush3.bf16.msra.mxu1 %v991_v46  ;;  %v3433_v46 = vld [vmem:[%s3639_s10 + $0x8] sm:$0xff] }
 0x48a   : > { %2526 = vmatprep.subr.bf16.mxu1 %v3054_v0 }
 0x538   : > { %v870_v15 = vpop.f32.mrf.mxu0 }
 0x53a   : > { %v2500_v16 = vpop.f32.mrf.mxu0 }
 0x53c   : > { %v873_v17 = vpop.f32.mrf.mxu0 }
 0x53e   : > { %v2501_v18 = vpop.f32.mrf.mxu0 }
 0x540   : > { %v824_v19 = vpop.f32.mrf.mxu1 }
 0x541   : > { %v3370_v20 = vadd.f32 %v870_v15, %v824_v19 }
 0x542   : > { %v2494_v22 = vpop.f32.mrf.mxu1 }
 0x543   : > { %v1194_v22 = vsub.s32 1, %v3301_v6 }
 0x544   : > { %v827_v23 = vpop.f32.mrf.mxu1 }
 0x545   : > { %v1195_v23 = vrot.slane %v3307_v8, %v1194_v22 }
 0x546   : > { %v2495_v24 = vpop.f32.mrf.mxu1 }
 0x548   : > { %v920_v25 = vpop.f32.mrf.mxu1 }
 0x549   : > { %v921_v26 = vadd.f32 %v920_v25, %v3331_v21 }
 0x54a   : > { %v2506_v27 = vpop.f32.mrf.mxu1 }
 0x54b   : > { %v926_v28 = vsel %vm564_vm2, %v921_v26, -inf }
 0x54c   : > { %927 = vmax.xlane.f32.xlu1 %v926_v28  ;;  %v923_v29 = vpop.f32.mrf.mxu1 }
 0x54e   : > { %v2507_v30 = vpop.f32.mrf.mxu1 }
 0x55d   : > { %1036 = vrot.lane.b32.xlu1 %v3312_v13, %s3063_s23 }
 0x561   : > { %1034 = vrot.lane.b32.xlu1 %v3312_v13, %s3064_s15 }
 0x5d5   : > { %v928_v31 = vpop.xlane.xlu1 %927 }
 0x5d6   : > { %v929_v32 = vsub.f32 %v921_v26, %v928_v31 }
 0x5d8   : > { %v930_v33 = vmul.f32 1.442695, %v929_v32 }
 0x5d9   : > { %v1037_v41 = vpop.permute.xlu1 %1036 }
 0x5da   : > { %2781 = vpow2.f32 %v930_v33  ;;  %v1042_v43 = vsel %vm564_vm2, %v1037_v41, 0  ;;  %v2766_v41 = vld [vmem:[#allocation7] sm:$0xff]  }
 0x5dd   : > { %v1035_v44 = vpop.permute.xlu1 %1034 }
 0x5e7   : > { %v2782_v34 = vpop.eup %2781 }
 0x5e8   : > { %v932_v35 = vsel %vm564_vm2, %v2782_v34, 0.0 }
 0x5e9   : > { %933 = vadd.xlane.f32.xlu0 %v932_v35 }
 0x5ff   : > { %938 = vrot.lane.b32.xlu0 %v3312_v13, %s3065_s16  ;;  %s484_s16 = scalar_lea.vmem %s3630_s1, %s2346_s13  ;;  %s2390_s13 = sshll.u32 %s3149_s21, 7 }
 0x672   : > { %v934_v36 = vpop.xlane.xlu0 %933 }
 0x673   : > { %2783 = vrcp.f32 %v934_v36 }
 0x676   : > { %v939_v37 = vpop.permute.xlu0 %938 }
 0x677   : > { %v944_v38 = vsel %vm628_vm3, %v939_v37, 0  ;;  %v2763_v37 = vld [vmem:[#allocation8 + $0x8] sm:$0xff]  }
 0x678   : > { %2509 = vmatpush3.bf16.msra.mxu0 %v944_v38  ;;  %v489_v38 = vld [vmem:[%s484_s16] sm:$0xff]  ;;  %s474_s16 = sand.u32 1, %s3036_s18  }
 0x679   : > { %2520 = vmatprep.subr.bf16.mxu0 %v3054_v0  ;;  %s2345_s29 = sshll.u32 %s474_s16, 3 }
 0x680   : > { %v2784_v39 = vpop.eup %2783 }
 0x681   : > { %v936_v40 = vmul.f32 %v2784_v39, %v2782_v34  ;;  %v1291_v39 = vpack.c.bf16 %v489_v38, %v489_v38 }
 0x683   : > { %v937_v42 = vpack.c.bf16 %v936_v40, %v936_v40  ;;  %v2765_v40 = vld [vmem:[#allocation7 + $0x8] sm:$0xff]  }
 0x685   : > { %2511 = vmatmul.mubr.msk.bf16.vlgmr.msra.gmra.mxu0 %vm564_vm2, %v937_v42 }
 0x686   : > { %2521 = vmatpush3.bf16.xpose.msra.mxu0 %v1042_v43  ;;  %2522 = vmatprep.mubr.msk.bf16.mxu0 %vm3055_vm0, %v3054_v0 }
 0x687   : > { %2532 = vmatprep.subr.bf16.mxu0 %v3054_v0 }
 0x68d   : > { %2523 = vmatmul.mubr.msk.bf16.vlgmr.msra.gmra.mxu0 %vm564_vm2, %v1035_v44 }
 0x68e   : > { %2534 = vmatprep.mubr.msk.bf16.mxu0 %vm3055_vm0, %v3054_v0 }
 0x745   : > { %v980_v47 = vpop.f32.mrf.mxu0 }
 0x746   : > { %v986_v48 = vpack.c.bf16 %v980_v47, %v980_v47  ;;  %v1215_v47 = vrot.slane %v3307_v8, %v1214_v45 }
 0x747   : > { %v2512_v49 = vpop.f32.mrf.mxu0 }
 0x748   : > { %2517 = vmatmul.mubr.msk.bf16.vlgmr.msra.gmra.mxu1 %vm564_vm2, %v986_v48  ;;  %v1220_v49 = vrot.slane %v3433_v46, %v498_v7 }
 0x749   : > { %v983_v50 = vpop.f32.mrf.mxu0  ;;  %2528 = vmatprep.mubr.msk.bf16.mxu1 %vm3055_vm0, %v3054_v0 }
 0x74b   : > { %v2513_v51 = vpop.f32.mrf.mxu0 }
 0x74d   : > { %v1078_v52 = vpop.f32.mrf.mxu0 }
 0x74e   : > { %v1079_v53 = vadd.f32 %v1078_v52, %v3331_v21 }
 0x74f   : > { %v2524_v54 = vpop.f32.mrf.mxu0 }
 0x750   : > { %v1084_v55 = vsel %vm564_vm2, %v1079_v53, -inf  ;;  %v1294_v54 = vsub.s32 3, %v3301_v6 }
 0x751   : > { %1085 = vmax.xlane.f32.xlu0 %v1084_v55  ;;  %v1081_v56 = vpop.f32.mrf.mxu0 }
 0x752   : > { %v1295_v55 = vrot.slane %v3307_v8, %v1294_v54 }
 0x753   : > { %v2525_v57 = vpop.f32.mrf.mxu0 }
 0x767   : > { %1096 = vrot.lane.b32.xlu0 %v3312_v13, %s3066_s22  ;;  %v1149_v13 = vsel %vm628_vm3, %v560_v5, 0  ;;  %s3067_s22 = smov [#allocation13]  }
 0x768   : > { %2533 = vmatpush3.bf16.msra.mxu0 %v1149_v13  ;;  %s2972_s14 = sshll.u32 %s3067_s22, 4  ;;  %s2973_s14 = int_to_ptr.vmem [resolvable:$false] %s2972_s14 }
 0x769   : > { %2546 = vmatprep.subr.bf16.mxu0 %v3054_v0  ;;  %s2974_s21 = scalar_lea.vmem %s2973_s14, 256 }
 0x7da   : > { %v1086_v58 = vpop.xlane.xlu0 %1085 }
 0x7db   : > { %v1087_v59 = vsub.f32 %v1079_v53, %v1086_v58 }
 0x7dd   : > { %v1088_v60 = vmul.f32 1.442695, %v1087_v59 }
 0x7de   : > { %v1097_v61 = vpop.permute.xlu0 %1096 }
 0x7df   : > { %2785 = vpow2.f32 %v1088_v60  ;;  %v1102_v62 = vsel %vm628_vm3, %v1097_v61, 0 }
 0x7e0   : > { %2527 = vmatpush3.bf16.msra.mxu1 %v1102_v62  ;;  %v1229_v62 = vsub.s32 2, %v3301_v6 }
 0x7e1   : > { %2538 = vmatprep.subr.bf16.mxu1 %v3054_v0 }
 0x7ec   : > { %v2786_v21 = vpop.eup %2785 }
 0x7ed   : > { %v1090_v63 = vsel %vm564_vm2, %v2786_v21, 0.0 }
 0x7ee   : > { %1091 = vadd.xlane.f32.xlu1 %v1090_v63 }
 0x808   : > { %v1027_v1 = vpop.f32.mrf.mxu1 }
 0x809   : > { %v1033_v2 = vadd.f32 %v1027_v1, %v3370_v20 }
 0x80a   : > { %v2518_v4 = vpop.f32.mrf.mxu1 }
 0x80c   : > { %v1030_v9 = vpop.f32.mrf.mxu1 }
 0x80e   : > { %v2519_v10 = vpop.f32.mrf.mxu1 }
 0x877   : > { %v1092_v11 = vpop.xlane.xlu1 %1091 }
 0x878   : > { %2787 = vrcp.f32 %v1092_v11 }
 0x885   : > { %v2788_v12 = vpop.eup %2787 }
 0x886   : > { %v1094_v14 = vmul.f32 %v2788_v12, %v2786_v21  ;;  %v1230_v21 = vrot.slane %v3307_v8, %v1229_v62 }
 0x888   : > { %v1095_v15 = vpack.c.bf16 %v1094_v14, %v1094_v14 }
 0x88a   : > { %2529 = vmatmul.mubr.msk.bf16.vlgmr.msra.gmra.mxu1 %vm564_vm2, %v1095_v15 }
 0x88b   : > { %2542 = vmatprep.mubr.msk.bf16.mxu1 %vm3055_vm0, %v3054_v0  ;;  %2539 = vmatpush3.bf16.msra.mxu1 %v2765_v40 }
 0x88c   : > { %2540 = vmatprep.subr.bf16.mxu1 %v3054_v0 }
 0x88f   : > { %2541 = vmatpush3.bf16.msra.mxu1 %v2766_v41 }
 0x890   : > { %2554 = vmatprep.subr.bf16.mxu1 %v3054_v0 }
 0x94a   : > { %v1138_v16 = vpop.f32.mrf.mxu1 }
 0x94b   : > { %v1144_v17 = vpack.c.bf16 %v1138_v16, %v1138_v16 }
 0x94c   : > { %v2530_v18 = vpop.f32.mrf.mxu1 }
 0x94d   : > { %2535 = vmatmul.mubr.msk.bf16.vlgmr.msra.gmra.mxu0 %vm564_vm2, %v1144_v17 }
 0x94e   : > { %v1141_v19 = vpop.f32.mrf.mxu1  ;;  %2550 = vmatprep.mubr.msk.bf16.mxu0 %vm3055_vm0, %v3054_v0  ;;  %2547 = vmatpush3.bf16.msra.mxu0 %v2763_v37 }
 0x94f   : > { %2548 = vmatprep.subr.bf16.mxu0 %v3054_v0 }
 0x950   : > { %v2531_v20 = vpop.f32.mrf.mxu1 }
 0xa0d   : > { %v1185_v24 = vpop.f32.mrf.mxu0 }
 0xa0e   : > { %v1191_v25 = vadd.f32 %v1185_v24, %v1033_v2 }
 0xa0f   : > { %v2536_v26 = vpop.f32.mrf.mxu0 }
 0xa10   : > { %v1196_v27 = vadd.f32 %v1195_v23, %v1191_v25 }
 0xa11   : > { %v1188_v28 = vpop.f32.mrf.mxu0 }
 0xa12   : > { %v1197_v29 = vadd.f32 %v1196_v27, %v3292_v3  ;;  %v2764_v3 = vld [vmem:[#allocation8] sm:$0xff]  }
 0xa13   : > { %v2537_v30 = vpop.f32.mrf.mxu0  ;;  %2549 = vmatpush3.bf16.msra.mxu0 %v2764_v3 }
 0xa14   : > { %v1198_v31 = vsel %vm512_vm1, %v1197_v29, 0.0  ;;  %2560 = vmatprep.subr.bf16.mxu0 %v3054_v0 }
 0xa15   : > { %1199 = vadd.xlane.f32.xlu1 %v1198_v31 }
 0xa16   : > { %2551 = vmatmul.mubr.msk.bf16.vlgmr.msra.gmra.mxu0 %vm512_vm1, %v1291_v39 }
 0xa17   : > { %2562 = vmatprep.mubr.msk.bf16.mxu0 %vm3055_vm0, %v3054_v0 }
 0xa9e   : > { %v1200_v32 = vpop.xlane.xlu1 %1199 }
 0xa9f   : > { %v1202_v33 = vmul.f32 0.03125, %v1200_v32 }
 0xaa1   : > { %v1203_v34 = vsub.f32 %v1197_v29, %v1202_v33 }
 0xaa3   : > { %v1204_v35 = vmul.f32 %v1203_v34, %v1203_v34 }
 0xaa5   : > { %v1205_v36 = vsel %vm512_vm1, %v1204_v35, 0.0 }
 0xaa6   : > { %1206 = vadd.xlane.f32.xlu1 %v1205_v36 }
 0xad6   : > { %v1345_v56 = vpop.f32.mrf.mxu0 }
 0xad7   : > { %v1346_v7 = vadd.f32 %v1345_v56, %v1295_v55 }
 0xad8   : > { %v2552_v57 = vpop.f32.mrf.mxu0 }
 0xad9   : > { %v3450_v58 = vpack.c.bf16 %v1346_v7, %v1346_v7 }
 0xada   : > { %v1348_v59 = vpop.f32.mrf.mxu0 }
 0xadb   : > { %1467 = vrot.lane.b32.xlu1 %v3450_v58, %s3056_s19  ;;  %v1360_v60 = vsel %vm564_vm2, %v3450_v58, 0 }
 0xadc   : > { %v2553_v61 = vpop.f32.mrf.mxu0 }
 0xb2f   : > { %v1207_v42 = vpop.xlane.xlu1 %1206 }
 0xb30   : > { %v1208_v43 = vmul.f32 0.03125, %v1207_v42 }
 0xb32   : > { %v1209_v44 = vadd.f32 1e-05, %v1208_v43 }
 0xb34   : > { %2789 = vrsqrt.f32 %v1209_v44 }
 0xb41   : > { %v2790_v48 = vpop.eup %2789 }
 0xb42   : > { %v1211_v50 = vmul.f32 %v2790_v48, %v1203_v34 }
 0xb44   : > { %v1216_v51 = vmul.f32 %v1215_v47, %v1211_v50  ;;  %v1352_v47 = vld [vmem:[#allocation10] sm:$0xf] }
 0xb45   : > { %v1626_v48 = vsel %vm628_vm3, %v1352_v47, 0 }
 0xb46   : > { %v3439_v52 = vadd.f32 %v1220_v49, %v1216_v51  ;;  %v1353_v49 = vld [vmem:[#allocation10 + $0x4] sm:$0xf] }
 0xb47   : > { %v1580_v50 = vsel %vm628_vm3, %v1353_v49, 0 }
 0xb48   : > { %v1226_v53 = vpack.c.bf16 %v3439_v52, %v3439_v52 }
 0xb4a   : > { %2543 = vmatmul.mubr.msk.bf16.vlgmr.msra.gmra.mxu1 %vm512_vm1, %v1226_v53 }
 0xb4b   : > { %2556 = vmatprep.mubr.msk.bf16.mxu1 %vm3055_vm0, %v3054_v0  ;;  %2555 = vmatpush3.bf16.xpose.msra.mxu1 %v1360_v60 }
 0xb4c   : > { %2566 = vmatprep.subr.bf16.mxu1 %v3054_v0 }
 0xb4d   : > { %v1468_v1 = vpop.permute.xlu1 %1467 }
 0xb4e   : > { %v1473_v13 = vsel %vm564_vm2, %v1468_v1, 0 }
 0xc0a   : > { %v1280_v63 = vpop.f32.mrf.mxu1 }
 0xc0b   : > { %v1281_v2 = vadd.f32 %v1280_v63, %v1230_v21 }
 0xc0c   : > { %v2544_v4 = vpop.f32.mrf.mxu1 }
 0xc0d   : > { %v3461_v5 = vpack.c.bf16 %v1281_v2, %v1281_v2 }
 0xc0e   : > { %v1283_v9 = vpop.f32.mrf.mxu1 }
 0xc0f   : > { %1465 = vrot.lane.b32.xlu0 %v3461_v5, %s3056_s19  ;;  %2557 = vmatmul.mubr.msk.bf16.vlgmr.msra.gmra.mxu1 %vm564_vm2, %v3461_v5  ;;  %s476_s19 = scalar_lea.vmem [#allocation13], %s2345_s29 }
 0xc10   : > { %v2545_v10 = vpop.f32.mrf.mxu1  ;;  %2567 = vmatpush3.bf16.xpose.msra.mxu1 %v1473_v13  ;;  %2568 = vmatprep.mubr.msk.bf16.mxu1 %vm3055_vm0, %v3054_v0 }
 0xc11   : > { %2578 = vmatprep.subr.bf16.mxu1 %v3054_v0 }
 0xc81   : > { %v1466_v11 = vpop.permute.xlu0 %1465 }
 0xc82   : > { %2569 = vmatmul.mubr.msk.bf16.vlgmr.msra.gmra.mxu1 %vm564_vm2, %v1466_v11 }
 0xc83   : > { %2580 = vmatprep.mubr.msk.bf16.mxu1 %vm3055_vm0, %v3054_v0  ;;  %2579 = vmatpush3.bf16.msra.mxu1 %v1580_v50 }
 0xc84   : > { %2590 = vmatprep.subr.bf16.mxu1 %v3054_v0 }
 0xccf   : > { %v1396_v12 = vpop.f32.mrf.mxu1 }
 0xcd0   : > { %v1402_v14 = vsel %vm564_vm2, %v1396_v12, -inf }
 0xcd1   : > { %1403 = vmax.xlane.f32.xlu0 %v1402_v14  ;;  %v2558_v15 = vpop.f32.mrf.mxu1 }
 0xcd3   : > { %v1399_v16 = vpop.f32.mrf.mxu1 }
 0xcd5   : > { %v2559_v17 = vpop.f32.mrf.mxu1 }
 0xd42   : > { %v1509_v18 = vpop.f32.mrf.mxu1 }
 0xd43   : > { %v1515_v19 = vsel %vm564_vm2, %v1509_v18, -inf }
 0xd44   : > { %1516 = vmax.xlane.f32.xlu1 %v1515_v19  ;;  %v2570_v20 = vpop.f32.mrf.mxu1 }
 0xd46   : > { %v1512_v23 = vpop.f32.mrf.mxu1 }
 0xd48   : > { %v2571_v24 = vpop.f32.mrf.mxu1 }
 0xd55   : > { %1527 = vrot.lane.b32.xlu1 %v3450_v58, %s3058_s24 }
 0xd59   : > { %1670 = vrot.lane.b32.xlu1 %v3450_v58, %s3061_s12 }
 0xd5a   : > { %v1404_v25 = vpop.xlane.xlu0 %1403 }
 0xd5b   : > { %v1405_v26 = vsub.f32 %v1396_v12, %v1404_v25 }
 0xd5d   : > { %v1406_v27 = vmul.f32 1.442695, %v1405_v26 }
 0xd5f   : > { %2791 = vpow2.f32 %v1406_v27 }
 0xd6c   : > { %v2792_v28 = vpop.eup %2791 }
 0xd6d   : > { %v1408_v29 = vsel %vm564_vm2, %v2792_v28, 0.0 }
 0xd6e   : > { %1409 = vadd.xlane.f32.xlu0 %v1408_v29 }
 0xdcd   : > { %v1517_v30 = vpop.xlane.xlu1 %1516 }
 0xdce   : > { %v1518_v31 = vsub.f32 %v1509_v18, %v1517_v30 }
 0xdd0   : > { %v1519_v32 = vmul.f32 1.442695, %v1518_v31 }
 0xdd1   : > { %v1528_v40 = vpop.permute.xlu1 %1527 }
 0xdd2   : > { %2793 = vpow2.f32 %v1519_v32  ;;  %v1533_v42 = vsel %vm628_vm3, %v1528_v40, 0 }
 0xdd5   : > { %v1671_v57 = vpop.permute.xlu1 %1670 }
 0xdd6   : > { %v1676_v21 = vsel %vm564_vm2, %v1671_v57, 0 }
 0xddf   : > { %v2794_v33 = vpop.eup %2793 }
 0xde0   : > { %v1521_v34 = vsel %vm564_vm2, %v2794_v33, 0.0 }
 0xde1   : > { %1522 = vadd.xlane.f32.xlu0 %v1521_v34 }
 0xdf7   : > { %1415 = vrot.lane.b32.xlu0 %v3450_v58, %s3057_s25  ;;  %v1410_v35 = vpop.xlane.xlu0 %1409  ;;  %s2198_s25 = sshll.u32 %s476_s19, 4  ;;  %s2199_s25 = int_to_ptr.vmem [resolvable:$true] %s2198_s25 }
 0xdf8   : > { %2795 = vrcp.f32 %v1410_v35  ;;  %p2975_p13 = scmp.lt.s32.totalorder %s2199_s25, %s2973_s14 }
 0xdfb   : > { %1668 = vrot.lane.b32.xlu0 %v3461_v5, %s3061_s12 }
 0xe05   : > { %v2796_v36 = vpop.eup %2795 }
 0xe06   : > { %v1412_v3 = vmul.f32 %v2796_v36, %v2792_v28 }
 0xe08   : > { %v1413_v41 = vpack.c.bf16 %v1412_v3, %v1412_v3 }
 0xe6a   : > { %v1523_v37 = vpop.xlane.xlu0 %1522 }
 0xe6b   : > { %2797 = vrcp.f32 %v1523_v37  ;;  %v1354_v37 = vld [vmem:[#allocation10 + $0x8] sm:$0xf] }
 0xe6c   : > { %v1783_v3 = vsel %vm628_vm3, %v1354_v37, 0 }
 0xe6e   : > { %v1416_v38 = vpop.permute.xlu0 %1415 }
 0xe6f   : > { %v1421_v39 = vsel %vm628_vm3, %v1416_v38, 0 }
 0xe70   : > { %2561 = vmatpush3.bf16.msra.mxu0 %v1421_v39 }
 0xe71   : > { %2572 = vmatprep.subr.bf16.mxu0 %v3054_v0 }
 0xe72   : > { %v1669_v2 = vpop.permute.xlu0 %1668 }
 0xe73   : > { %2563 = vmatmul.mubr.msk.bf16.vlgmr.msra.gmra.mxu0 %vm564_vm2, %v1413_v41 }
 0xe74   : > { %2573 = vmatpush3.bf16.msra.mxu0 %v1533_v42  ;;  %2574 = vmatprep.mubr.msk.bf16.mxu0 %vm3055_vm0, %v3054_v0 }
 0xe75   : > { %2584 = vmatprep.subr.bf16.mxu0 %v3054_v0 }
 0xe78   : > { %v2798_v43 = vpop.eup %2797 }
 0xe79   : > { %v1525_v44 = vmul.f32 %v2798_v43, %v2794_v33 }
 0xe7b   : > { %v1526_v45 = vpack.c.bf16 %v1525_v44, %v1525_v44 }
 0xe7d   : > { %2575 = vmatmul.mubr.msk.bf16.vlgmr.msra.gmra.mxu0 %vm564_vm2, %v1526_v45 }
 0xe7e   : > { %2586 = vmatprep.mubr.msk.bf16.mxu0 %vm3055_vm0, %v3054_v0  ;;  %2585 = vmatpush3.bf16.msra.mxu0 %v1626_v48 }
 0xe7f   : > { %2596 = vmatprep.subr.bf16.mxu0 %v3054_v0 }
 0xf33   : > { %v1457_v51 = vpop.f32.mrf.mxu0 }
 0xf34   : > { %v1463_v53 = vpack.c.bf16 %v1457_v51, %v1457_v51 }
 0xf35   : > { %v2564_v55 = vpop.f32.mrf.mxu0 }
 0xf36   : > { %2587 = vmatmul.mubr.msk.bf16.vlgmr.msra.gmra.mxu0 %vm564_vm2, %v1463_v53 }
 0xf37   : > { %v1460_v56 = vpop.f32.mrf.mxu0  ;;  %2598 = vmatprep.mubr.msk.bf16.mxu0 %vm3055_vm0, %v3054_v0 }
 0xf39   : > { %v2565_v7 = vpop.f32.mrf.mxu0 }
 0xf3d   : > { %v1569_v59 = vpop.f32.mrf.mxu0 }
 0xf3e   : > { %v1575_v60 = vpack.c.bf16 %v1569_v59, %v1569_v59  ;;  %v1355_v59 = vld [vmem:[#allocation10 + $0xc] sm:$0xf] }
 0xf3f   : > { %v2576_v61 = vpop.f32.mrf.mxu0 }
 0xf40   : > { %2581 = vmatmul.mubr.msk.bf16.vlgmr.msra.gmra.mxu1 %vm564_vm2, %v1575_v60 }
 0xf41   : > { %2591 = vmatpush3.bf16.xpose.msra.mxu1 %v1676_v21  ;;  %v1572_v63 = vpop.f32.mrf.mxu0  ;;  %2592 = vmatprep.mubr.msk.bf16.mxu1 %vm3055_vm0, %v3054_v0 }
 0xf42   : > { %2602 = vmatprep.subr.bf16.mxu1 %v3054_v0 }
 0xf43   : > { %v2577_v1 = vpop.f32.mrf.mxu0 }
 0xf48   : > { %2593 = vmatmul.mubr.msk.bf16.vlgmr.msra.gmra.mxu1 %vm564_vm2, %v1669_v2 }
 0xf49   : > { %2604 = vmatprep.mubr.msk.bf16.mxu1 %vm3055_vm0, %v3054_v0  ;;  %2603 = vmatpush3.bf16.msra.mxu1 %v1783_v3  ;;  %v2011_v3 = vrot.slane %v3433_v46, %v1229_v62  ;;  %v2020_v62 = vsub.s32 5, %v3301_v6 }
 0xf4a   : > { %2614 = vmatprep.subr.bf16.mxu1 %v3054_v0 }
 0xff6   : > { %v1662_v4 = vpop.f32.mrf.mxu0 }
 0xff8   : > { %v2588_v13 = vpop.f32.mrf.mxu0 }
 0xffa   : > { %v1665_v9 = vpop.f32.mrf.mxu0 }
 0xffc   : > { %v2589_v10 = vpop.f32.mrf.mxu0 }
0x1000   : > { %v1616_v11 = vpop.f32.mrf.mxu1 }
0x1001   : > { %v3511_v12 = vadd.f32 %v1662_v4, %v1616_v11 }
0x1002   : > { %v2582_v14 = vpop.f32.mrf.mxu1 }
0x1004   : > { %v1619_v15 = vpop.f32.mrf.mxu1 }
0x1005   : > { %v1986_v15 = vsub.s32 4, %v3301_v6 }
0x1006   : > { %v2583_v16 = vpop.f32.mrf.mxu1 }
0x1007   : > { %v1987_v16 = vrot.slane %v3307_v8, %v1986_v15  ;;  %v2768_v8 = vld [vmem:[#allocation11] sm:$0xff]  }
0x1008   : > { %v1712_v17 = vpop.f32.mrf.mxu1 }
0x1009   : > { %v1718_v18 = vsel %vm564_vm2, %v1712_v17, -inf }
0x100a   : > { %1719 = vmax.xlane.f32.xlu1 %v1718_v18  ;;  %v2594_v19 = vpop.f32.mrf.mxu1 }
0x100c   : > { %v1715_v20 = vpop.f32.mrf.mxu1 }
0x100e   : > { %v2595_v23 = vpop.f32.mrf.mxu1 }
0x101b   : > { %1828 = vrot.lane.b32.xlu1 %v3450_v58, %s3064_s15 }
0x101f   : > { %1826 = vrot.lane.b32.xlu1 %v3461_v5, %s3064_s15  ;;  %s2968_s15 = scalar_lea.vmem %s2199_s25, 128 }
0x1020   : > { %p2969_p4 = scmp.ne.s32.totalorder %s2199_s25, %s2968_s15  ;;  %p2976_p8 = scmp.lt.s32.totalorder %s2974_s21, %s2968_s15 }
0x1022   : > { %p2970_p7 = pnand %p2969_p4, %p3166_p5  ;;  %p2977_p11 = por %p2976_p8, %p2975_p13 }
0x1024   : > { %p2971_p9 = pneg %p2970_p7 }
0x1026   : > { %p2978_p0 = pnand %p2977_p11, %p2971_p9 }
0x1093   : > { %v1720_v24 = vpop.xlane.xlu1 %1719 }
0x1094   : > { %v1721_v25 = vsub.f32 %v1712_v17, %v1720_v24 }
0x1096   : > { %v1722_v26 = vmul.f32 1.442695, %v1721_v25 }
0x1097   : > { %v1829_v33 = vpop.permute.xlu1 %1828 }
0x1098   : > { %2799 = vpow2.f32 %v1722_v26  ;;  %v1834_v35 = vsel %vm564_vm2, %v1829_v33, 0 }
0x109b   : > { %v1827_v36 = vpop.permute.xlu1 %1826 }
0x10a5   : > { %v2800_v27 = vpop.eup %2799 }
0x10a6   : > { %v1724_v28 = vsel %vm564_vm2, %v2800_v27, 0.0 }
0x10a7   : > { %1725 = vadd.xlane.f32.xlu0 %v1724_v28 }
0x10bd   : > { %1730 = vrot.lane.b32.xlu0 %v3450_v58, %s3062_s30  ;;  %s2196_s30 = scalar_lea.hbm %s3640_s11, %s2390_s13 }
0x1130   : > { %v1726_v29 = vpop.xlane.xlu0 %1725 }
0x1131   : > { %2801 = vrcp.f32 %v1726_v29 }
0x1134   : > { %v1731_v30 = vpop.permute.xlu0 %1730 }
0x1135   : > { %v1736_v31 = vsel %vm628_vm3, %v1731_v30, 0 }
0x1136   : > { %2597 = vmatpush3.bf16.msra.mxu0 %v1736_v31 }
0x1137   : > { %2608 = vmatprep.subr.bf16.mxu0 %v3054_v0 }
0x113e   : > { %v2802_v5 = vpop.eup %2801 }
0x113f   : > { %v1728_v32 = vmul.f32 %v2802_v5, %v2800_v27  ;;  %v2767_v5 = vld [vmem:[#allocation11 + $0x8] sm:$0xff]  }
0x1141   : > { %v1729_v34 = vpack.c.bf16 %v1728_v32, %v1728_v32  ;;  %v2770_v32 = vld [vmem:[%s3638_s9 + $0x10] sm:$0xff]  }
0x1143   : > { %2599 = vmatmul.mubr.msk.bf16.vlgmr.msra.gmra.mxu0 %vm564_vm2, %v1729_v34 }
0x1144   : > { %2609 = vmatpush3.bf16.xpose.msra.mxu0 %v1834_v35  ;;  %2610 = vmatprep.mubr.msk.bf16.mxu0 %vm3055_vm0, %v3054_v0 }
0x1145   : > { %2620 = vmatprep.subr.bf16.mxu0 %v3054_v0 }
0x114b   : > { %2611 = vmatmul.mubr.msk.bf16.vlgmr.msra.gmra.mxu0 %vm564_vm2, %v1827_v36  ;;  %v2006_v36 = vrot.slane %v3433_v46, %v1194_v22  ;;  %v2772_v22 = vld [vmem:[%s3638_s9] sm:$0xff]  }
0x114c   : > { %2622 = vmatprep.mubr.msk.bf16.mxu0 %vm3055_vm0, %v3054_v0 }
0x1203   : > { %v1772_v38 = vpop.f32.mrf.mxu0 }
0x1204   : > { %v1778_v39 = vpack.c.bf16 %v1772_v38, %v1772_v38 }
0x1205   : > { %v2600_v40 = vpop.f32.mrf.mxu0 }
0x1206   : > { %2605 = vmatmul.mubr.msk.bf16.vlgmr.msra.gmra.mxu1 %vm564_vm2, %v1778_v39 }
0x1207   : > { %v1775_v41 = vpop.f32.mrf.mxu0  ;;  %2616 = vmatprep.mubr.msk.bf16.mxu1 %vm3055_vm0, %v3054_v0 }
0x1209   : > { %v2601_v42 = vpop.f32.mrf.mxu0 }
0x120a   : > { %v2771_v42 = vld [vmem:[%s3638_s9 + $0x8] sm:$0xff]  }
0x120b   : > { %v1870_v43 = vpop.f32.mrf.mxu0 }
0x120c   : > { %v1876_v44 = vsel %vm564_vm2, %v1870_v43, -inf }
0x120d   : > { %1877 = vmax.xlane.f32.xlu0 %v1876_v44  ;;  %v2612_v45 = vpop.f32.mrf.mxu0 }
0x120f   : > { %v1873_v47 = vpop.f32.mrf.mxu0 }
0x1211   : > { %v2613_v48 = vpop.f32.mrf.mxu0 }
0x1223   : > { %1888 = vrot.lane.b32.xlu0 %v3450_v58, %s3063_s23  ;;  %v1941_v58 = vsel %vm628_vm3, %v1355_v59, 0  ;;  %s2185_s23 = scalar_lea.sflag [#allocation4], %s474_s16 }
0x1224   : > { %2621 = vmatpush3.bf16.msra.mxu0 %v1941_v58 }
0x1225   : > { %2634 = vmatprep.subr.bf16.mxu0 %v3054_v0 }
0x1296   : > { %v1878_v49 = vpop.xlane.xlu0 %1877 }
0x1297   : > { %v1879_v50 = vsub.f32 %v1870_v43, %v1878_v49  ;;  %v2811_v43 = vld [vmem:[%s3639_s10] sm:$0xff] }
0x1298   : > { %v2021_v44 = vrot.slane %v2811_v43, %v2020_v62 }
0x1299   : > { %v1880_v51 = vmul.f32 1.442695, %v1879_v50 }
0x129a   : > { %v1889_v53 = vpop.permute.xlu0 %1888 }
0x129b   : > { %2803 = vpow2.f32 %v1880_v51  ;;  %v1894_v55 = vsel %vm628_vm3, %v1889_v53, 0  ;;  %v2089_v53 = vsub.s32 6, %v3301_v6 }
0x129c   : > { %2615 = vmatpush3.bf16.msra.mxu1 %v1894_v55 }
0x129d   : > { %2626 = vmatprep.subr.bf16.mxu1 %v3054_v0  ;;  %v2090_v55 = vrot.slane %v2811_v43, %v2089_v53 }
0x12a8   : > { %v2804_v56 = vpop.eup %2803 }
0x12a9   : > { %v1882_v7 = vsel %vm564_vm2, %v2804_v56, 0.0 }
0x12aa   : > { %1883 = vadd.xlane.f32.xlu1 %v1882_v7 }
0x12c6   : > { %v1819_v57 = vpop.f32.mrf.mxu1 }
0x12c7   : > { %v1825_v60 = vadd.f32 %v1819_v57, %v3511_v12 }
0x12c8   : > { %v2606_v61 = vpop.f32.mrf.mxu1 }
0x12ca   : > { %v1822_v21 = vpop.f32.mrf.mxu1 }
0x12cc   : > { %v2607_v63 = vpop.f32.mrf.mxu1 }
0x1333   : > { %v1884_v1 = vpop.xlane.xlu1 %1883 }
0x1334   : > { %2805 = vrcp.f32 %v1884_v1 }
0x1341   : > { %v2806_v2 = vpop.eup %2805 }
0x1342   : > { %v1886_v4 = vmul.f32 %v2806_v2, %v2804_v56 }
0x1344   : > { %v1887_v13 = vpack.c.bf16 %v1886_v4, %v1886_v4 }
0x1346   : > { %2617 = vmatmul.mubr.msk.bf16.vlgmr.msra.gmra.mxu1 %vm564_vm2, %v1887_v13 }
0x1347   : > { %2630 = vmatprep.mubr.msk.bf16.mxu1 %vm3055_vm0, %v3054_v0  ;;  %2627 = vmatpush3.bf16.msra.mxu1 %v2767_v5 }
0x1348   : > { %2628 = vmatprep.subr.bf16.mxu1 %v3054_v0 }
0x134b   : > { %2629 = vmatpush3.bf16.msra.mxu1 %v2768_v8 }
0x1406   : > { %v1930_v9 = vpop.f32.mrf.mxu1 }
0x1407   : > { %v1936_v10 = vpack.c.bf16 %v1930_v9, %v1930_v9 }
0x1408   : > { %v2618_v11 = vpop.f32.mrf.mxu1 }
0x1409   : > { %2623 = vmatmul.mubr.msk.bf16.vlgmr.msra.gmra.mxu0 %vm564_vm2, %v1936_v10  ;;  %v2176_v11 = vrot.slane %v3433_v46, %v1294_v54 }
0x140a   : > { %v1933_v12 = vpop.f32.mrf.mxu1  ;;  %2642 = vmatprep.mubr.msk.bf16.mxu0 %vm3055_vm0, %v3054_v0 }
0x140c   : > { %v2619_v14 = vpop.f32.mrf.mxu1 }
0x140d   : > { %v2181_v14 = vrot.slane %v3433_v46, %v1986_v15 }
0x14c9   : > { %v1977_v17 = vpop.f32.mrf.mxu0 }
0x14ca   : > { %v1983_v18 = vadd.f32 %v1977_v17, %v1825_v60 }
0x14cb   : > { %v2624_v19 = vpop.f32.mrf.mxu0 }
0x14cc   : > { %v1988_v20 = vadd.f32 %v1987_v16, %v1983_v18 }
0x14cd   : > { %v1980_v23 = vpop.f32.mrf.mxu0 }
0x14ce   : > { %v1989_v24 = vadd.f32 %v1988_v20, %v3439_v52  ;;  %v2769_v52 = vld [vmem:[%s3638_s9 + $0x18] sm:$0xff]  }
0x14cf   : > { %v2625_v25 = vpop.f32.mrf.mxu0  ;;  %2635 = vmatpush3.bf16.msra.mxu0 %v2769_v52 }
0x14d0   : > { %v1990_v26 = vsel %vm512_vm1, %v1989_v24, 0.0  ;;  %2636 = vmatprep.subr.bf16.mxu0 %v3054_v0 }
0x14d1   : > { %1991 = vadd.xlane.f32.xlu1 %v1990_v26 }
0x14d3   : > { %2637 = vmatpush3.bf16.msra.mxu0 %v2770_v32 }
0x14d4   : > { %2638 = vmatprep.subr.bf16.mxu0 %v3054_v0 }
0x14d7   : > { %2639 = vmatpush3.bf16.msra.mxu0 %v2771_v42 }
0x14d8   : > { %2640 = vmatprep.subr.bf16.mxu0 %v3054_v0 }
0x14db   : > { %2641 = vmatpush3.bf16.msra.mxu0 %v2772_v22 }
0x155a   : > { %v1992_v27 = vpop.xlane.xlu1 %1991 }
0x155b   : > { %v1993_v28 = vmul.f32 0.03125, %v1992_v27 }
0x155d   : > { %v1994_v29 = vsub.f32 %v1989_v24, %v1993_v28 }
0x155f   : > { %v1995_v30 = vmul.f32 %v1994_v29, %v1994_v29 }
0x1561   : > { %v1996_v31 = vsel %vm512_vm1, %v1995_v30, 0.0 }
0x1562   : > { %1997 = vadd.xlane.f32.xlu1 %v1996_v31 }
0x15eb   : > { %v1998_v33 = vpop.xlane.xlu1 %1997 }
0x15ec   : > { %v1999_v34 = vmul.f32 0.03125, %v1998_v33 }
0x15ee   : > { %v2000_v35 = vadd.f32 1e-05, %v1999_v34 }
0x15f0   : > { %2807 = vrsqrt.f32 %v2000_v35 }
0x15fd   : > { %v2808_v37 = vpop.eup %2807 }
0x15fe   : > { %v2002_v38 = vmul.f32 %v2808_v37, %v1994_v29 }
0x1600   : > { %v2007_v39 = vmul.f32 %v2006_v36, %v2002_v38 }
0x1602   : > { %v2012_v40 = vadd.f32 %v2011_v3, %v2007_v39 }
0x1604   : > { %v2017_v41 = vpack.c.bf16 %v2012_v40, %v2012_v40 }
0x1606   : > { %2631 = vmatmul.mubr.msk.bf16.vlgmr.msra.gmra.mxu1 %vm512_vm1, %v2017_v41 }
0x16c6   : > { %v2071_v45 = vpop.f32.mrf.mxu1 }
0x16c7   : > { %v2072_v47 = vadd.f32 %v2071_v45, %v2021_v44 }
0x16c8   : > { %v2632_v48 = vpop.f32.mrf.mxu1 }
0x16c9   : > { %v2077_v49 = vmax.f32 %v2072_v47, 0.0 }
0x16ca   : > { %v2074_v50 = vpop.f32.mrf.mxu1 }
0x16cb   : > { %v2078_v51 = vpack.c.bf16 %v2077_v49, %v2077_v49 }
0x16cc   : > { %v2633_v0 = vpop.f32.mrf.mxu1 }
0x16cd   : > { %2643 = vmatmul.mubr.msk.bf16.vlgmr.msra.gmra.mxu0 %vm2115_vm4, %v2078_v51 }
0x178d   : > { %v2153_v56 = vpop.f32.mrf.mxu0 }
0x178e   : > { %v2154_v7 = vadd.f32 %v2153_v56, %v2090_v55 }
0x178f   : > { %v2644_v57 = vpop.f32.mrf.mxu0 }
0x1790   : > { %v2159_v59 = vadd.f32 %v2154_v7, %v2012_v40 }
0x1791   : > { %v2156_v60 = vpop.f32.mrf.mxu0 }
0x1792   : > { %v2160_v58 = vsel %vm512_vm1, %v2159_v59, 0.0 }
0x1793   : > { %2161 = vadd.xlane.f32.xlu1 %v2160_v58  ;;  %v2645_v61 = vpop.f32.mrf.mxu0 }
0x181c   : > { %v2162_v21 = vpop.xlane.xlu1 %2161 }
0x181d   : > { %v2163_v63 = vmul.f32 0.03125, %v2162_v21 }
0x181f   : > { %v2164_v1 = vsub.f32 %v2159_v59, %v2163_v63 }
0x1821   : > { %v2165_v2 = vmul.f32 %v2164_v1, %v2164_v1 }
0x1823   : > { %v2166_v4 = vsel %vm512_vm1, %v2165_v2, 0.0 }
0x1824   : > { %2167 = vadd.xlane.f32.xlu1 %v2166_v4 }
0x18ad   : > { %v2168_v13 = vpop.xlane.xlu1 %2167 }
0x18ae   : > { %v2169_v9 = vmul.f32 0.03125, %v2168_v13 }
0x18b0   : > { %v2170_v10 = vadd.f32 1e-05, %v2169_v9 }
0x18b2   : > { %2809 = vrsqrt.f32 %v2170_v10 }
0x18bf   : > { %v2810_v12 = vpop.eup %2809 }
0x18c0   : > { %v2172_v16 = vmul.f32 %v2810_v12, %v2164_v1 }
0x18c2   : > { %v2177_v17 = vmul.f32 %v2176_v11, %v2172_v16 }
0x18c4   : > { %v2182_v18 = vadd.f32 %v2181_v14, %v2177_v17 }
0x18c6   : > { %2183 = vst.msk [vmem:[%s476_s19] sm:$0xff] %vm512_vm1, %v2182_v18 }
0x18c7   : > { %2981 = shalt.err (!%p2978_p0)
}
0x18c8   : > { %s2982_s26 = scalar_lea.hbm %s2196_s30, 128  ;;  %s2986_s13 = scalar_lea.hbm %s3640_s11, 256 }
0x18c9   : > { %p2983_p3 = scmp.ne.s32.totalorder %s2196_s30, %s2982_s26  ;;  %p2987_p1 = scmp.lt.s32.totalorder %s2196_s30, %s3640_s11 }
0x18ca   : > { %p2988_p2 = scmp.lt.s32.totalorder %s2986_s13, %s2982_s26 }
0x18cb   : > { %p2984_p12 = pnand %p2983_p3, %p3166_p5 }
0x18cc   : > { %p2989_p4 = por %p2988_p2, %p2987_p1 }
0x18cd   : > { %p2985_p10 = pneg %p2984_p12 }
0x18cf   : > { %p2990_p7 = pnand %p2989_p4, %p2985_p10 }
0x18d1   : > { %2993 = shalt.err (!%p2990_p7)
}
0x18d2   : > { %2670 = dma.vmem_to_hbm [thread:$0]  (%p3166_p5), %s2199_s25, 128, %s2196_s30, %s2185_s23  }
0x18d3 PF: > { %p2707_p9 = scmp.ge.s32.totalorder %s3044_s20, 2  ;;  %s2210_s12 = sand.u32 1, %s3032_s17  }
0x18d4   : > { %s2211_s15 = scalar_lea.sflag [#allocation4], %s2210_s12 }
0x18d5   : > { %p2692_p13 = pnand %p2707_p9, %p3170_p6 }
0x18d7   : > { %p2693_p8 = pneg %p2692_p13 }
0x18d9   : > { %3027 = dma.done.wait (%p2693_p8), %s2211_s15, 128  }
0x18da   : > { %3029 = vsyncadd (%p2693_p8), %s2211_s15, 4294967168  ;;  %s3664_s20 = sld [smem:[#allocation20_spill]]  ;;  %s3667_s17 = smov %s3036_s18 }
0x18db   : > { %s3665_s22 = sld [smem:[#allocation19_spill]] }
0x18dc   : > { %s3666_s19 = sld [smem:[#allocation21_spill]] }
0x18e0   : > { %p25_p11 = scmp.ge.s32.totalorder %s3664_s20, 4  }
0x18e1   : > { %s3668_s18 = smov %s3665_s22 }
0x18e2   :  { %27 = sbr.rel (!%p25_p11) target bundleno = 7 (0x7), region = 127 }
0x18e7   :  { %2216 = vsyncpa [#allocation3], 1 }
0x18e8   :  { %2218 = vsyncpa [#allocation3 + $0x1], 1 }
0x18e9   :  { %2219 = vsyncpa [#allocation6], 1 }
0x18ea   :  { %2220 = vsyncpa [#allocation9], 1 }
0x18eb   :  { %2221 = vsyncpa [#allocation12], 1 }
0x18ec   :  { %2222 = vsyncpa [#allocation4], 1 }
0x18ed   :  { %2224 = vsyncpa [#allocation4 + $0x1], 1 }

// kernel: tpu_custom_call.1
= control target key start
LH: loop header
LB: loop body
LE: loop exit
PB: predicated region body
PF: predicated region fallthrough
CT: control target
= control target key end

     0   :  { %16 = vsyncpa [#allocation3], 0  ;;  %s3629_s0 = inlined_call_operand.vmem [shape: f32[2,8,32], index: 0, kind: input, shape index: {}]   ;;  %s3630_s1 = inlined_call_operand.vmem [shape: f32[2,8,32], index: 1, kind: input, shape index: {}]   ;;  %s3631_s2 = inlined_call_operand.hbm [shape: f32[8,8], index: 2, kind: input, shape index: {}]   ;;  %s3632_s3 = inlined_call_operand.vmem [shape: bf16[32,96], index: 3, kind: input, shape index: {}]   ;;  %s3633_s4 = inlined_call_operand.hbm [shape: bf16[4,8,32], index: 4, kind: input, shape index: {}]   ;;  %s3634_s5 = inlined_call_operand.hbm [shape: bf16[32,32], index: 5, kind: input, shape index: {}]   ;;  %s3635_s6 = inlined_call_operand.hbm [shape: bf16[32,64], index: 6, kind: input, shape index: {}]   ;;  %s3636_s7 = inlined_call_operand.hbm [shape: bf16[4,8,32], index: 7, kind: input, shape index: {}]   ;;  %s3637_s8 = inlined_call_operand.hbm [shape: bf16[32,64], index: 8, kind: input, shape index: {}]   ;;  %s3638_s9 = inlined_call_operand.vmem [shape: bf16[64,32], index: 9, kind: input, shape index: {}]   ;;  %s3639_s10 = inlined_call_operand.vmem [shape: f32[16,96], index: 10, kind: input, shape index: {}]   ;;  %s3640_s11 = inlined_call_operand.hbm [shape: f32[2,8,32], index: 11, kind: output, shape index: {}]  }
   0x1   :  { %17 = vsyncpa [#allocation6], 0 }
   0x2   :  { %18 = vsyncpa [#allocation9], 0 }
   0x3   :  { %19 = vsyncpa [#allocation12], 0 }
   0x4   :  { %20 = vsyncpa [#allocation4], 0 }
   0x5   :  { %22 = vsyncpa [#allocation4 + $0x1], 0  ;;  %s3128_s17 = smov 0   ;;  %s3130_s18 = smov 0  }
   0x6   :  { %s3132_s19 = smov 0   ;;  %s3134_s20 = smov 0  }
   0x7 LB: > { %3647 = sst [smem:[#allocation19_spill]] %s3040_s19  ;;  %s3149_s21 = sadd.s32 4294967295, %s3044_s20   ;;  %s3044_s20 = sphi %s3134_s20, %s3664_s20   ;;  %s3040_s19 = sphi %s3132_s19, %s3666_s19   ;;  %s3036_s18 = sphi %s3130_s18, %s3668_s18   ;;  %s3032_s17 = sphi %s3128_s17, %s3667_s17  }
   0x8   : > { %s2329_s22 = sadd.s32 4294967294, %s3044_s20   ;;  %s3153_s23 = sadd.s32 1, %s3044_s20  }
   0x9   : > { %3648 = sst [smem:[#allocation20_spill]] %s3153_s23  ;;  %s276_s24 = sadd.s32 1, %s3040_s19 }
   0xa   : > { %s273_s25 = ssub.s32 %s3044_s20, %s3153_s23  ;;  %p286_p0 = scmp.ne.s32.totalorder %s3040_s19, %s3036_s18 }
   0xb   : > { %p274_p1 = scmp.eq.s32.totalorder %s273_s25, 0  ;;  %p287_p2 = scmp.eq.s32.totalorder %s3149_s21, 1 }
   0xc   : > { %p292_p3 = scmp.ne.s32.totalorder %s3036_s18, %s3032_s17  ;;  %p293_p4 = scmp.eq.s32.totalorder %s2329_s22, 1 }
   0xd   : > { %s3164_s26 = scalar_select %p274_p1, %s3040_s19, %s276_s24  }
   0xe   : > { %p3166_p5 = por %p287_p2, %p286_p0  ;;  %p3170_p6 = por %p293_p4, %p292_p3 }
   0xf   : > { %3649 = sst [smem:[#allocation21_spill]] %s3164_s26  ;;  %p2330_p7 = scmp.ge.s32.totalorder %s3044_s20, 1 }
  0x10   : > { %p300_p8 = scmp.lt.s32.totalorder %s3044_s20, 3  ;;  %p3644_p9 = scmp.eq.s32.totalorder %s3149_s21, 0 }
  0x11   : > { %s3046_s30 = smov [#allocation5]   ;;  %s3047_s14 = smov [#allocation8]  }
  0x12   : > { %p3177_p10 = pnand %p2330_p7, %p300_p8  ;;  %s326_s12 = sshll.u32 %s3046_s30, 4  ;;  %s327_s12 = int_to_ptr.vmem [resolvable:$true] %s326_s12 }
  0x13   : > { %s352_s15 = sshll.u32 %s3047_s14, 4  ;;  %s3048_s16 = smov [#allocation2]   ;;  %s353_s15 = int_to_ptr.vmem [resolvable:$true] %s352_s15 }
  0x14   : > { %p2672_p11 = pneg %p3177_p10  ;;  %s313_s22 = sshll.u32 %s3048_s16, 4  ;;  %s314_s22 = int_to_ptr.vmem [resolvable:$true] %s313_s22 }
  0x15   : > { %s2823_s25 = scalar_lea.vmem %s327_s12, 256  ;;  %p2831_p3 = scmp.lt.s32.totalorder %s327_s12, %s327_s12 }
  0x16   : > { %p3185_p12 = pnand %p3644_p9, %p2672_p11  ;;  %p2824_p0 = scmp.ne.s32.totalorder %s327_s12, %s2823_s25 }
  0x17   : > { %p2832_p4 = scmp.lt.s32.totalorder %s2823_s25, %s2823_s25 }
  0x18   : > { %p3191_p13 = pneg %p3185_p12 }
  0x19   : > { %p2833_p7 = por %p2832_p4, %p2831_p3 }
  0x1a   : > { %p2826_p1 = pnand %p2824_p0, %p3191_p13 }
  0x1c   : > { %p2827_p2 = pneg %p2826_p1 }
  0x1e   : > { %p2834_p8 = pnand %p2833_p7, %p2827_p2 }
  0x20   : > { %2837 = shalt.err (!%p2834_p8)
}
  0x21   : > { %s3645_s30 = smov 64   ;;  %s3050_s14 = smov 4  }
  0x22   : > { %2678 = dma.hbm_to_vmem [thread:$0]  (!%p3185_p12), %s3633_s4, 256, %s327_s12, [#allocation6], %s3645_s30, %s3645_s30, %s3050_s14  }
  0x23   : > { %s2849_s19 = scalar_lea.vmem %s353_s15, 256  ;;  %p2857_p3 = scmp.lt.s32.totalorder %s353_s15, %s353_s15 }
  0x24   : > { %p2850_p11 = scmp.ne.s32.totalorder %s353_s15, %s2849_s19  ;;  %p2858_p2 = scmp.lt.s32.totalorder %s2849_s19, %s2849_s19 }
  0x26   : > { %p2852_p0 = pnand %p2850_p11, %p3191_p13  ;;  %p2859_p4 = por %p2858_p2, %p2857_p3 }
  0x28   : > { %p2853_p1 = pneg %p2852_p0 }
  0x2a   : > { %p2860_p7 = pnand %p2859_p4, %p2853_p1 }
  0x2c   : > { %2863 = shalt.err (!%p2860_p7)
}
  0x2d   : > { %2684 = dma.hbm_to_vmem [thread:$0]  (!%p3185_p12), %s3635_s6, 256, %s353_s15, [#allocation9], %s3645_s30, %s3645_s30, %s3050_s14  }
  0x2e   : > { %s2875_s26 = scalar_lea.vmem %s314_s22, 128  ;;  %p2883_p9 = scmp.lt.s32.totalorder %s314_s22, %s314_s22 }
  0x2f   : > { %p2876_p8 = scmp.ne.s32.totalorder %s314_s22, %s2875_s26  ;;  %p2884_p3 = scmp.lt.s32.totalorder %s2875_s26, %s2875_s26 }
  0x31   : > { %p2878_p11 = pnand %p2876_p8, %p3191_p13  ;;  %p2885_p1 = por %p2884_p3, %p2883_p9 }
  0x33   : > { %p2879_p0 = pneg %p2878_p11 }
  0x35   : > { %p2886_p2 = pnand %p2885_p1, %p2879_p0 }
  0x37   : > { %2889 = shalt.err (!%p2886_p2)
}
  0x38   : > { %2675 = dma.hbm_to_vmem [thread:$0]  (!%p3185_p12), %s3631_s2, 128, %s314_s22, [#allocation3]  }
  0x39   : > { %s3051_s23 = smov [#allocation7]   ;;  %s3052_s16 = smov [#allocation10]  }
  0x3a   : > { %s339_s15 = sshll.u32 %s3051_s23, 4  ;;  %s365_s25 = sshll.u32 %s3052_s16, 4  ;;  %s340_s15 = int_to_ptr.vmem [resolvable:$true] %s339_s15  ;;  %s366_s25 = int_to_ptr.vmem [resolvable:$true] %s365_s25 }
  0x3b   : > { %s2901_s30 = scalar_lea.vmem %s340_s15, 256  ;;  %p2909_p9 = scmp.lt.s32.totalorder %s340_s15, %s340_s15 }
  0x3c   : > { %p2902_p4 = scmp.ne.s32.totalorder %s340_s15, %s2901_s30  ;;  %p2910_p11 = scmp.lt.s32.totalorder %s2901_s30, %s2901_s30 }
  0x3e   : > { %p2904_p7 = pnand %p2902_p4, %p3191_p13  ;;  %p2911_p0 = por %p2910_p11, %p2909_p9 }
  0x40   : > { %p2905_p8 = pneg %p2904_p7 }
  0x42   : > { %p2912_p3 = pnand %p2911_p0, %p2905_p8 }
  0x44   : > { %2915 = shalt.err (!%p2912_p3)
}
  0x45   : > { %s3655_s26 = smov 64   ;;  %s2927_s12 = scalar_lea.vmem %s366_s25, 256 }
  0x46   : > { %2681 = dma.hbm_to_vmem [thread:$0]  (!%p3185_p12), %s3634_s5, 256, %s340_s15, [#allocation6], %s3655_s26, %s3655_s26, %s3050_s14  }
  0x47   : > { %p2928_p1 = scmp.ne.s32.totalorder %s366_s25, %s2927_s12  ;;  %p2935_p7 = scmp.lt.s32.totalorder %s366_s25, %s366_s25 }
  0x48   : > { %p2936_p9 = scmp.lt.s32.totalorder %s2927_s12, %s2927_s12 }
  0x49   : > { %p2930_p2 = pnand %p2928_p1, %p3191_p13 }
  0x4a   : > { %p2937_p8 = por %p2936_p9, %p2935_p7 }
  0x4b   : > { %p2931_p4 = pneg %p2930_p2 }
  0x4d   : > { %p2938_p11 = pnand %p2937_p8, %p2931_p4 }
  0x4f   : > { %2941 = shalt.err (!%p2938_p11)
}
  0x50   : > { %2687 = dma.hbm_to_vmem [thread:$0]  (!%p3185_p12), %s3636_s7, 256, %s366_s25, [#allocation9], %s3655_s26, %s3655_s26, %s3050_s14  }
  0x51   : > { %s3053_s15 = smov [#allocation11]  }
  0x52   : > { %s378_s16 = sshll.u32 %s3053_s15, 4  ;;  %s379_s16 = int_to_ptr.vmem [resolvable:$true] %s378_s16 }
  0x53   : > { %s2953_s22 = scalar_lea.vmem %s379_s16, 256  ;;  %p2961_p2 = scmp.lt.s32.totalorder %s379_s16, %s379_s16 }
  0x54   : > { %p2954_p0 = scmp.ne.s32.totalorder %s379_s16, %s2953_s22  ;;  %p2962_p4 = scmp.lt.s32.totalorder %s2953_s22, %s2953_s22 }
  0x56   : > { %p2956_p3 = pnand %p2954_p0, %p3191_p13  ;;  %p2963_p7 = por %p2962_p4, %p2961_p2 }
  0x58   : > { %p2957_p1 = pneg %p2956_p3 }
  0x5a   : > { %p2964_p9 = pnand %p2963_p7, %p2957_p1 }
  0x5c   : > { %2967 = shalt.err (!%p2964_p9)
}
  0x5d   : > { %2690 = dma.hbm_to_vmem [thread:$0]  (!%p3185_p12), %s3637_s8, 256, %s379_s16, [#allocation12], %s3655_s26, %s3655_s26, %s3050_s14  }
  0x5e   : > { %414 = sbr.rel (%p3177_p10) target bundleno = 6355 (0x18d3), region = 64  ;;  %p3656_p13 = scmp.eq.s32.totalorder (!%p3177_p10), %s3149_s21, 0 }
  0x63   : > { %3011 = dma.done.wait (%p3656_p13), [#allocation3], 128   ;;  %p3657_p8 = pmov %p3656_p13 }
  0x65   : > { %3013 = vsyncadd (%p3657_p8), [#allocation3], 4294967168  ;;  %p3658_p11 = pmov %p3657_p8 }
  0x66   : > { %p3659_p0 = pmov %p3657_p8 }
  0x67   : > { %3015 = dma.done.wait (%p3658_p11), [#allocation6], 512  }
  0x68   : > { %3017 = vsyncadd (%p3659_p0), [#allocation6], 4294966784  ;;  %p3660_p3 = pmov %p3659_p0 }
  0x69   : > { %p3661_p12 = pmov %p3659_p0 }
  0x6a   : > { %3019 = dma.done.wait (%p3660_p3), [#allocation9], 512  }
  0x6b   : > { %3021 = vsyncadd (%p3661_p12), [#allocation9], 4294966784  ;;  %p3662_p10 = pmov %p3659_p0 }
  0x6c   : > { %p3663_p1 = pmov %p3659_p0 }
  0x6d   : > { %3023 = dma.done.wait (%p3662_p10), [#allocation12], 256  }
  0x6e   : > { %3025 = vsyncadd (%p3663_p1), [#allocation12], 4294967040  ;;  %p477_p2 = scmp.lt.s32.totalorder %s3149_s21, 1  ;;  %v3054_v0 = vmov 0.0   ;;  %vm3055_vm0 = vmmov 0   ;;  %v2761_v1 = vld [vmem:[%s3632_s3 + $0x8] sm:$0xff]   ;;  %v496_v5 = vlaneseq }
  0x6f   : > { %2458 = vmatprep.subr.bf16.mxu1 %v3054_v0  ;;  %2462 = vmatprep.mubr.msk.bf16.mxu1 %vm3055_vm0, %v3054_v0  ;;  %v2762_v2 = vld [vmem:[%s3632_s3] sm:$0xff]   ;;  %vm512_vm1 = vcmask 261120   ;;  %s3056_s19 = smov 120   ;;  %s3057_s25 = smov 96   ;;  %vm564_vm2 = vcmask 64512   ;;  %vm628_vm3 = vcmask 1043456  }
  0x70   : > { %s3275_s29 = scalar_select %p477_p2, %s3149_s21, 1  ;;  %2472 = vmatprep.subr.bf16.mxu0 %v3054_v0  ;;  %2474 = vmatprep.mubr.msk.bf16.mxu0 %vm3055_vm0, %v3054_v0  ;;  %v3301_v6 = vshrl.u32 %v496_v5, 7  ;;  %v3307_v8 = vld [vmem:[%s3639_s10] sm:$0xff]  ;;  %v557_v56 = vld [vmem:[#allocation5] sm:$0xf]  ;;  %vm2115_vm4 = vcmask 523264  }
  0x71   : > { %2459 = vmatpush3.bf16.msra.mxu1 %v2761_v1  ;;  %s3058_s24 = smov 88   ;;  %v3331_v21 = vld [vmem:[#allocation2] sm:$0xff]  ;;  %s3059_s14 = smov 64   ;;  %v834_v57 = vsel %vm628_vm3, %v557_v56, 0  ;;  %v558_v58 = vld [vmem:[#allocation5 + $0x4] sm:$0xf] }
  0x72   : > { %s2346_s13 = sshll.u32 %s3275_s29, 3  ;;  %2460 = vmatprep.subr.bf16.mxu1 %v3054_v0  ;;  %v498_v7 = vsub.s32 0, %v3301_v6  ;;  %s3061_s12 = smov 112   ;;  %v788_v59 = vsel %vm628_vm3, %v558_v58, 0 }
  0x73   : > { %s480_s26 = scalar_lea.vmem %s3629_s0, %s2346_s13  ;;  %s3062_s30 = smov 80  }
  0x74   : > { %v3292_v3 = vld [vmem:[%s480_s26] sm:$0xff]  ;;  %v499_v9 = vrot.slane %v3307_v8, %v498_v7  ;;  %s3060_s26 = smov 56   ;;  %s3063_s23 = smov 72  }
  0x75   : > { %v495_v4 = vpack.c.bf16 %v3292_v3, %v3292_v3  ;;  %2461 = vmatpush3.bf16.msra.mxu1 %v2762_v2  ;;  %s3064_s15 = smov 104   ;;  %s3065_s16 = smov 48  }
  0x76   : > { %2466 = vmatprep.subr.bf16.mxu1 %v3054_v0  ;;  %s3066_s22 = smov 40  }
  0x78   : > { %2463 = vmatmul.mubr.msk.bf16.vlgmr.msra.gmra.mxu1 %vm512_vm1, %v495_v4 }
  0x79   : > { %2468 = vmatprep.mubr.msk.bf16.mxu1 %vm3055_vm0, %v3054_v0 }
 0x138   : > { %v550_v10 = vpop.f32.mrf.mxu1 }
 0x139   : > { %v551_v11 = vadd.f32 %v550_v10, %v499_v9 }
 0x13a   : > { %v2464_v12 = vpop.f32.mrf.mxu1 }
 0x13b   : > { %v3312_v13 = vpack.c.bf16 %v551_v11, %v551_v11 }
 0x13c   : > { %v553_v14 = vpop.f32.mrf.mxu1 }
 0x13d   : > { %673 = vrot.lane.b32.xlu1 %v3312_v13, %s3056_s19  ;;  %562 = vrot.lane.b32.xlu0 %v3312_v13, %s3057_s25 }
 0x13e   : > { %v2465_v15 = vpop.f32.mrf.mxu1 }
 0x141   : > { %675 = vrot.lane.b32.xlu0 %v3312_v13, %s3058_s24 }
 0x1af   : > { %v563_v16 = vpop.permute.xlu0 %562  ;;  %v674_v20 = vpop.permute.xlu1 %673 }
 0x1b0   : > { %v569_v17 = vsel %vm564_vm2, %v563_v16, 0 }
 0x1b1   : > { %2467 = vmatpush3.bf16.xpose.msra.mxu1 %v569_v17 }
 0x1b2   : > { %2478 = vmatprep.subr.bf16.mxu1 %v3054_v0 }
 0x1b3   : > { %v676_v18 = vpop.permute.xlu0 %675 }
 0x1b4   : > { %v681_v19 = vsel %vm564_vm2, %v676_v18, 0 }
 0x1b8   : > { %2469 = vmatmul.mubr.msk.bf16.vlgmr.msra.gmra.mxu1 %vm564_vm2, %v3312_v13 }
 0x1b9   : > { %2479 = vmatpush3.bf16.xpose.msra.mxu1 %v681_v19  ;;  %2480 = vmatprep.mubr.msk.bf16.mxu1 %vm3055_vm0, %v3054_v0 }
 0x1ba   : > { %2490 = vmatprep.subr.bf16.mxu1 %v3054_v0 }
 0x1c0   : > { %2481 = vmatmul.mubr.msk.bf16.vlgmr.msra.gmra.mxu1 %vm564_vm2, %v674_v20 }
 0x1c1   : > { %2492 = vmatprep.mubr.msk.bf16.mxu1 %vm3055_vm0, %v3054_v0  ;;  %2491 = vmatpush3.bf16.msra.mxu1 %v788_v59 }
 0x1c2   : > { %2502 = vmatprep.subr.bf16.mxu1 %v3054_v0 }
 0x278   : > { %v605_v22 = vpop.f32.mrf.mxu1 }
 0x279   : > { %v606_v23 = vadd.f32 %v605_v22, %v3331_v21 }
 0x27a   : > { %v2470_v24 = vpop.f32.mrf.mxu1 }
 0x27b   : > { %v611_v25 = vsel %vm564_vm2, %v606_v23, -inf }
 0x27c   : > { %612 = vmax.xlane.f32.xlu1 %v611_v25  ;;  %v608_v26 = vpop.f32.mrf.mxu1 }
 0x27e   : > { %v2471_v27 = vpop.f32.mrf.mxu1 }
 0x280   : > { %v717_v28 = vpop.f32.mrf.mxu1 }
 0x281   : > { %v718_v29 = vadd.f32 %v717_v28, %v3331_v21 }
 0x282   : > { %v2482_v30 = vpop.f32.mrf.mxu1 }
 0x283   : > { %v723_v31 = vsel %vm564_vm2, %v718_v29, -inf }
 0x284   : > { %724 = vmax.xlane.f32.xlu0 %v723_v31  ;;  %v720_v32 = vpop.f32.mrf.mxu1 }
 0x286   : > { %v2483_v33 = vpop.f32.mrf.mxu1 }
 0x305   : > { %v613_v34 = vpop.xlane.xlu1 %612 }
 0x306   : > { %v614_v35 = vsub.f32 %v606_v23, %v613_v34 }
 0x308   : > { %v615_v36 = vmul.f32 1.442695, %v614_v35 }
 0x30a   : > { %2773 = vpow2.f32 %v615_v36 }
 0x30d   : > { %v725_v37 = vpop.xlane.xlu0 %724 }
 0x30e   : > { %v726_v38 = vsub.f32 %v718_v29, %v725_v37 }
 0x310   : > { %v727_v39 = vmul.f32 1.442695, %v726_v38 }
 0x312   : > { %2775 = vpow2.f32 %v727_v39 }
 0x317   : > { %v2774_v40 = vpop.eup %2773 }
 0x318   : > { %v617_v41 = vsel %vm564_vm2, %v2774_v40, 0.0 }
 0x319   : > { %618 = vadd.xlane.f32.xlu0 %v617_v41 }
 0x31f   : > { %v2776_v42 = vpop.eup %2775 }
 0x320   : > { %v729_v43 = vsel %vm564_vm2, %v2776_v42, 0.0 }
 0x321   : > { %730 = vadd.xlane.f32.xlu1 %v729_v43 }
 0x32f   : > { %623 = vrot.lane.b32.xlu0 %v3312_v13, %s3059_s14 }
 0x332   : > { %735 = vrot.lane.b32.xlu1 %v3312_v13, %s3060_s26 }
 0x333   : > { %876 = vrot.lane.b32.xlu0 %v3312_v13, %s3061_s12 }
 0x336   : > { %878 = vrot.lane.b32.xlu1 %v3312_v13, %s3062_s30 }
 0x3a2   : > { %v619_v44 = vpop.xlane.xlu0 %618 }
 0x3a3   : > { %2777 = vrcp.f32 %v619_v44 }
 0x3a6   : > { %v624_v45 = vpop.permute.xlu0 %623 }
 0x3a7   : > { %v630_v46 = vsel %vm628_vm3, %v624_v45, 0  ;;  %v559_v45 = vld [vmem:[#allocation5 + $0x8] sm:$0xf] }
 0x3a8   : > { %2473 = vmatpush3.bf16.msra.mxu0 %v630_v46  ;;  %v991_v46 = vsel %vm628_vm3, %v559_v45, 0  ;;  %v1214_v45 = vsub.s32 7, %v3301_v6 }
 0x3a9   : > { %2484 = vmatprep.subr.bf16.mxu0 %v3054_v0 }
 0x3aa   : > { %v731_v47 = vpop.xlane.xlu1 %730  ;;  %v877_v14 = vpop.permute.xlu0 %876 }
 0x3ab   : > { %2779 = vrcp.f32 %v731_v47 }
 0x3ae   : > { %v736_v50 = vpop.permute.xlu1 %735 }
 0x3af   : > { %v741_v52 = vsel %vm628_vm3, %v736_v50, 0 }
 0x3b0   : > { %v2778_v48 = vpop.eup %2777 }
 0x3b1   : > { %v621_v49 = vmul.f32 %v2778_v48, %v2774_v40 }
 0x3b2   : > { %v879_v2 = vpop.permute.xlu1 %878 }
 0x3b3   : > { %v622_v51 = vpack.c.bf16 %v621_v49, %v621_v49  ;;  %v884_v10 = vsel %vm564_vm2, %v879_v2, 0 }
 0x3b5   : > { %2475 = vmatmul.mubr.msk.bf16.vlgmr.msra.gmra.mxu0 %vm564_vm2, %v622_v51 }
 0x3b6   : > { %2485 = vmatpush3.bf16.msra.mxu0 %v741_v52  ;;  %2486 = vmatprep.mubr.msk.bf16.mxu0 %vm3055_vm0, %v3054_v0 }
 0x3b7   : > { %2496 = vmatprep.subr.bf16.mxu0 %v3054_v0 }
 0x3b8   : > { %v2780_v53 = vpop.eup %2779 }
 0x3b9   : > { %v733_v54 = vmul.f32 %v2780_v53, %v2776_v42 }
 0x3bb   : > { %v734_v55 = vpack.c.bf16 %v733_v54, %v733_v54 }
 0x3bd   : > { %2487 = vmatmul.mubr.msk.bf16.vlgmr.msra.gmra.mxu0 %vm564_vm2, %v734_v55 }
 0x3be   : > { %2498 = vmatprep.mubr.msk.bf16.mxu0 %vm3055_vm0, %v3054_v0  ;;  %2497 = vmatpush3.bf16.msra.mxu0 %v834_v57 }
 0x3bf   : > { %2508 = vmatprep.subr.bf16.mxu0 %v3054_v0 }
 0x475   : > { %v666_v60 = vpop.f32.mrf.mxu0 }
 0x476   : > { %v672_v61 = vpack.c.bf16 %v666_v60, %v666_v60 }
 0x477   : > { %v2476_v62 = vpop.f32.mrf.mxu0 }
 0x478   : > { %2499 = vmatmul.mubr.msk.bf16.vlgmr.msra.gmra.mxu0 %vm564_vm2, %v672_v61 }
 0x479   : > { %v669_v63 = vpop.f32.mrf.mxu0  ;;  %2510 = vmatprep.mubr.msk.bf16.mxu0 %vm3055_vm0, %v3054_v0 }
 0x47b   : > { %v2477_v1 = vpop.f32.mrf.mxu0 }
 0x47d   : > { %v777_v4 = vpop.f32.mrf.mxu0 }
 0x47e   : > { %v783_v5 = vpack.c.bf16 %v777_v4, %v777_v4 }
 0x47f   : > { %v2488_v9 = vpop.f32.mrf.mxu0 }
 0x480   : > { %2493 = vmatmul.mubr.msk.bf16.vlgmr.msra.gmra.mxu1 %vm564_vm2, %v783_v5  ;;  %v560_v5 = vld [vmem:[#allocation5 + $0xc] sm:$0xf] }
 0x481   : > { %2503 = vmatpush3.bf16.xpose.msra.mxu1 %v884_v10  ;;  %v780_v11 = vpop.f32.mrf.mxu0  ;;  %2504 = vmatprep.mubr.msk.bf16.mxu1 %vm3055_vm0, %v3054_v0 }
 0x482   : > { %2514 = vmatprep.subr.bf16.mxu1 %v3054_v0 }
 0x483   : > { %v2489_v12 = vpop.f32.mrf.mxu0 }
 0x488   : > { %2505 = vmatmul.mubr.msk.bf16.vlgmr.msra.gmra.mxu1 %vm564_vm2, %v877_v14 }
 0x489   : > { %2516 = vmatprep.mubr.msk.bf16.mxu1 %vm3055_vm0, %v3054_v0  ;;  %2515 = vmatpush3.bf16.msra.mxu1 %v991_v46  ;;  %v3433_v46 = vld [vmem:[%s3639_s10 + $0x8] sm:$0xff] }
 0x48a   : > { %2526 = vmatprep.subr.bf16.mxu1 %v3054_v0 }
 0x538   : > { %v870_v15 = vpop.f32.mrf.mxu0 }
 0x53a   : > { %v2500_v16 = vpop.f32.mrf.mxu0 }
 0x53c   : > { %v873_v17 = vpop.f32.mrf.mxu0 }
 0x53e   : > { %v2501_v18 = vpop.f32.mrf.mxu0 }
 0x540   : > { %v824_v19 = vpop.f32.mrf.mxu1 }
 0x541   : > { %v3370_v20 = vadd.f32 %v870_v15, %v824_v19 }
 0x542   : > { %v2494_v22 = vpop.f32.mrf.mxu1 }
 0x543   : > { %v1194_v22 = vsub.s32 1, %v3301_v6 }
 0x544   : > { %v827_v23 = vpop.f32.mrf.mxu1 }
 0x545   : > { %v1195_v23 = vrot.slane %v3307_v8, %v1194_v22 }
 0x546   : > { %v2495_v24 = vpop.f32.mrf.mxu1 }
 0x548   : > { %v920_v25 = vpop.f32.mrf.mxu1 }
 0x549   : > { %v921_v26 = vadd.f32 %v920_v25, %v3331_v21 }
 0x54a   : > { %v2506_v27 = vpop.f32.mrf.mxu1 }
 0x54b   : > { %v926_v28 = vsel %vm564_vm2, %v921_v26, -inf }
 0x54c   : > { %927 = vmax.xlane.f32.xlu1 %v926_v28  ;;  %v923_v29 = vpop.f32.mrf.mxu1 }
 0x54e   : > { %v2507_v30 = vpop.f32.mrf.mxu1 }
 0x55d   : > { %1036 = vrot.lane.b32.xlu1 %v3312_v13, %s3063_s23 }
 0x561   : > { %1034 = vrot.lane.b32.xlu1 %v3312_v13, %s3064_s15 }
 0x5d5   : > { %v928_v31 = vpop.xlane.xlu1 %927 }
 0x5d6   : > { %v929_v32 = vsub.f32 %v921_v26, %v928_v31 }
 0x5d8   : > { %v930_v33 = vmul.f32 1.442695, %v929_v32 }
 0x5d9   : > { %v1037_v41 = vpop.permute.xlu1 %1036 }
 0x5da   : > { %2781 = vpow2.f32 %v930_v33  ;;  %v1042_v43 = vsel %vm564_vm2, %v1037_v41, 0  ;;  %v2766_v41 = vld [vmem:[#allocation7] sm:$0xff]  }
 0x5dd   : > { %v1035_v44 = vpop.permute.xlu1 %1034 }
 0x5e7   : > { %v2782_v34 = vpop.eup %2781 }
 0x5e8   : > { %v932_v35 = vsel %vm564_vm2, %v2782_v34, 0.0 }
 0x5e9   : > { %933 = vadd.xlane.f32.xlu0 %v932_v35 }
 0x5ff   : > { %938 = vrot.lane.b32.xlu0 %v3312_v13, %s3065_s16  ;;  %s484_s16 = scalar_lea.vmem %s3630_s1, %s2346_s13  ;;  %s2390_s13 = sshll.u32 %s3149_s21, 7 }
 0x672   : > { %v934_v36 = vpop.xlane.xlu0 %933 }
 0x673   : > { %2783 = vrcp.f32 %v934_v36 }
 0x676   : > { %v939_v37 = vpop.permute.xlu0 %938 }
 0x677   : > { %v944_v38 = vsel %vm628_vm3, %v939_v37, 0  ;;  %v2763_v37 = vld [vmem:[#allocation8 + $0x8] sm:$0xff]  }
 0x678   : > { %2509 = vmatpush3.bf16.msra.mxu0 %v944_v38  ;;  %v489_v38 = vld [vmem:[%s484_s16] sm:$0xff]  ;;  %s474_s16 = sand.u32 1, %s3036_s18  }
 0x679   : > { %2520 = vmatprep.subr.bf16.mxu0 %v3054_v0  ;;  %s2345_s29 = sshll.u32 %s474_s16, 3 }
 0x680   : > { %v2784_v39 = vpop.eup %2783 }
 0x681   : > { %v936_v40 = vmul.f32 %v2784_v39, %v2782_v34  ;;  %v1291_v39 = vpack.c.bf16 %v489_v38, %v489_v38 }
 0x683   : > { %v937_v42 = vpack.c.bf16 %v936_v40, %v936_v40  ;;  %v2765_v40 = vld [vmem:[#allocation7 + $0x8] sm:$0xff]  }
 0x685   : > { %2511 = vmatmul.mubr.msk.bf16.vlgmr.msra.gmra.mxu0 %vm564_vm2, %v937_v42 }
 0x686   : > { %2521 = vmatpush3.bf16.xpose.msra.mxu0 %v1042_v43  ;;  %2522 = vmatprep.mubr.msk.bf16.mxu0 %vm3055_vm0, %v3054_v0 }
 0x687   : > { %2532 = vmatprep.subr.bf16.mxu0 %v3054_v0 }
 0x68d   : > { %2523 = vmatmul.mubr.msk.bf16.vlgmr.msra.gmra.mxu0 %vm564_vm2, %v1035_v44 }
 0x68e   : > { %2534 = vmatprep.mubr.msk.bf16.mxu0 %vm3055_vm0, %v3054_v0 }
 0x745   : > { %v980_v47 = vpop.f32.mrf.mxu0 }
 0x746   : > { %v986_v48 = vpack.c.bf16 %v980_v47, %v980_v47  ;;  %v1215_v47 = vrot.slane %v3307_v8, %v1214_v45 }
 0x747   : > { %v2512_v49 = vpop.f32.mrf.mxu0 }
 0x748   : > { %2517 = vmatmul.mubr.msk.bf16.vlgmr.msra.gmra.mxu1 %vm564_vm2, %v986_v48  ;;  %v1220_v49 = vrot.slane %v3433_v46, %v498_v7 }
 0x749   : > { %v983_v50 = vpop.f32.mrf.mxu0  ;;  %2528 = vmatprep.mubr.msk.bf16.mxu1 %vm3055_vm0, %v3054_v0 }
 0x74b   : > { %v2513_v51 = vpop.f32.mrf.mxu0 }
 0x74d   : > { %v1078_v52 = vpop.f32.mrf.mxu0 }
 0x74e   : > { %v1079_v53 = vadd.f32 %v1078_v52, %v3331_v21 }
 0x74f   : > { %v2524_v54 = vpop.f32.mrf.mxu0 }
 0x750   : > { %v1084_v55 = vsel %vm564_vm2, %v1079_v53, -inf  ;;  %v1294_v54 = vsub.s32 3, %v3301_v6 }
 0x751   : > { %1085 = vmax.xlane.f32.xlu0 %v1084_v55  ;;  %v1081_v56 = vpop.f32.mrf.mxu0 }
 0x752   : > { %v1295_v55 = vrot.slane %v3307_v8, %v1294_v54 }
 0x753   : > { %v2525_v57 = vpop.f32.mrf.mxu0 }
 0x767   : > { %1096 = vrot.lane.b32.xlu0 %v3312_v13, %s3066_s22  ;;  %v1149_v13 = vsel %vm628_vm3, %v560_v5, 0  ;;  %s3067_s22 = smov [#allocation13]  }
 0x768   : > { %2533 = vmatpush3.bf16.msra.mxu0 %v1149_v13  ;;  %s2972_s14 = sshll.u32 %s3067_s22, 4  ;;  %s2973_s14 = int_to_ptr.vmem [resolvable:$false] %s2972_s14 }
 0x769   : > { %2546 = vmatprep.subr.bf16.mxu0 %v3054_v0  ;;  %s2974_s21 = scalar_lea.vmem %s2973_s14, 256 }
 0x7da   : > { %v1086_v58 = vpop.xlane.xlu0 %1085 }
 0x7db   : > { %v1087_v59 = vsub.f32 %v1079_v53, %v1086_v58 }
 0x7dd   : > { %v1088_v60 = vmul.f32 1.442695, %v1087_v59 }
 0x7de   : > { %v1097_v61 = vpop.permute.xlu0 %1096 }
 0x7df   : > { %2785 = vpow2.f32 %v1088_v60  ;;  %v1102_v62 = vsel %vm628_vm3, %v1097_v61, 0 }
 0x7e0   : > { %2527 = vmatpush3.bf16.msra.mxu1 %v1102_v62  ;;  %v1229_v62 = vsub.s32 2, %v3301_v6 }
 0x7e1   : > { %2538 = vmatprep.subr.bf16.mxu1 %v3054_v0 }
 0x7ec   : > { %v2786_v21 = vpop.eup %2785 }
 0x7ed   : > { %v1090_v63 = vsel %vm564_vm2, %v2786_v21, 0.0 }
 0x7ee   : > { %1091 = vadd.xlane.f32.xlu1 %v1090_v63 }
 0x808   : > { %v1027_v1 = vpop.f32.mrf.mxu1 }
 0x809   : > { %v1033_v2 = vadd.f32 %v1027_v1, %v3370_v20 }
 0x80a   : > { %v2518_v4 = vpop.f32.mrf.mxu1 }
 0x80c   : > { %v1030_v9 = vpop.f32.mrf.mxu1 }
 0x80e   : > { %v2519_v10 = vpop.f32.mrf.mxu1 }
 0x877   : > { %v1092_v11 = vpop.xlane.xlu1 %1091 }
 0x878   : > { %2787 = vrcp.f32 %v1092_v11 }
 0x885   : > { %v2788_v12 = vpop.eup %2787 }
 0x886   : > { %v1094_v14 = vmul.f32 %v2788_v12, %v2786_v21  ;;  %v1230_v21 = vrot.slane %v3307_v8, %v1229_v62 }
 0x888   : > { %v1095_v15 = vpack.c.bf16 %v1094_v14, %v1094_v14 }
 0x88a   : > { %2529 = vmatmul.mubr.msk.bf16.vlgmr.msra.gmra.mxu1 %vm564_vm2, %v1095_v15 }
 0x88b   : > { %2542 = vmatprep.mubr.msk.bf16.mxu1 %vm3055_vm0, %v3054_v0  ;;  %2539 = vmatpush3.bf16.msra.mxu1 %v2765_v40 }
 0x88c   : > { %2540 = vmatprep.subr.bf16.mxu1 %v3054_v0 }
 0x88f   : > { %2541 = vmatpush3.bf16.msra.mxu1 %v2766_v41 }
 0x890   : > { %2554 = vmatprep.subr.bf16.mxu1 %v3054_v0 }
 0x94a   : > { %v1138_v16 = vpop.f32.mrf.mxu1 }
 0x94b   : > { %v1144_v17 = vpack.c.bf16 %v1138_v16, %v1138_v16 }
 0x94c   : > { %v2530_v18 = vpop.f32.mrf.mxu1 }
 0x94d   : > { %2535 = vmatmul.mubr.msk.bf16.vlgmr.msra.gmra.mxu0 %vm564_vm2, %v1144_v17 }
 0x94e   : > { %v1141_v19 = vpop.f32.mrf.mxu1  ;;  %2550 = vmatprep.mubr.msk.bf16.mxu0 %vm3055_vm0, %v3054_v0  ;;  %2547 = vmatpush3.bf16.msra.mxu0 %v2763_v37 }
 0x94f   : > { %2548 = vmatprep.subr.bf16.mxu0 %v3054_v0 }
 0x950   : > { %v2531_v20 = vpop.f32.mrf.mxu1 }
 0xa0d   : > { %v1185_v24 = vpop.f32.mrf.mxu0 }
 0xa0e   : > { %v1191_v25 = vadd.f32 %v1185_v24, %v1033_v2 }
 0xa0f   : > { %v2536_v26 = vpop.f32.mrf.mxu0 }
 0xa10   : > { %v1196_v27 = vadd.f32 %v1195_v23, %v1191_v25 }
 0xa11   : > { %v1188_v28 = vpop.f32.mrf.mxu0 }
 0xa12   : > { %v1197_v29 = vadd.f32 %v1196_v27, %v3292_v3  ;;  %v2764_v3 = vld [vmem:[#allocation8] sm:$0xff]  }
 0xa13   : > { %v2537_v30 = vpop.f32.mrf.mxu0  ;;  %2549 = vmatpush3.bf16.msra.mxu0 %v2764_v3 }
 0xa14   : > { %v1198_v31 = vsel %vm512_vm1, %v1197_v29, 0.0  ;;  %2560 = vmatprep.subr.bf16.mxu0 %v3054_v0 }
 0xa15   : > { %1199 = vadd.xlane.f32.xlu1 %v1198_v31 }
 0xa16   : > { %2551 = vmatmul.mubr.msk.bf16.vlgmr.msra.gmra.mxu0 %vm512_vm1, %v1291_v39 }
 0xa17   : > { %2562 = vmatprep.mubr.msk.bf16.mxu0 %vm3055_vm0, %v3054_v0 }
 0xa9e   : > { %v1200_v32 = vpop.xlane.xlu1 %1199 }
 0xa9f   : > { %v1202_v33 = vmul.f32 0.03125, %v1200_v32 }
 0xaa1   : > { %v1203_v34 = vsub.f32 %v1197_v29, %v1202_v33 }
 0xaa3   : > { %v1204_v35 = vmul.f32 %v1203_v34, %v1203_v34 }
 0xaa5   : > { %v1205_v36 = vsel %vm512_vm1, %v1204_v35, 0.0 }
 0xaa6   : > { %1206 = vadd.xlane.f32.xlu1 %v1205_v36 }
 0xad6   : > { %v1345_v56 = vpop.f32.mrf.mxu0 }
 0xad7   : > { %v1346_v7 = vadd.f32 %v1345_v56, %v1295_v55 }
 0xad8   : > { %v2552_v57 = vpop.f32.mrf.mxu0 }
 0xad9   : > { %v3450_v58 = vpack.c.bf16 %v1346_v7, %v1346_v7 }
 0xada   : > { %v1348_v59 = vpop.f32.mrf.mxu0 }
 0xadb   : > { %1467 = vrot.lane.b32.xlu1 %v3450_v58, %s3056_s19  ;;  %v1360_v60 = vsel %vm564_vm2, %v3450_v58, 0 }
 0xadc   : > { %v2553_v61 = vpop.f32.mrf.mxu0 }
 0xb2f   : > { %v1207_v42 = vpop.xlane.xlu1 %1206 }
 0xb30   : > { %v1208_v43 = vmul.f32 0.03125, %v1207_v42 }
 0xb32   : > { %v1209_v44 = vadd.f32 1e-05, %v1208_v43 }
 0xb34   : > { %2789 = vrsqrt.f32 %v1209_v44 }
 0xb41   : > { %v2790_v48 = vpop.eup %2789 }
 0xb42   : > { %v1211_v50 = vmul.f32 %v2790_v48, %v1203_v34 }
 0xb44   : > { %v1216_v51 = vmul.f32 %v1215_v47, %v1211_v50  ;;  %v1352_v47 = vld [vmem:[#allocation10] sm:$0xf] }
 0xb45   : > { %v1626_v48 = vsel %vm628_vm3, %v1352_v47, 0 }
 0xb46   : > { %v3439_v52 = vadd.f32 %v1220_v49, %v1216_v51  ;;  %v1353_v49 = vld [vmem:[#allocation10 + $0x4] sm:$0xf] }
 0xb47   : > { %v1580_v50 = vsel %vm628_vm3, %v1353_v49, 0 }
 0xb48   : > { %v1226_v53 = vpack.c.bf16 %v3439_v52, %v3439_v52 }
 0xb4a   : > { %2543 = vmatmul.mubr.msk.bf16.vlgmr.msra.gmra.mxu1 %vm512_vm1, %v1226_v53 }
 0xb4b   : > { %2556 = vmatprep.mubr.msk.bf16.mxu1 %vm3055_vm0, %v3054_v0  ;;  %2555 = vmatpush3.bf16.xpose.msra.mxu1 %v1360_v60 }
 0xb4c   : > { %2566 = vmatprep.subr.bf16.mxu1 %v3054_v0 }
 0xb4d   : > { %v1468_v1 = vpop.permute.xlu1 %1467 }
 0xb4e   : > { %v1473_v13 = vsel %vm564_vm2, %v1468_v1, 0 }
 0xc0a   : > { %v1280_v63 = vpop.f32.mrf.mxu1 }
 0xc0b   : > { %v1281_v2 = vadd.f32 %v1280_v63, %v1230_v21 }
 0xc0c   : > { %v2544_v4 = vpop.f32.mrf.mxu1 }
 0xc0d   : > { %v3461_v5 = vpack.c.bf16 %v1281_v2, %v1281_v2 }
 0xc0e   : > { %v1283_v9 = vpop.f32.mrf.mxu1 }
 0xc0f   : > { %1465 = vrot.lane.b32.xlu0 %v3461_v5, %s3056_s19  ;;  %2557 = vmatmul.mubr.msk.bf16.vlgmr.msra.gmra.mxu1 %vm564_vm2, %v3461_v5  ;;  %s476_s19 = scalar_lea.vmem [#allocation13], %s2345_s29 }
 0xc10   : > { %v2545_v10 = vpop.f32.mrf.mxu1  ;;  %2567 = vmatpush3.bf16.xpose.msra.mxu1 %v1473_v13  ;;  %2568 = vmatprep.mubr.msk.bf16.mxu1 %vm3055_vm0, %v3054_v0 }
 0xc11   : > { %2578 = vmatprep.subr.bf16.mxu1 %v3054_v0 }
 0xc81   : > { %v1466_v11 = vpop.permute.xlu0 %1465 }
 0xc82   : > { %2569 = vmatmul.mubr.msk.bf16.vlgmr.msra.gmra.mxu1 %vm564_vm2, %v1466_v11 }
 0xc83   : > { %2580 = vmatprep.mubr.msk.bf16.mxu1 %vm3055_vm0, %v3054_v0  ;;  %2579 = vmatpush3.bf16.msra.mxu1 %v1580_v50 }
 0xc84   : > { %2590 = vmatprep.subr.bf16.mxu1 %v3054_v0 }
 0xccf   : > { %v1396_v12 = vpop.f32.mrf.mxu1 }
 0xcd0   : > { %v1402_v14 = vsel %vm564_vm2, %v1396_v12, -inf }
 0xcd1   : > { %1403 = vmax.xlane.f32.xlu0 %v1402_v14  ;;  %v2558_v15 = vpop.f32.mrf.mxu1 }
 0xcd3   : > { %v1399_v16 = vpop.f32.mrf.mxu1 }
 0xcd5   : > { %v2559_v17 = vpop.f32.mrf.mxu1 }
 0xd42   : > { %v1509_v18 = vpop.f32.mrf.mxu1 }
 0xd43   : > { %v1515_v19 = vsel %vm564_vm2, %v1509_v18, -inf }
 0xd44   : > { %1516 = vmax.xlane.f32.xlu1 %v1515_v19  ;;  %v2570_v20 = vpop.f32.mrf.mxu1 }
 0xd46   : > { %v1512_v23 = vpop.f32.mrf.mxu1 }
 0xd48   : > { %v2571_v24 = vpop.f32.mrf.mxu1 }
 0xd55   : > { %1527 = vrot.lane.b32.xlu1 %v3450_v58, %s3058_s24 }
 0xd59   : > { %1670 = vrot.lane.b32.xlu1 %v3450_v58, %s3061_s12 }
 0xd5a   : > { %v1404_v25 = vpop.xlane.xlu0 %1403 }
 0xd5b   : > { %v1405_v26 = vsub.f32 %v1396_v12, %v1404_v25 }
 0xd5d   : > { %v1406_v27 = vmul.f32 1.442695, %v1405_v26 }
 0xd5f   : > { %2791 = vpow2.f32 %v1406_v27 }
 0xd6c   : > { %v2792_v28 = vpop.eup %2791 }
 0xd6d   : > { %v1408_v29 = vsel %vm564_vm2, %v2792_v28, 0.0 }
 0xd6e   : > { %1409 = vadd.xlane.f32.xlu0 %v1408_v29 }
 0xdcd   : > { %v1517_v30 = vpop.xlane.xlu1 %1516 }
 0xdce   : > { %v1518_v31 = vsub.f32 %v1509_v18, %v1517_v30 }
 0xdd0   : > { %v1519_v32 = vmul.f32 1.442695, %v1518_v31 }
 0xdd1   : > { %v1528_v40 = vpop.permute.xlu1 %1527 }
 0xdd2   : > { %2793 = vpow2.f32 %v1519_v32  ;;  %v1533_v42 = vsel %vm628_vm3, %v1528_v40, 0 }
 0xdd5   : > { %v1671_v57 = vpop.permute.xlu1 %1670 }
 0xdd6   : > { %v1676_v21 = vsel %vm564_vm2, %v1671_v57, 0 }
 0xddf   : > { %v2794_v33 = vpop.eup %2793 }
 0xde0   : > { %v1521_v34 = vsel %vm564_vm2, %v2794_v33, 0.0 }
 0xde1   : > { %1522 = vadd.xlane.f32.xlu0 %v1521_v34 }
 0xdf7   : > { %1415 = vrot.lane.b32.xlu0 %v3450_v58, %s3057_s25  ;;  %v1410_v35 = vpop.xlane.xlu0 %1409  ;;  %s2198_s25 = sshll.u32 %s476_s19, 4  ;;  %s2199_s25 = int_to_ptr.vmem [resolvable:$true] %s2198_s25 }
 0xdf8   : > { %2795 = vrcp.f32 %v1410_v35  ;;  %p2975_p13 = scmp.lt.s32.totalorder %s2199_s25, %s2973_s14 }
 0xdfb   : > { %1668 = vrot.lane.b32.xlu0 %v3461_v5, %s3061_s12 }
 0xe05   : > { %v2796_v36 = vpop.eup %2795 }
 0xe06   : > { %v1412_v3 = vmul.f32 %v2796_v36, %v2792_v28 }
 0xe08   : > { %v1413_v41 = vpack.c.bf16 %v1412_v3, %v1412_v3 }
 0xe6a   : > { %v1523_v37 = vpop.xlane.xlu0 %1522 }
 0xe6b   : > { %2797 = vrcp.f32 %v1523_v37  ;;  %v1354_v37 = vld [vmem:[#allocation10 + $0x8] sm:$0xf] }
 0xe6c   : > { %v1783_v3 = vsel %vm628_vm3, %v1354_v37, 0 }
 0xe6e   : > { %v1416_v38 = vpop.permute.xlu0 %1415 }
 0xe6f   : > { %v1421_v39 = vsel %vm628_vm3, %v1416_v38, 0 }
 0xe70   : > { %2561 = vmatpush3.bf16.msra.mxu0 %v1421_v39 }
 0xe71   : > { %2572 = vmatprep.subr.bf16.mxu0 %v3054_v0 }
 0xe72   : > { %v1669_v2 = vpop.permute.xlu0 %1668 }
 0xe73   : > { %2563 = vmatmul.mubr.msk.bf16.vlgmr.msra.gmra.mxu0 %vm564_vm2, %v1413_v41 }
 0xe74   : > { %2573 = vmatpush3.bf16.msra.mxu0 %v1533_v42  ;;  %2574 = vmatprep.mubr.msk.bf16.mxu0 %vm3055_vm0, %v3054_v0 }
 0xe75   : > { %2584 = vmatprep.subr.bf16.mxu0 %v3054_v0 }
 0xe78   : > { %v2798_v43 = vpop.eup %2797 }
 0xe79   : > { %v1525_v44 = vmul.f32 %v2798_v43, %v2794_v33 }
 0xe7b   : > { %v1526_v45 = vpack.c.bf16 %v1525_v44, %v1525_v44 }
 0xe7d   : > { %2575 = vmatmul.mubr.msk.bf16.vlgmr.msra.gmra.mxu0 %vm564_vm2, %v1526_v45 }
 0xe7e   : > { %2586 = vmatprep.mubr.msk.bf16.mxu0 %vm3055_vm0, %v3054_v0  ;;  %2585 = vmatpush3.bf16.msra.mxu0 %v1626_v48 }
 0xe7f   : > { %2596 = vmatprep.subr.bf16.mxu0 %v3054_v0 }
 0xf33   : > { %v1457_v51 = vpop.f32.mrf.mxu0 }
 0xf34   : > { %v1463_v53 = vpack.c.bf16 %v1457_v51, %v1457_v51 }
 0xf35   : > { %v2564_v55 = vpop.f32.mrf.mxu0 }
 0xf36   : > { %2587 = vmatmul.mubr.msk.bf16.vlgmr.msra.gmra.mxu0 %vm564_vm2, %v1463_v53 }
 0xf37   : > { %v1460_v56 = vpop.f32.mrf.mxu0  ;;  %2598 = vmatprep.mubr.msk.bf16.mxu0 %vm3055_vm0, %v3054_v0 }
 0xf39   : > { %v2565_v7 = vpop.f32.mrf.mxu0 }
 0xf3d   : > { %v1569_v59 = vpop.f32.mrf.mxu0 }
 0xf3e   : > { %v1575_v60 = vpack.c.bf16 %v1569_v59, %v1569_v59  ;;  %v1355_v59 = vld [vmem:[#allocation10 + $0xc] sm:$0xf] }
 0xf3f   : > { %v2576_v61 = vpop.f32.mrf.mxu0 }
 0xf40   : > { %2581 = vmatmul.mubr.msk.bf16.vlgmr.msra.gmra.mxu1 %vm564_vm2, %v1575_v60 }
 0xf41   : > { %2591 = vmatpush3.bf16.xpose.msra.mxu1 %v1676_v21  ;;  %v1572_v63 = vpop.f32.mrf.mxu0  ;;  %2592 = vmatprep.mubr.msk.bf16.mxu1 %vm3055_vm0, %v3054_v0 }
 0xf42   : > { %2602 = vmatprep.subr.bf16.mxu1 %v3054_v0 }
 0xf43   : > { %v2577_v1 = vpop.f32.mrf.mxu0 }
 0xf48   : > { %2593 = vmatmul.mubr.msk.bf16.vlgmr.msra.gmra.mxu1 %vm564_vm2, %v1669_v2 }
 0xf49   : > { %2604 = vmatprep.mubr.msk.bf16.mxu1 %vm3055_vm0, %v3054_v0  ;;  %2603 = vmatpush3.bf16.msra.mxu1 %v1783_v3  ;;  %v2011_v3 = vrot.slane %v3433_v46, %v1229_v62  ;;  %v2020_v62 = vsub.s32 5, %v3301_v6 }
 0xf4a   : > { %2614 = vmatprep.subr.bf16.mxu1 %v3054_v0 }
 0xff6   : > { %v1662_v4 = vpop.f32.mrf.mxu0 }
 0xff8   : > { %v2588_v13 = vpop.f32.mrf.mxu0 }
 0xffa   : > { %v1665_v9 = vpop.f32.mrf.mxu0 }
 0xffc   : > { %v2589_v10 = vpop.f32.mrf.mxu0 }
0x1000   : > { %v1616_v11 = vpop.f32.mrf.mxu1 }
0x1001   : > { %v3511_v12 = vadd.f32 %v1662_v4, %v1616_v11 }
0x1002   : > { %v2582_v14 = vpop.f32.mrf.mxu1 }
0x1004   : > { %v1619_v15 = vpop.f32.mrf.mxu1 }
0x1005   : > { %v1986_v15 = vsub.s32 4, %v3301_v6 }
0x1006   : > { %v2583_v16 = vpop.f32.mrf.mxu1 }
0x1007   : > { %v1987_v16 = vrot.slane %v3307_v8, %v1986_v15  ;;  %v2768_v8 = vld [vmem:[#allocation11] sm:$0xff]  }
0x1008   : > { %v1712_v17 = vpop.f32.mrf.mxu1 }
0x1009   : > { %v1718_v18 = vsel %vm564_vm2, %v1712_v17, -inf }
0x100a   : > { %1719 = vmax.xlane.f32.xlu1 %v1718_v18  ;;  %v2594_v19 = vpop.f32.mrf.mxu1 }
0x100c   : > { %v1715_v20 = vpop.f32.mrf.mxu1 }
0x100e   : > { %v2595_v23 = vpop.f32.mrf.mxu1 }
0x101b   : > { %1828 = vrot.lane.b32.xlu1 %v3450_v58, %s3064_s15 }
0x101f   : > { %1826 = vrot.lane.b32.xlu1 %v3461_v5, %s3064_s15  ;;  %s2968_s15 = scalar_lea.vmem %s2199_s25, 128 }
0x1020   : > { %p2969_p4 = scmp.ne.s32.totalorder %s2199_s25, %s2968_s15  ;;  %p2976_p8 = scmp.lt.s32.totalorder %s2974_s21, %s2968_s15 }
0x1022   : > { %p2970_p7 = pnand %p2969_p4, %p3166_p5  ;;  %p2977_p11 = por %p2976_p8, %p2975_p13 }
0x1024   : > { %p2971_p9 = pneg %p2970_p7 }
0x1026   : > { %p2978_p0 = pnand %p2977_p11, %p2971_p9 }
0x1093   : > { %v1720_v24 = vpop.xlane.xlu1 %1719 }
0x1094   : > { %v1721_v25 = vsub.f32 %v1712_v17, %v1720_v24 }
0x1096   : > { %v1722_v26 = vmul.f32 1.442695, %v1721_v25 }
0x1097   : > { %v1829_v33 = vpop.permute.xlu1 %1828 }
0x1098   : > { %2799 = vpow2.f32 %v1722_v26  ;;  %v1834_v35 = vsel %vm564_vm2, %v1829_v33, 0 }
0x109b   : > { %v1827_v36 = vpop.permute.xlu1 %1826 }
0x10a5   : > { %v2800_v27 = vpop.eup %2799 }
0x10a6   : > { %v1724_v28 = vsel %vm564_vm2, %v2800_v27, 0.0 }
0x10a7   : > { %1725 = vadd.xlane.f32.xlu0 %v1724_v28 }
0x10bd   : > { %1730 = vrot.lane.b32.xlu0 %v3450_v58, %s3062_s30  ;;  %s2196_s30 = scalar_lea.hbm %s3640_s11, %s2390_s13 }
0x1130   : > { %v1726_v29 = vpop.xlane.xlu0 %1725 }
0x1131   : > { %2801 = vrcp.f32 %v1726_v29 }
0x1134   : > { %v1731_v30 = vpop.permute.xlu0 %1730 }
0x1135   : > { %v1736_v31 = vsel %vm628_vm3, %v1731_v30, 0 }
0x1136   : > { %2597 = vmatpush3.bf16.msra.mxu0 %v1736_v31 }
0x1137   : > { %2608 = vmatprep.subr.bf16.mxu0 %v3054_v0 }
0x113e   : > { %v2802_v5 = vpop.eup %2801 }
0x113f   : > { %v1728_v32 = vmul.f32 %v2802_v5, %v2800_v27  ;;  %v2767_v5 = vld [vmem:[#allocation11 + $0x8] sm:$0xff]  }
0x1141   : > { %v1729_v34 = vpack.c.bf16 %v1728_v32, %v1728_v32  ;;  %v2770_v32 = vld [vmem:[%s3638_s9 + $0x10] sm:$0xff]  }
0x1143   : > { %2599 = vmatmul.mubr.msk.bf16.vlgmr.msra.gmra.mxu0 %vm564_vm2, %v1729_v34 }
0x1144   : > { %2609 = vmatpush3.bf16.xpose.msra.mxu0 %v1834_v35  ;;  %2610 = vmatprep.mubr.msk.bf16.mxu0 %vm3055_vm0, %v3054_v0 }
0x1145   : > { %2620 = vmatprep.subr.bf16.mxu0 %v3054_v0 }
0x114b   : > { %2611 = vmatmul.mubr.msk.bf16.vlgmr.msra.gmra.mxu0 %vm564_vm2, %v1827_v36  ;;  %v2006_v36 = vrot.slane %v3433_v46, %v1194_v22  ;;  %v2772_v22 = vld [vmem:[%s3638_s9] sm:$0xff]  }
0x114c   : > { %2622 = vmatprep.mubr.msk.bf16.mxu0 %vm3055_vm0, %v3054_v0 }
0x1203   : > { %v1772_v38 = vpop.f32.mrf.mxu0 }
0x1204   : > { %v1778_v39 = vpack.c.bf16 %v1772_v38, %v1772_v38 }
0x1205   : > { %v2600_v40 = vpop.f32.mrf.mxu0 }
0x1206   : > { %2605 = vmatmul.mubr.msk.bf16.vlgmr.msra.gmra.mxu1 %vm564_vm2, %v1778_v39 }
0x1207   : > { %v1775_v41 = vpop.f32.mrf.mxu0  ;;  %2616 = vmatprep.mubr.msk.bf16.mxu1 %vm3055_vm0, %v3054_v0 }
0x1209   : > { %v2601_v42 = vpop.f32.mrf.mxu0 }
0x120a   : > { %v2771_v42 = vld [vmem:[%s3638_s9 + $0x8] sm:$0xff]  }
0x120b   : > { %v1870_v43 = vpop.f32.mrf.mxu0 }
0x120c   : > { %v1876_v44 = vsel %vm564_vm2, %v1870_v43, -inf }
0x120d   : > { %1877 = vmax.xlane.f32.xlu0 %v1876_v44  ;;  %v2612_v45 = vpop.f32.mrf.mxu0 }
0x120f   : > { %v1873_v47 = vpop.f32.mrf.mxu0 }
0x1211   : > { %v2613_v48 = vpop.f32.mrf.mxu0 }
0x1223   : > { %1888 = vrot.lane.b32.xlu0 %v3450_v58, %s3063_s23  ;;  %v1941_v58 = vsel %vm628_vm3, %v1355_v59, 0  ;;  %s2185_s23 = scalar_lea.sflag [#allocation4], %s474_s16 }
0x1224   : > { %2621 = vmatpush3.bf16.msra.mxu0 %v1941_v58 }
0x1225   : > { %2634 = vmatprep.subr.bf16.mxu0 %v3054_v0 }
0x1296   : > { %v1878_v49 = vpop.xlane.xlu0 %1877 }
0x1297   : > { %v1879_v50 = vsub.f32 %v1870_v43, %v1878_v49  ;;  %v2811_v43 = vld [vmem:[%s3639_s10] sm:$0xff] }
0x1298   : > { %v2021_v44 = vrot.slane %v2811_v43, %v2020_v62 }
0x1299   : > { %v1880_v51 = vmul.f32 1.442695, %v1879_v50 }
0x129a   : > { %v1889_v53 = vpop.permute.xlu0 %1888 }
0x129b   : > { %2803 = vpow2.f32 %v1880_v51  ;;  %v1894_v55 = vsel %vm628_vm3, %v1889_v53, 0  ;;  %v2089_v53 = vsub.s32 6, %v3301_v6 }
0x129c   : > { %2615 = vmatpush3.bf16.msra.mxu1 %v1894_v55 }
0x129d   : > { %2626 = vmatprep.subr.bf16.mxu1 %v3054_v0  ;;  %v2090_v55 = vrot.slane %v2811_v43, %v2089_v53 }
0x12a8   : > { %v2804_v56 = vpop.eup %2803 }
0x12a9   : > { %v1882_v7 = vsel %vm564_vm2, %v2804_v56, 0.0 }
0x12aa   : > { %1883 = vadd.xlane.f32.xlu1 %v1882_v7 }
0x12c6   : > { %v1819_v57 = vpop.f32.mrf.mxu1 }
0x12c7   : > { %v1825_v60 = vadd.f32 %v1819_v57, %v3511_v12 }
0x12c8   : > { %v2606_v61 = vpop.f32.mrf.mxu1 }
0x12ca   : > { %v1822_v21 = vpop.f32.mrf.mxu1 }
0x12cc   : > { %v2607_v63 = vpop.f32.mrf.mxu1 }
0x1333   : > { %v1884_v1 = vpop.xlane.xlu1 %1883 }
0x1334   : > { %2805 = vrcp.f32 %v1884_v1 }
0x1341   : > { %v2806_v2 = vpop.eup %2805 }
0x1342   : > { %v1886_v4 = vmul.f32 %v2806_v2, %v2804_v56 }
0x1344   : > { %v1887_v13 = vpack.c.bf16 %v1886_v4, %v1886_v4 }
0x1346   : > { %2617 = vmatmul.mubr.msk.bf16.vlgmr.msra.gmra.mxu1 %vm564_vm2, %v1887_v13 }
0x1347   : > { %2630 = vmatprep.mubr.msk.bf16.mxu1 %vm3055_vm0, %v3054_v0  ;;  %2627 = vmatpush3.bf16.msra.mxu1 %v2767_v5 }
0x1348   : > { %2628 = vmatprep.subr.bf16.mxu1 %v3054_v0 }
0x134b   : > { %2629 = vmatpush3.bf16.msra.mxu1 %v2768_v8 }
0x1406   : > { %v1930_v9 = vpop.f32.mrf.mxu1 }
0x1407   : > { %v1936_v10 = vpack.c.bf16 %v1930_v9, %v1930_v9 }
0x1408   : > { %v2618_v11 = vpop.f32.mrf.mxu1 }
0x1409   : > { %2623 = vmatmul.mubr.msk.bf16.vlgmr.msra.gmra.mxu0 %vm564_vm2, %v1936_v10  ;;  %v2176_v11 = vrot.slane %v3433_v46, %v1294_v54 }
0x140a   : > { %v1933_v12 = vpop.f32.mrf.mxu1  ;;  %2642 = vmatprep.mubr.msk.bf16.mxu0 %vm3055_vm0, %v3054_v0 }
0x140c   : > { %v2619_v14 = vpop.f32.mrf.mxu1 }
0x140d   : > { %v2181_v14 = vrot.slane %v3433_v46, %v1986_v15 }
0x14c9   : > { %v1977_v17 = vpop.f32.mrf.mxu0 }
0x14ca   : > { %v1983_v18 = vadd.f32 %v1977_v17, %v1825_v60 }
0x14cb   : > { %v2624_v19 = vpop.f32.mrf.mxu0 }
0x14cc   : > { %v1988_v20 = vadd.f32 %v1987_v16, %v1983_v18 }
0x14cd   : > { %v1980_v23 = vpop.f32.mrf.mxu0 }
0x14ce   : > { %v1989_v24 = vadd.f32 %v1988_v20, %v3439_v52  ;;  %v2769_v52 = vld [vmem:[%s3638_s9 + $0x18] sm:$0xff]  }
0x14cf   : > { %v2625_v25 = vpop.f32.mrf.mxu0  ;;  %2635 = vmatpush3.bf16.msra.mxu0 %v2769_v52 }
0x14d0   : > { %v1990_v26 = vsel %vm512_vm1, %v1989_v24, 0.0  ;;  %2636 = vmatprep.subr.bf16.mxu0 %v3054_v0 }
0x14d1   : > { %1991 = vadd.xlane.f32.xlu1 %v1990_v26 }
0x14d3   : > { %2637 = vmatpush3.bf16.msra.mxu0 %v2770_v32 }
0x14d4   : > { %2638 = vmatprep.subr.bf16.mxu0 %v3054_v0 }
0x14d7   : > { %2639 = vmatpush3.bf16.msra.mxu0 %v2771_v42 }
0x14d8   : > { %2640 = vmatprep.subr.bf16.mxu0 %v3054_v0 }
0x14db   : > { %2641 = vmatpush3.bf16.msra.mxu0 %v2772_v22 }
0x155a   : > { %v1992_v27 = vpop.xlane.xlu1 %1991 }
0x155b   : > { %v1993_v28 = vmul.f32 0.03125, %v1992_v27 }
0x155d   : > { %v1994_v29 = vsub.f32 %v1989_v24, %v1993_v28 }
0x155f   : > { %v1995_v30 = vmul.f32 %v1994_v29, %v1994_v29 }
0x1561   : > { %v1996_v31 = vsel %vm512_vm1, %v1995_v30, 0.0 }
0x1562   : > { %1997 = vadd.xlane.f32.xlu1 %v1996_v31 }
0x15eb   : > { %v1998_v33 = vpop.xlane.xlu1 %1997 }
0x15ec   : > { %v1999_v34 = vmul.f32 0.03125, %v1998_v33 }
0x15ee   : > { %v2000_v35 = vadd.f32 1e-05, %v1999_v34 }
0x15f0   : > { %2807 = vrsqrt.f32 %v2000_v35 }
0x15fd   : > { %v2808_v37 = vpop.eup %2807 }
0x15fe   : > { %v2002_v38 = vmul.f32 %v2808_v37, %v1994_v29 }
0x1600   : > { %v2007_v39 = vmul.f32 %v2006_v36, %v2002_v38 }
0x1602   : > { %v2012_v40 = vadd.f32 %v2011_v3, %v2007_v39 }
0x1604   : > { %v2017_v41 = vpack.c.bf16 %v2012_v40, %v2012_v40 }
0x1606   : > { %2631 = vmatmul.mubr.msk.bf16.vlgmr.msra.gmra.mxu1 %vm512_vm1, %v2017_v41 }
0x16c6   : > { %v2071_v45 = vpop.f32.mrf.mxu1 }
0x16c7   : > { %v2072_v47 = vadd.f32 %v2071_v45, %v2021_v44 }
0x16c8   : > { %v2632_v48 = vpop.f32.mrf.mxu1 }
0x16c9   : > { %v2077_v49 = vmax.f32 %v2072_v47, 0.0 }
0x16ca   : > { %v2074_v50 = vpop.f32.mrf.mxu1 }
0x16cb   : > { %v2078_v51 = vpack.c.bf16 %v2077_v49, %v2077_v49 }
0x16cc   : > { %v2633_v0 = vpop.f32.mrf.mxu1 }
0x16cd   : > { %2643 = vmatmul.mubr.msk.bf16.vlgmr.msra.gmra.mxu0 %vm2115_vm4, %v2078_v51 }
0x178d   : > { %v2153_v56 = vpop.f32.mrf.mxu0 }
0x178e   : > { %v2154_v7 = vadd.f32 %v2153_v56, %v2090_v55 }
0x178f   : > { %v2644_v57 = vpop.f32.mrf.mxu0 }
0x1790   : > { %v2159_v59 = vadd.f32 %v2154_v7, %v2012_v40 }
0x1791   : > { %v2156_v60 = vpop.f32.mrf.mxu0 }
0x1792   : > { %v2160_v58 = vsel %vm512_vm1, %v2159_v59, 0.0 }
0x1793   : > { %2161 = vadd.xlane.f32.xlu1 %v2160_v58  ;;  %v2645_v61 = vpop.f32.mrf.mxu0 }
0x181c   : > { %v2162_v21 = vpop.xlane.xlu1 %2161 }
0x181d   : > { %v2163_v63 = vmul.f32 0.03125, %v2162_v21 }
0x181f   : > { %v2164_v1 = vsub.f32 %v2159_v59, %v2163_v63 }
0x1821   : > { %v2165_v2 = vmul.f32 %v2164_v1, %v2164_v1 }
0x1823   : > { %v2166_v4 = vsel %vm512_vm1, %v2165_v2, 0.0 }
0x1824   : > { %2167 = vadd.xlane.f32.xlu1 %v2166_v4 }
0x18ad   : > { %v2168_v13 = vpop.xlane.xlu1 %2167 }
0x18ae   : > { %v2169_v9 = vmul.f32 0.03125, %v2168_v13 }
0x18b0   : > { %v2170_v10 = vadd.f32 1e-05, %v2169_v9 }
0x18b2   : > { %2809 = vrsqrt.f32 %v2170_v10 }
0x18bf   : > { %v2810_v12 = vpop.eup %2809 }
0x18c0   : > { %v2172_v16 = vmul.f32 %v2810_v12, %v2164_v1 }
0x18c2   : > { %v2177_v17 = vmul.f32 %v2176_v11, %v2172_v16 }
0x18c4   : > { %v2182_v18 = vadd.f32 %v2181_v14, %v2177_v17 }
0x18c6   : > { %2183 = vst.msk [vmem:[%s476_s19] sm:$0xff] %vm512_vm1, %v2182_v18 }
0x18c7   : > { %2981 = shalt.err (!%p2978_p0)
}
0x18c8   : > { %s2982_s26 = scalar_lea.hbm %s2196_s30, 128  ;;  %s2986_s13 = scalar_lea.hbm %s3640_s11, 256 }
0x18c9   : > { %p2983_p3 = scmp.ne.s32.totalorder %s2196_s30, %s2982_s26  ;;  %p2987_p1 = scmp.lt.s32.totalorder %s2196_s30, %s3640_s11 }
0x18ca   : > { %p2988_p2 = scmp.lt.s32.totalorder %s2986_s13, %s2982_s26 }
0x18cb   : > { %p2984_p12 = pnand %p2983_p3, %p3166_p5 }
0x18cc   : > { %p2989_p4 = por %p2988_p2, %p2987_p1 }
0x18cd   : > { %p2985_p10 = pneg %p2984_p12 }
0x18cf   : > { %p2990_p7 = pnand %p2989_p4, %p2985_p10 }
0x18d1   : > { %2993 = shalt.err (!%p2990_p7)
}
0x18d2   : > { %2670 = dma.vmem_to_hbm [thread:$0]  (%p3166_p5), %s2199_s25, 128, %s2196_s30, %s2185_s23  }
0x18d3 PF: > { %p2707_p9 = scmp.ge.s32.totalorder %s3044_s20, 2  ;;  %s2210_s12 = sand.u32 1, %s3032_s17  }
0x18d4   : > { %s2211_s15 = scalar_lea.sflag [#allocation4], %s2210_s12 }
0x18d5   : > { %p2692_p13 = pnand %p2707_p9, %p3170_p6 }
0x18d7   : > { %p2693_p8 = pneg %p2692_p13 }
0x18d9   : > { %3027 = dma.done.wait (%p2693_p8), %s2211_s15, 128  }
0x18da   : > { %3029 = vsyncadd (%p2693_p8), %s2211_s15, 4294967168  ;;  %s3664_s20 = sld [smem:[#allocation20_spill]]  ;;  %s3667_s17 = smov %s3036_s18 }
0x18db   : > { %s3665_s22 = sld [smem:[#allocation19_spill]] }
0x18dc   : > { %s3666_s19 = sld [smem:[#allocation21_spill]] }
0x18e0   : > { %p25_p11 = scmp.ge.s32.totalorder %s3664_s20, 4  }
0x18e1   : > { %s3668_s18 = smov %s3665_s22 }
0x18e2   :  { %27 = sbr.rel (!%p25_p11) target bundleno = 7 (0x7), region = 127 }
0x18e7   :  { %2216 = vsyncpa [#allocation3], 1 }
0x18e8   :  { %2218 = vsyncpa [#allocation3 + $0x1], 1 }
0x18e9   :  { %2219 = vsyncpa [#allocation6], 1 }
0x18ea   :  { %2220 = vsyncpa [#allocation9], 1 }
0x18eb   :  { %2221 = vsyncpa [#allocation12], 1 }
0x18ec   :  { %2222 = vsyncpa [#allocation4], 1 }
0x18ed   :  { %2224 = vsyncpa [#allocation4 + $0x1], 1 }

</bundles_post_ra>
